<compile_context>
chip_gen: v6e
topology: v6e:2x2x1
jax: 0.10.0
libtpu: 0.0.40
codegen_flags: <defaults>
</compile_context>

<pallas_src>
import functools

import jax
import jax.numpy as jnp
import numpy as np
from jax.experimental import pallas as pl
from jax.experimental.pallas import tpu as pltpu


# ---------------------------------------------------------------------------
# Fused 3x3 conv + BN + ReLU kernel (im2col, bf16 MXU, f32 epilogue)
# ---------------------------------------------------------------------------

def _conv3x3_bn_relu_kernel(x_ref, w_ref, scale_ref, bias_ref, *rest,
                            row_block, out_widths):
    """One grid step computes `row_block` output rows of one image.

    grid = (N, H // row_block)

    x_ref:     (1, H, W, Cin)   unpadded input image (resident across rows)
    w_ref:     (9*Cin, Cout)    bf16 im2col weights, Cout = sum(out_widths)
    scale_ref: (1, Cout) f32    folded BN scale  = gamma / sqrt(var + eps)
    bias_ref:  (1, Cout) f32    folded BN bias   = beta - mean * scale
    rest:      out_refs (one per out_widths entry, (1, row_block*W, width)),
               then xpad scratch (H+2, W+2, Cin) bf16.
    """
    n_out = len(out_widths)
    out_refs = rest[:n_out]
    xpad = rest[n_out]

    H, W, Cin = x_ref.shape[1], x_ref.shape[2], x_ref.shape[3]
    RB = row_block
    r = pl.program_id(1)

    # Build the zero-padded bf16 copy of this image once per image (the input
    # block index is constant across the row axis, so x_ref is resident).
    @pl.when(r == 0)
    def _():
        xb = x_ref[0].astype(jnp.bfloat16)                       # (H, W, Cin)
        zrow = jnp.zeros((1, W, Cin), jnp.bfloat16)
        zcol = jnp.zeros((H + 2, 1, Cin), jnp.bfloat16)
        xh = jnp.concatenate([zrow, xb, zrow], axis=0)           # (H+2, W, Cin)
        xpad[...] = jnp.concatenate([zcol, xh, zcol], axis=1)    # (H+2, W+2, Cin)

    # Padded rows needed for output rows [r*RB, r*RB + RB).
    row0 = pl.multiple_of(r * RB, RB)
    xp = xpad[pl.ds(row0, RB + 2), :, :]                         # (RB+2, W+2, Cin)

    # im2col: (RB*W, 9*Cin) patch matrix -> single MXU matmul with K = 9*Cin.
    cols = []
    for kh in range(3):
        for kw in range(3):
            cols.append(xp[kh:kh + RB, kw:kw + W, :].reshape(RB * W, Cin))
    patches = jnp.concatenate(cols, axis=-1)                     # bf16 (RB*W, 9*Cin)

    acc = jnp.dot(patches, w_ref[...],
                  preferred_element_type=jnp.float32)            # f32 (RB*W, Cout)

    # BN affine + ReLU in f32.
    y = jnp.maximum(acc * scale_ref[0] + bias_ref[0], 0.0)

    # Write each fused channel group to its own dense output.
    c0 = 0
    for o_ref, width in zip(out_refs, out_widths):
        o_ref[0] = y[:, c0:c0 + width].astype(o_ref.dtype)
        c0 += width


def _auto_row_block(H, W):
    """Largest divisor of H keeping <= ~4K output pixels per grid step."""
    best = 1
    for d in range(1, H + 1):
        if H % d == 0 and d * W <= 4096:
            best = d
    return best


def fused_cba_forward(x_nhwc, fused_params, out_widths, out_dtypes,
                      row_block=None):
    """Fused 3x3 conv(pad=1) + folded-BN + ReLU with channel-fused heads.

    x_nhwc: (N, H, W, Cin) float32 or bfloat16
    fused_params: {"w": (9*Cin, Cout) bf16, "scale": (Cout,) f32,
                   "bias": (Cout,) f32} with Cout = sum(out_widths)
    returns one (N, H*W, width) array per entry of out_widths.
    """
    N, H, W, Cin = x_nhwc.shape
    w_flat = fused_params["w"]
    Cout = int(w_flat.shape[-1])
    assert int(w_flat.shape[0]) == 9 * Cin
    assert sum(out_widths) == Cout

    if row_block is None:
        row_block = _auto_row_block(H, W)
    assert H % row_block == 0
    assert (row_block * W) % 8 == 0 or row_block == H
    n_rb = H // row_block

    scale2d = fused_params["scale"].reshape(1, Cout).astype(jnp.float32)
    bias2d = fused_params["bias"].reshape(1, Cout).astype(jnp.float32)

    out_shape = tuple(
        jax.ShapeDtypeStruct((N, H * W, wd), dt)
        for wd, dt in zip(out_widths, out_dtypes))
    out_specs = [
        pl.BlockSpec((1, row_block * W, wd), lambda n, r: (n, r, 0))
        for wd in out_widths]

    # Rough VMEM budget (double-buffered ins/outs + pad scratch + im2col
    # temporaries), clamped under v7x's 64 MiB physical VMEM.
    x_item = np.dtype(x_nhwc.dtype).itemsize
    out_items = [np.dtype(dt).itemsize for dt in out_dtypes]
    in_tile = H * W * Cin * x_item
    w_bytes = 9 * Cin * Cout * 2
    out_tile = sum(row_block * W * wd * it
                   for wd, it in zip(out_widths, out_items))
    pad_scratch = (H + 2) * (W + 2) * Cin * 2
    patch_bytes = row_block * W * 9 * Cin * 2
    est = (2 * in_tile + 2 * w_bytes + 2 * out_tile + pad_scratch
           + 6 * patch_bytes + 4 * row_block * W * Cout * 4)
    vmem_limit = int(min(max(4 * est, 16 * 2**20), 56 * 2**20))

    flops = 2 * N * H * W * 9 * Cin * Cout
    bytes_accessed = (N * in_tile + w_bytes
                      + N * H * W * sum(wd * it for wd, it
                                        in zip(out_widths, out_items)))

    kernel = functools.partial(
        _conv3x3_bn_relu_kernel,
        row_block=row_block, out_widths=tuple(out_widths))

    res = pl.pallas_call(
        kernel,
        out_shape=out_shape,
        grid_spec=pltpu.PrefetchScalarGridSpec(
            num_scalar_prefetch=0,
            grid=(N, n_rb),
            in_specs=[
                pl.BlockSpec((1, H, W, Cin), lambda n, r: (n, 0, 0, 0)),
                pl.BlockSpec((9 * Cin, Cout), lambda n, r: (0, 0)),
                pl.BlockSpec((1, Cout), lambda n, r: (0, 0)),
                pl.BlockSpec((1, Cout), lambda n, r: (0, 0)),
            ],
            out_specs=out_specs,
            scratch_shapes=[pltpu.VMEM((H + 2, W + 2, Cin), jnp.bfloat16)],
        ),
        compiler_params=pltpu.CompilerParams(
            dimension_semantics=("parallel", "arbitrary"),
            vmem_limit_bytes=vmem_limit),
        cost_estimate=pl.CostEstimate(
            flops=int(flops), transcendentals=0,
            bytes_accessed=int(bytes_accessed)),
    )(x_nhwc, w_flat, scale2d, bias2d)

    if not isinstance(res, (list, tuple)):
        res = (res,)
    return tuple(res)


# ---------------------------------------------------------------------------
# Parameter construction (deterministic, synthetic — no checkpoint loading)
# ---------------------------------------------------------------------------

def _make_cba_params(key, cin, cout, eps=1e-5):
    kw, kg, kb, km, kv = jax.random.split(key, 5)
    fan_in = cin * 3 * 3
    w = jax.random.normal(kw, (3, 3, cin, cout), jnp.float32) * (2.0 / fan_in) ** 0.5
    gamma = 1.0 + 0.1 * jax.random.normal(kg, (cout,), jnp.float32)
    beta = 0.1 * jax.random.normal(kb, (cout,), jnp.float32)
    running_mean = 0.1 * jax.random.normal(km, (cout,), jnp.float32)
    running_var = 1.0 + 0.1 * jax.random.uniform(kv, (cout,), jnp.float32)
    scale = gamma / jnp.sqrt(running_var + eps)      # fold eval-mode BN
    bias = beta - running_mean * scale
    return {"w": w, "scale": scale, "bias": bias}


def make_detect_module_params(key, in_channels):
    assert in_channels % 4 == 0
    bw = in_channels // 4
    keys = jax.random.split(key, 5)
    raw = {
        "upconv": _make_cba_params(keys[0], in_channels, in_channels // 2),
        "ctx_inconv": _make_cba_params(keys[1], in_channels, bw),
        "ctx_upconv": _make_cba_params(keys[2], bw, bw),
        "ctx_downconv": _make_cba_params(keys[3], bw, bw),
        "ctx_downconv2": _make_cba_params(keys[4], bw, bw),
    }

    def fuse(*blocks):
        w = jnp.concatenate([b["w"] for b in blocks], axis=-1)   # (3,3,Cin,Cout)
        cin, cout = int(w.shape[2]), int(w.shape[3])
        return {
            "w": w.reshape(9 * cin, cout).astype(jnp.bfloat16),  # im2col layout
            "scale": jnp.concatenate([b["scale"] for b in blocks]).astype(jnp.float32),
            "bias": jnp.concatenate([b["bias"] for b in blocks]).astype(jnp.float32),
        }

    return {
        "raw": raw,
        "A": fuse(raw["upconv"], raw["ctx_inconv"]),          # over x
        "B": fuse(raw["ctx_upconv"], raw["ctx_downconv"]),    # over t
        "C": fuse(raw["ctx_downconv2"]),                      # over cd
    }


# ---------------------------------------------------------------------------
# DetectModule forward
# ---------------------------------------------------------------------------

def detect_module_forward(x_nchw, params, row_block=None):
    """DetectModule.forward. Input/output in PyTorch NCHW layout."""
    x = jnp.transpose(x_nchw, (0, 2, 3, 1))                  # NCHW -> NHWC
    N, H, W, C = x.shape
    half, quarter = C // 2, C // 4

    # conv A: upconv + context.inconv (shared input x), fused along Cout.
    up, t = fused_cba_forward(
        x, params["A"], out_widths=(half, quarter),
        out_dtypes=(jnp.float32, jnp.bfloat16), row_block=row_block)
    t = t.reshape(N, H, W, quarter)                          # free reshape

    # conv B: context.upconv + context.downconv (shared input t).
    cu, cd = fused_cba_forward(
        t, params["B"], out_widths=(quarter, quarter),
        out_dtypes=(jnp.float32, jnp.bfloat16), row_block=row_block)
    cd = cd.reshape(N, H, W, quarter)

    # conv C: context.downconv2.
    (cd2,) = fused_cba_forward(
        cd, params["C"], out_widths=(quarter,),
        out_dtypes=(jnp.float32,), row_block=row_block)

    out = jnp.concatenate([up, cu, cd2], axis=-1)            # (N, H*W, C)
    out = out.reshape(N, H, W, C)
    return jnp.transpose(out, (0, 3, 1, 2))                  # NHWC -> NCHW


# ---------------------------------------------------------------------------
# Pure-JAX reference (for correctness check)
# ---------------------------------------------------------------------------

def _cba_ref(x_nhwc, p):
    y = jax.lax.conv_general_dilated(
        x_nhwc, p["w"], window_strides=(1, 1), padding=((1, 1), (1, 1)),
        dimension_numbers=("NHWC", "HWIO", "NHWC"))
    y = y * p["scale"] + p["bias"]
    return jnp.maximum(y, 0.0)


def detect_module_ref(x_nchw, params):
    raw = params["raw"]
    x = jnp.transpose(x_nchw, (0, 2, 3, 1))
    up = _cba_ref(x, raw["upconv"])
    t = _cba_ref(x, raw["ctx_inconv"])
    cu = _cba_ref(t, raw["ctx_upconv"])
    cd = _cba_ref(t, raw["ctx_downconv"])
    cd = _cba_ref(cd, raw["ctx_downconv2"])
    out = jnp.concatenate([up, cu, cd], axis=-1)
    return jnp.transpose(out, (0, 3, 1, 2))


if __name__ == "__main__":
    key = jax.random.PRNGKey(0)
    k_x, k_p = jax.random.split(key)

    N, C, H, W = 2, 16, 16, 16                  # small; C divisible by 4
    x = jax.random.normal(k_x, (N, C, H, W), jnp.float32)
    params = make_detect_module_params(k_p, C)

    ref = detect_module_ref(x, params)

    # Exercise both the multi-row-block path (2 blocks of 8 rows) and the
    # auto (whole-image) path.
    for rb in (8, None):
        fwd = jax.jit(functools.partial(detect_module_forward,
                                        params=params, row_block=rb))
        out = jax.block_until_ready(fwd(x))
        assert out.shape == (N, C, H, W), out.shape
        max_err = float(jnp.max(jnp.abs(out - ref)))
        rel_err = float(jnp.linalg.norm(out - ref)
                        / (jnp.linalg.norm(ref) + 1e-6))
        # matmul operands are bf16 (MXU-native); accumulation/BN/ReLU are f32,
        # so tolerance is bf16-level vs the f32 reference.
        assert rel_err < 1e-2 and max_err < 0.25, (rel_err, max_err)

    print("KERNEL_OK")
</pallas_src>

<mosaic_0001>
module attributes {stable_mosaic.version = 11 : i64} {
  func.func @_conv3x3_bn_relu_kernel(%arg0: i32, %arg1: i32, %arg2: memref<1x16x16x16xf32, #tpu.memory_space<vmem>>, %arg3: memref<144x12xbf16, #tpu.memory_space<vmem>>, %arg4: memref<1x12xf32, #tpu.memory_space<vmem>>, %arg5: memref<1x12xf32, #tpu.memory_space<vmem>>, %arg6: memref<1x128x8xf32, #tpu.memory_space<vmem>>, %arg7: memref<1x128x4xbf16, #tpu.memory_space<vmem>>, %arg8: memref<18x18x16xbf16, #tpu.memory_space<vmem>>) attributes {dimension_semantics = [#tpu.dimension_semantics<parallel>, #tpu.dimension_semantics<arbitrary>], iteration_bounds = array<i64: 2, 2>, scalar_prefetch = 0 : i64, scratch_operands = 1 : i64, tpu.core_type = #tpu.core_type<tc>, window_params = [{transform_indices = @transform_0, window_bounds = array<i64: 1, 16, 16, 16>}, {pipeline_mode = #tpu.pipeline_mode<synchronous>, transform_indices = @transform_1, window_bounds = array<i64: 144, 12>}, {pipeline_mode = #tpu.pipeline_mode<synchronous>, transform_indices = @transform_2, window_bounds = array<i64: 1, 12>}, {pipeline_mode = #tpu.pipeline_mode<synchronous>, transform_indices = @transform_3, window_bounds = array<i64: 1, 12>}, {transform_indices = @transform_4, window_bounds = array<i64: 1, 128, 8>}, {transform_indices = @transform_5, window_bounds = array<i64: 1, 128, 4>}]} {
    %c0_i32 = arith.constant 0 : i32
    %0 = arith.cmpi eq, %arg1, %c0_i32 : i32
    %1 = arith.extui %0 : i1 to i32
    %c0_i32_0 = arith.constant 0 : i32
    %2 = arith.cmpi ne, %1, %c0_i32_0 : i32
    scf.if %2 {
      %c0_15 = arith.constant 0 : index
      %c0_16 = arith.constant 0 : index
      %c0_17 = arith.constant 0 : index
      %c0_18 = arith.constant 0 : index
      %49 = vector.load %arg2[%c0_15, %c0_16, %c0_17, %c0_18] : memref<1x16x16x16xf32, #tpu.memory_space<vmem>>, vector<1x16x16x16xf32>
      %50 = vector.shape_cast %49 : vector<1x16x16x16xf32> to vector<16x16x16xf32>
      %51 = arith.truncf %50 : vector<16x16x16xf32> to vector<16x16x16xbf16>
      %cst_19 = arith.constant 0.000000e+00 : bf16
      %52 = vector.broadcast %cst_19 : bf16 to vector<1x16x16xbf16>
      %cst_20 = arith.constant 0.000000e+00 : bf16
      %53 = vector.broadcast %cst_20 : bf16 to vector<18x1x16xbf16>
      %54 = tpu.concatenate %52, %51, %52 in 0 : vector<1x16x16xbf16>, vector<16x16x16xbf16>, vector<1x16x16xbf16> -> vector<18x16x16xbf16>
      %55 = tpu.concatenate %53, %54, %53 in 1 : vector<18x1x16xbf16>, vector<18x16x16xbf16>, vector<18x1x16xbf16> -> vector<18x18x16xbf16>
      %c0_21 = arith.constant 0 : index
      %c0_22 = arith.constant 0 : index
      %c0_23 = arith.constant 0 : index
      %56 = vector.load %arg8[%c0_21, %c0_22, %c0_23] : memref<18x18x16xbf16, #tpu.memory_space<vmem>>, vector<18x18x16xbf16>
      tpu.vector_store %arg8[%c0_21, %c0_22, %c0_23], %55 {strides = array<i32>} : memref<18x18x16xbf16, #tpu.memory_space<vmem>>, vector<18x18x16xbf16>,
    } else {
    }
    %c8_i32 = arith.constant 8 : i32
    %3 = arith.muli %arg1, %c8_i32 : i32
    %4 = tpu.assume_multiple %3, 8 : i32
    %5 = arith.index_cast %4 : i32 to index
    %c0 = arith.constant 0 : index
    %c0_1 = arith.constant 0 : index
    %6 = vector.load %arg8[%5, %c0, %c0_1] : memref<18x18x16xbf16, #tpu.memory_space<vmem>>, vector<10x18x16xbf16>
    %7 = vector.extract_strided_slice %6 {offsets = [0, 0, 0], sizes = [8, 16, 16], strides = [1, 1, 1]} : vector<10x18x16xbf16> to vector<8x16x16xbf16>
    %8 = vector.shape_cast %7 : vector<8x16x16xbf16> to vector<128x16xbf16>
    %9 = vector.extract_strided_slice %6 {offsets = [0, 1, 0], sizes = [8, 16, 16], strides = [1, 1, 1]} : vector<10x18x16xbf16> to vector<8x16x16xbf16>
    %10 = vector.shape_cast %9 : vector<8x16x16xbf16> to vector<128x16xbf16>
    %11 = vector.extract_strided_slice %6 {offsets = [0, 2, 0], sizes = [8, 16, 16], strides = [1, 1, 1]} : vector<10x18x16xbf16> to vector<8x16x16xbf16>
    %12 = vector.shape_cast %11 : vector<8x16x16xbf16> to vector<128x16xbf16>
    %13 = vector.extract_strided_slice %6 {offsets = [1, 0, 0], sizes = [8, 16, 16], strides = [1, 1, 1]} : vector<10x18x16xbf16> to vector<8x16x16xbf16>
    %14 = vector.shape_cast %13 : vector<8x16x16xbf16> to vector<128x16xbf16>
    %15 = vector.extract_strided_slice %6 {offsets = [1, 1, 0], sizes = [8, 16, 16], strides = [1, 1, 1]} : vector<10x18x16xbf16> to vector<8x16x16xbf16>
    %16 = vector.shape_cast %15 : vector<8x16x16xbf16> to vector<128x16xbf16>
    %17 = vector.extract_strided_slice %6 {offsets = [1, 2, 0], sizes = [8, 16, 16], strides = [1, 1, 1]} : vector<10x18x16xbf16> to vector<8x16x16xbf16>
    %18 = vector.shape_cast %17 : vector<8x16x16xbf16> to vector<128x16xbf16>
    %19 = vector.extract_strided_slice %6 {offsets = [2, 0, 0], sizes = [8, 16, 16], strides = [1, 1, 1]} : vector<10x18x16xbf16> to vector<8x16x16xbf16>
    %20 = vector.shape_cast %19 : vector<8x16x16xbf16> to vector<128x16xbf16>
    %21 = vector.extract_strided_slice %6 {offsets = [2, 1, 0], sizes = [8, 16, 16], strides = [1, 1, 1]} : vector<10x18x16xbf16> to vector<8x16x16xbf16>
    %22 = vector.shape_cast %21 : vector<8x16x16xbf16> to vector<128x16xbf16>
    %23 = vector.extract_strided_slice %6 {offsets = [2, 2, 0], sizes = [8, 16, 16], strides = [1, 1, 1]} : vector<10x18x16xbf16> to vector<8x16x16xbf16>
    %24 = vector.shape_cast %23 : vector<8x16x16xbf16> to vector<128x16xbf16>
    %25 = tpu.concatenate %8, %10, %12, %14, %16, %18, %20, %22, %24 in 1 : vector<128x16xbf16>, vector<128x16xbf16>, vector<128x16xbf16>, vector<128x16xbf16>, vector<128x16xbf16>, vector<128x16xbf16>, vector<128x16xbf16>, vector<128x16xbf16>, vector<128x16xbf16> -> vector<128x144xbf16>
    %c0_2 = arith.constant 0 : index
    %c0_3 = arith.constant 0 : index
    %26 = vector.load %arg3[%c0_2, %c0_3] : memref<144x12xbf16, #tpu.memory_space<vmem>>, vector<144x12xbf16>
    %cst = arith.constant dense<0.000000e+00> : vector<128x12xf32>
    %27 = tpu.matmul %25, %26, %cst {dimension_numbers = #tpu.dot_dimension_numbers<[1], [0], [0], [1], [0, 0, 1, 1], [], []>} : vector<128x144xbf16>, vector<144x12xbf16>, vector<128x12xf32> -> vector<128x12xf32>
    %c0_4 = arith.constant 0 : index
    %c0_5 = arith.constant 0 : index
    %28 = vector.load %arg4[%c0_4, %c0_5] : memref<1x12xf32, #tpu.memory_space<vmem>>, vector<1x12xf32>
    %29 = vector.shape_cast %28 : vector<1x12xf32> to vector<12xf32>
    %30 = vector.shape_cast %29 : vector<12xf32> to vector<1x12xf32>
    %31 = vector.broadcast %30 : vector<1x12xf32> to vector<128x12xf32>
    %32 = arith.mulf %27, %31 : vector<128x12xf32>
    %c0_6 = arith.constant 0 : index
    %c0_7 = arith.constant 0 : index
    %33 = vector.load %arg5[%c0_6, %c0_7] : memref<1x12xf32, #tpu.memory_space<vmem>>, vector<1x12xf32>
    %34 = vector.shape_cast %33 : vector<1x12xf32> to vector<12xf32>
    %35 = vector.shape_cast %34 : vector<12xf32> to vector<1x12xf32>
    %36 = vector.broadcast %35 : vector<1x12xf32> to vector<128x12xf32>
    %37 = arith.addf %32, %36 : vector<128x12xf32>
    %cst_8 = arith.constant 0.000000e+00 : f32
    %38 = vector.broadcast %cst_8 : f32 to vector<128x12xf32>
    %39 = arith.maximumf %37, %38 : vector<128x12xf32>
    %40 = vector.extract_strided_slice %39 {offsets = [0, 0], sizes = [128, 8], strides = [1, 1]} : vector<128x12xf32> to vector<128x8xf32>
    %c0_9 = arith.constant 0 : index
    %c0_10 = arith.constant 0 : index
    %c0_11 = arith.constant 0 : index
    %41 = vector.load %arg6[%c0_9, %c0_10, %c0_11] : memref<1x128x8xf32, #tpu.memory_space<vmem>>, vector<1x128x8xf32>
    %42 = vector.shape_cast %41 : vector<1x128x8xf32> to vector<128x8xf32>
    %43 = vector.shape_cast %40 : vector<128x8xf32> to vector<1x128x8xf32>
    tpu.vector_store %arg6[%c0_9, %c0_10, %c0_11], %43 {strides = array<i32>} : memref<1x128x8xf32, #tpu.memory_space<vmem>>, vector<1x128x8xf32>,
    %44 = vector.extract_strided_slice %39 {offsets = [0, 8], sizes = [128, 4], strides = [1, 1]} : vector<128x12xf32> to vector<128x4xf32>
    %45 = arith.truncf %44 : vector<128x4xf32> to vector<128x4xbf16>
    %c0_12 = arith.constant 0 : index
    %c0_13 = arith.constant 0 : index
    %c0_14 = arith.constant 0 : index
    %46 = vector.load %arg7[%c0_12, %c0_13, %c0_14] : memref<1x128x4xbf16, #tpu.memory_space<vmem>>, vector<1x128x4xbf16>
    %47 = vector.shape_cast %46 : vector<1x128x4xbf16> to vector<128x4xbf16>
    %48 = vector.shape_cast %45 : vector<128x4xbf16> to vector<1x128x4xbf16>
    tpu.vector_store %arg7[%c0_12, %c0_13, %c0_14], %48 {strides = array<i32>} : memref<1x128x4xbf16, #tpu.memory_space<vmem>>, vector<1x128x4xbf16>,
    return
  }
  func.func @transform_0(%arg0: i32, %arg1: i32) -> (i32, i32, i32, i32) {
    %c0_i32 = arith.constant 0 : i32
    %c0_i32_0 = arith.constant 0 : i32
    %c0_i32_1 = arith.constant 0 : i32
    %c0_i32_2 = arith.constant 0 : i32
    return %arg0, %c0_i32, %c0_i32_0, %c0_i32_1 : i32, i32, i32, i32
  }
  func.func @transform_1(%arg0: i32, %arg1: i32) -> (i32, i32) {
    %c0_i32 = arith.constant 0 : i32
    %c0_i32_0 = arith.constant 0 : i32
    %c0_i32_1 = arith.constant 0 : i32
    return %c0_i32, %c0_i32_0 : i32, i32
  }
  func.func @transform_2(%arg0: i32, %arg1: i32) -> (i32, i32) {
    %c0_i32 = arith.constant 0 : i32
    %c0_i32_0 = arith.constant 0 : i32
    %c0_i32_1 = arith.constant 0 : i32
    return %c0_i32, %c0_i32_0 : i32, i32
  }
  func.func @transform_3(%arg0: i32, %arg1: i32) -> (i32, i32) {
    %c0_i32 = arith.constant 0 : i32
    %c0_i32_0 = arith.constant 0 : i32
    %c0_i32_1 = arith.constant 0 : i32
    return %c0_i32, %c0_i32_0 : i32, i32
  }
  func.func @transform_4(%arg0: i32, %arg1: i32) -> (i32, i32, i32) {
    %c0_i32 = arith.constant 0 : i32
    %c0_i32_0 = arith.constant 0 : i32
    return %arg0, %arg1, %c0_i32 : i32, i32, i32
  }
  func.func @transform_5(%arg0: i32, %arg1: i32) -> (i32, i32, i32) {
    %c0_i32 = arith.constant 0 : i32
    %c0_i32_0 = arith.constant 0 : i32
    return %arg0, %arg1, %c0_i32 : i32, i32, i32
  }
}

module attributes {stable_mosaic.version = 11 : i64} {
  func.func @_conv3x3_bn_relu_kernel(%arg0: i32, %arg1: i32, %arg2: memref<1x16x16x4xbf16, #tpu.memory_space<vmem>>, %arg3: memref<36x8xbf16, #tpu.memory_space<vmem>>, %arg4: memref<1x8xf32, #tpu.memory_space<vmem>>, %arg5: memref<1x8xf32, #tpu.memory_space<vmem>>, %arg6: memref<1x128x4xf32, #tpu.memory_space<vmem>>, %arg7: memref<1x128x4xbf16, #tpu.memory_space<vmem>>, %arg8: memref<18x18x4xbf16, #tpu.memory_space<vmem>>) attributes {dimension_semantics = [#tpu.dimension_semantics<parallel>, #tpu.dimension_semantics<arbitrary>], iteration_bounds = array<i64: 2, 2>, scalar_prefetch = 0 : i64, scratch_operands = 1 : i64, tpu.core_type = #tpu.core_type<tc>, window_params = [{transform_indices = @transform_0, window_bounds = array<i64: 1, 16, 16, 4>}, {pipeline_mode = #tpu.pipeline_mode<synchronous>, transform_indices = @transform_1, window_bounds = array<i64: 36, 8>}, {pipeline_mode = #tpu.pipeline_mode<synchronous>, transform_indices = @transform_2, window_bounds = array<i64: 1, 8>}, {pipeline_mode = #tpu.pipeline_mode<synchronous>, transform_indices = @transform_3, window_bounds = array<i64: 1, 8>}, {transform_indices = @transform_4, window_bounds = array<i64: 1, 128, 4>}, {transform_indices = @transform_5, window_bounds = array<i64: 1, 128, 4>}]} {
    %c0_i32 = arith.constant 0 : i32
    %0 = arith.cmpi eq, %arg1, %c0_i32 : i32
    %1 = arith.extui %0 : i1 to i32
    %c0_i32_0 = arith.constant 0 : i32
    %2 = arith.cmpi ne, %1, %c0_i32_0 : i32
    scf.if %2 {
      %c0_15 = arith.constant 0 : index
      %c0_16 = arith.constant 0 : index
      %c0_17 = arith.constant 0 : index
      %c0_18 = arith.constant 0 : index
      %49 = vector.load %arg2[%c0_15, %c0_16, %c0_17, %c0_18] : memref<1x16x16x4xbf16, #tpu.memory_space<vmem>>, vector<1x16x16x4xbf16>
      %50 = vector.shape_cast %49 : vector<1x16x16x4xbf16> to vector<16x16x4xbf16>
      %cst_19 = arith.constant 0.000000e+00 : bf16
      %51 = vector.broadcast %cst_19 : bf16 to vector<1x16x4xbf16>
      %cst_20 = arith.constant 0.000000e+00 : bf16
      %52 = vector.broadcast %cst_20 : bf16 to vector<18x1x4xbf16>
      %53 = tpu.concatenate %51, %50, %51 in 0 : vector<1x16x4xbf16>, vector<16x16x4xbf16>, vector<1x16x4xbf16> -> vector<18x16x4xbf16>
      %54 = tpu.concatenate %52, %53, %52 in 1 : vector<18x1x4xbf16>, vector<18x16x4xbf16>, vector<18x1x4xbf16> -> vector<18x18x4xbf16>
      %c0_21 = arith.constant 0 : index
      %c0_22 = arith.constant 0 : index
      %c0_23 = arith.constant 0 : index
      %55 = vector.load %arg8[%c0_21, %c0_22, %c0_23] : memref<18x18x4xbf16, #tpu.memory_space<vmem>>, vector<18x18x4xbf16>
      tpu.vector_store %arg8[%c0_21, %c0_22, %c0_23], %54 {strides = array<i32>} : memref<18x18x4xbf16, #tpu.memory_space<vmem>>, vector<18x18x4xbf16>,
    } else {
    }
    %c8_i32 = arith.constant 8 : i32
    %3 = arith.muli %arg1, %c8_i32 : i32
    %4 = tpu.assume_multiple %3, 8 : i32
    %5 = arith.index_cast %4 : i32 to index
    %c0 = arith.constant 0 : index
    %c0_1 = arith.constant 0 : index
    %6 = vector.load %arg8[%5, %c0, %c0_1] : memref<18x18x4xbf16, #tpu.memory_space<vmem>>, vector<10x18x4xbf16>
    %7 = vector.extract_strided_slice %6 {offsets = [0, 0, 0], sizes = [8, 16, 4], strides = [1, 1, 1]} : vector<10x18x4xbf16> to vector<8x16x4xbf16>
    %8 = vector.shape_cast %7 : vector<8x16x4xbf16> to vector<128x4xbf16>
    %9 = vector.extract_strided_slice %6 {offsets = [0, 1, 0], sizes = [8, 16, 4], strides = [1, 1, 1]} : vector<10x18x4xbf16> to vector<8x16x4xbf16>
    %10 = vector.shape_cast %9 : vector<8x16x4xbf16> to vector<128x4xbf16>
    %11 = vector.extract_strided_slice %6 {offsets = [0, 2, 0], sizes = [8, 16, 4], strides = [1, 1, 1]} : vector<10x18x4xbf16> to vector<8x16x4xbf16>
    %12 = vector.shape_cast %11 : vector<8x16x4xbf16> to vector<128x4xbf16>
    %13 = vector.extract_strided_slice %6 {offsets = [1, 0, 0], sizes = [8, 16, 4], strides = [1, 1, 1]} : vector<10x18x4xbf16> to vector<8x16x4xbf16>
    %14 = vector.shape_cast %13 : vector<8x16x4xbf16> to vector<128x4xbf16>
    %15 = vector.extract_strided_slice %6 {offsets = [1, 1, 0], sizes = [8, 16, 4], strides = [1, 1, 1]} : vector<10x18x4xbf16> to vector<8x16x4xbf16>
    %16 = vector.shape_cast %15 : vector<8x16x4xbf16> to vector<128x4xbf16>
    %17 = vector.extract_strided_slice %6 {offsets = [1, 2, 0], sizes = [8, 16, 4], strides = [1, 1, 1]} : vector<10x18x4xbf16> to vector<8x16x4xbf16>
    %18 = vector.shape_cast %17 : vector<8x16x4xbf16> to vector<128x4xbf16>
    %19 = vector.extract_strided_slice %6 {offsets = [2, 0, 0], sizes = [8, 16, 4], strides = [1, 1, 1]} : vector<10x18x4xbf16> to vector<8x16x4xbf16>
    %20 = vector.shape_cast %19 : vector<8x16x4xbf16> to vector<128x4xbf16>
    %21 = vector.extract_strided_slice %6 {offsets = [2, 1, 0], sizes = [8, 16, 4], strides = [1, 1, 1]} : vector<10x18x4xbf16> to vector<8x16x4xbf16>
    %22 = vector.shape_cast %21 : vector<8x16x4xbf16> to vector<128x4xbf16>
    %23 = vector.extract_strided_slice %6 {offsets = [2, 2, 0], sizes = [8, 16, 4], strides = [1, 1, 1]} : vector<10x18x4xbf16> to vector<8x16x4xbf16>
    %24 = vector.shape_cast %23 : vector<8x16x4xbf16> to vector<128x4xbf16>
    %25 = tpu.concatenate %8, %10, %12, %14, %16, %18, %20, %22, %24 in 1 : vector<128x4xbf16>, vector<128x4xbf16>, vector<128x4xbf16>, vector<128x4xbf16>, vector<128x4xbf16>, vector<128x4xbf16>, vector<128x4xbf16>, vector<128x4xbf16>, vector<128x4xbf16> -> vector<128x36xbf16>
    %c0_2 = arith.constant 0 : index
    %c0_3 = arith.constant 0 : index
    %26 = vector.load %arg3[%c0_2, %c0_3] : memref<36x8xbf16, #tpu.memory_space<vmem>>, vector<36x8xbf16>
    %cst = arith.constant dense<0.000000e+00> : vector<128x8xf32>
    %27 = tpu.matmul %25, %26, %cst {dimension_numbers = #tpu.dot_dimension_numbers<[1], [0], [0], [1], [0, 0, 1, 1], [], []>} : vector<128x36xbf16>, vector<36x8xbf16>, vector<128x8xf32> -> vector<128x8xf32>
    %c0_4 = arith.constant 0 : index
    %c0_5 = arith.constant 0 : index
    %28 = vector.load %arg4[%c0_4, %c0_5] : memref<1x8xf32, #tpu.memory_space<vmem>>, vector<1x8xf32>
    %29 = vector.shape_cast %28 : vector<1x8xf32> to vector<8xf32>
    %30 = vector.shape_cast %29 : vector<8xf32> to vector<1x8xf32>
    %31 = vector.broadcast %30 : vector<1x8xf32> to vector<128x8xf32>
    %32 = arith.mulf %27, %31 : vector<128x8xf32>
    %c0_6 = arith.constant 0 : index
    %c0_7 = arith.constant 0 : index
    %33 = vector.load %arg5[%c0_6, %c0_7] : memref<1x8xf32, #tpu.memory_space<vmem>>, vector<1x8xf32>
    %34 = vector.shape_cast %33 : vector<1x8xf32> to vector<8xf32>
    %35 = vector.shape_cast %34 : vector<8xf32> to vector<1x8xf32>
    %36 = vector.broadcast %35 : vector<1x8xf32> to vector<128x8xf32>
    %37 = arith.addf %32, %36 : vector<128x8xf32>
    %cst_8 = arith.constant 0.000000e+00 : f32
    %38 = vector.broadcast %cst_8 : f32 to vector<128x8xf32>
    %39 = arith.maximumf %37, %38 : vector<128x8xf32>
    %40 = vector.extract_strided_slice %39 {offsets = [0, 0], sizes = [128, 4], strides = [1, 1]} : vector<128x8xf32> to vector<128x4xf32>
    %c0_9 = arith.constant 0 : index
    %c0_10 = arith.constant 0 : index
    %c0_11 = arith.constant 0 : index
    %41 = vector.load %arg6[%c0_9, %c0_10, %c0_11] : memref<1x128x4xf32, #tpu.memory_space<vmem>>, vector<1x128x4xf32>
    %42 = vector.shape_cast %41 : vector<1x128x4xf32> to vector<128x4xf32>
    %43 = vector.shape_cast %40 : vector<128x4xf32> to vector<1x128x4xf32>
    tpu.vector_store %arg6[%c0_9, %c0_10, %c0_11], %43 {strides = array<i32>} : memref<1x128x4xf32, #tpu.memory_space<vmem>>, vector<1x128x4xf32>,
    %44 = vector.extract_strided_slice %39 {offsets = [0, 4], sizes = [128, 4], strides = [1, 1]} : vector<128x8xf32> to vector<128x4xf32>
    %45 = arith.truncf %44 : vector<128x4xf32> to vector<128x4xbf16>
    %c0_12 = arith.constant 0 : index
    %c0_13 = arith.constant 0 : index
    %c0_14 = arith.constant 0 : index
    %46 = vector.load %arg7[%c0_12, %c0_13, %c0_14] : memref<1x128x4xbf16, #tpu.memory_space<vmem>>, vector<1x128x4xbf16>
    %47 = vector.shape_cast %46 : vector<1x128x4xbf16> to vector<128x4xbf16>
    %48 = vector.shape_cast %45 : vector<128x4xbf16> to vector<1x128x4xbf16>
    tpu.vector_store %arg7[%c0_12, %c0_13, %c0_14], %48 {strides = array<i32>} : memref<1x128x4xbf16, #tpu.memory_space<vmem>>, vector<1x128x4xbf16>,
    return
  }
  func.func @transform_0(%arg0: i32, %arg1: i32) -> (i32, i32, i32, i32) {
    %c0_i32 = arith.constant 0 : i32
    %c0_i32_0 = arith.constant 0 : i32
    %c0_i32_1 = arith.constant 0 : i32
    %c0_i32_2 = arith.constant 0 : i32
    return %arg0, %c0_i32, %c0_i32_0, %c0_i32_1 : i32, i32, i32, i32
  }
  func.func @transform_1(%arg0: i32, %arg1: i32) -> (i32, i32) {
    %c0_i32 = arith.constant 0 : i32
    %c0_i32_0 = arith.constant 0 : i32
    %c0_i32_1 = arith.constant 0 : i32
    return %c0_i32, %c0_i32_0 : i32, i32
  }
  func.func @transform_2(%arg0: i32, %arg1: i32) -> (i32, i32) {
    %c0_i32 = arith.constant 0 : i32
    %c0_i32_0 = arith.constant 0 : i32
    %c0_i32_1 = arith.constant 0 : i32
    return %c0_i32, %c0_i32_0 : i32, i32
  }
  func.func @transform_3(%arg0: i32, %arg1: i32) -> (i32, i32) {
    %c0_i32 = arith.constant 0 : i32
    %c0_i32_0 = arith.constant 0 : i32
    %c0_i32_1 = arith.constant 0 : i32
    return %c0_i32, %c0_i32_0 : i32, i32
  }
  func.func @transform_4(%arg0: i32, %arg1: i32) -> (i32, i32, i32) {
    %c0_i32 = arith.constant 0 : i32
    %c0_i32_0 = arith.constant 0 : i32
    return %arg0, %arg1, %c0_i32 : i32, i32, i32
  }
  func.func @transform_5(%arg0: i32, %arg1: i32) -> (i32, i32, i32) {
    %c0_i32 = arith.constant 0 : i32
    %c0_i32_0 = arith.constant 0 : i32
    return %arg0, %arg1, %c0_i32 : i32, i32, i32
  }
}

module attributes {stable_mosaic.version = 11 : i64} {
  func.func @_conv3x3_bn_relu_kernel(%arg0: i32, %arg1: i32, %arg2: memref<1x16x16x4xbf16, #tpu.memory_space<vmem>>, %arg3: memref<36x4xbf16, #tpu.memory_space<vmem>>, %arg4: memref<1x4xf32, #tpu.memory_space<vmem>>, %arg5: memref<1x4xf32, #tpu.memory_space<vmem>>, %arg6: memref<1x128x4xf32, #tpu.memory_space<vmem>>, %arg7: memref<18x18x4xbf16, #tpu.memory_space<vmem>>) attributes {dimension_semantics = [#tpu.dimension_semantics<parallel>, #tpu.dimension_semantics<arbitrary>], iteration_bounds = array<i64: 2, 2>, scalar_prefetch = 0 : i64, scratch_operands = 1 : i64, tpu.core_type = #tpu.core_type<tc>, window_params = [{transform_indices = @transform_0, window_bounds = array<i64: 1, 16, 16, 4>}, {pipeline_mode = #tpu.pipeline_mode<synchronous>, transform_indices = @transform_1, window_bounds = array<i64: 36, 4>}, {pipeline_mode = #tpu.pipeline_mode<synchronous>, transform_indices = @transform_2, window_bounds = array<i64: 1, 4>}, {pipeline_mode = #tpu.pipeline_mode<synchronous>, transform_indices = @transform_3, window_bounds = array<i64: 1, 4>}, {transform_indices = @transform_4, window_bounds = array<i64: 1, 128, 4>}]} {
    %c0_i32 = arith.constant 0 : i32
    %0 = arith.cmpi eq, %arg1, %c0_i32 : i32
    %1 = arith.extui %0 : i1 to i32
    %c0_i32_0 = arith.constant 0 : i32
    %2 = arith.cmpi ne, %1, %c0_i32_0 : i32
    scf.if %2 {
      %c0_12 = arith.constant 0 : index
      %c0_13 = arith.constant 0 : index
      %c0_14 = arith.constant 0 : index
      %c0_15 = arith.constant 0 : index
      %43 = vector.load %arg2[%c0_12, %c0_13, %c0_14, %c0_15] : memref<1x16x16x4xbf16, #tpu.memory_space<vmem>>, vector<1x16x16x4xbf16>
      %44 = vector.shape_cast %43 : vector<1x16x16x4xbf16> to vector<16x16x4xbf16>
      %cst_16 = arith.constant 0.000000e+00 : bf16
      %45 = vector.broadcast %cst_16 : bf16 to vector<1x16x4xbf16>
      %cst_17 = arith.constant 0.000000e+00 : bf16
      %46 = vector.broadcast %cst_17 : bf16 to vector<18x1x4xbf16>
      %47 = tpu.concatenate %45, %44, %45 in 0 : vector<1x16x4xbf16>, vector<16x16x4xbf16>, vector<1x16x4xbf16> -> vector<18x16x4xbf16>
      %48 = tpu.concatenate %46, %47, %46 in 1 : vector<18x1x4xbf16>, vector<18x16x4xbf16>, vector<18x1x4xbf16> -> vector<18x18x4xbf16>
      %c0_18 = arith.constant 0 : index
      %c0_19 = arith.constant 0 : index
      %c0_20 = arith.constant 0 : index
      %49 = vector.load %arg7[%c0_18, %c0_19, %c0_20] : memref<18x18x4xbf16, #tpu.memory_space<vmem>>, vector<18x18x4xbf16>
      tpu.vector_store %arg7[%c0_18, %c0_19, %c0_20], %48 {strides = array<i32>} : memref<18x18x4xbf16, #tpu.memory_space<vmem>>, vector<18x18x4xbf16>,
    } else {
    }
    %c8_i32 = arith.constant 8 : i32
    %3 = arith.muli %arg1, %c8_i32 : i32
    %4 = tpu.assume_multiple %3, 8 : i32
    %5 = arith.index_cast %4 : i32 to index
    %c0 = arith.constant 0 : index
    %c0_1 = arith.constant 0 : index
    %6 = vector.load %arg7[%5, %c0, %c0_1] : memref<18x18x4xbf16, #tpu.memory_space<vmem>>, vector<10x18x4xbf16>
    %7 = vector.extract_strided_slice %6 {offsets = [0, 0, 0], sizes = [8, 16, 4], strides = [1, 1, 1]} : vector<10x18x4xbf16> to vector<8x16x4xbf16>
    %8 = vector.shape_cast %7 : vector<8x16x4xbf16> to vector<128x4xbf16>
    %9 = vector.extract_strided_slice %6 {offsets = [0, 1, 0], sizes = [8, 16, 4], strides = [1, 1, 1]} : vector<10x18x4xbf16> to vector<8x16x4xbf16>
    %10 = vector.shape_cast %9 : vector<8x16x4xbf16> to vector<128x4xbf16>
    %11 = vector.extract_strided_slice %6 {offsets = [0, 2, 0], sizes = [8, 16, 4], strides = [1, 1, 1]} : vector<10x18x4xbf16> to vector<8x16x4xbf16>
    %12 = vector.shape_cast %11 : vector<8x16x4xbf16> to vector<128x4xbf16>
    %13 = vector.extract_strided_slice %6 {offsets = [1, 0, 0], sizes = [8, 16, 4], strides = [1, 1, 1]} : vector<10x18x4xbf16> to vector<8x16x4xbf16>
    %14 = vector.shape_cast %13 : vector<8x16x4xbf16> to vector<128x4xbf16>
    %15 = vector.extract_strided_slice %6 {offsets = [1, 1, 0], sizes = [8, 16, 4], strides = [1, 1, 1]} : vector<10x18x4xbf16> to vector<8x16x4xbf16>
    %16 = vector.shape_cast %15 : vector<8x16x4xbf16> to vector<128x4xbf16>
    %17 = vector.extract_strided_slice %6 {offsets = [1, 2, 0], sizes = [8, 16, 4], strides = [1, 1, 1]} : vector<10x18x4xbf16> to vector<8x16x4xbf16>
    %18 = vector.shape_cast %17 : vector<8x16x4xbf16> to vector<128x4xbf16>
    %19 = vector.extract_strided_slice %6 {offsets = [2, 0, 0], sizes = [8, 16, 4], strides = [1, 1, 1]} : vector<10x18x4xbf16> to vector<8x16x4xbf16>
    %20 = vector.shape_cast %19 : vector<8x16x4xbf16> to vector<128x4xbf16>
    %21 = vector.extract_strided_slice %6 {offsets = [2, 1, 0], sizes = [8, 16, 4], strides = [1, 1, 1]} : vector<10x18x4xbf16> to vector<8x16x4xbf16>
    %22 = vector.shape_cast %21 : vector<8x16x4xbf16> to vector<128x4xbf16>
    %23 = vector.extract_strided_slice %6 {offsets = [2, 2, 0], sizes = [8, 16, 4], strides = [1, 1, 1]} : vector<10x18x4xbf16> to vector<8x16x4xbf16>
    %24 = vector.shape_cast %23 : vector<8x16x4xbf16> to vector<128x4xbf16>
    %25 = tpu.concatenate %8, %10, %12, %14, %16, %18, %20, %22, %24 in 1 : vector<128x4xbf16>, vector<128x4xbf16>, vector<128x4xbf16>, vector<128x4xbf16>, vector<128x4xbf16>, vector<128x4xbf16>, vector<128x4xbf16>, vector<128x4xbf16>, vector<128x4xbf16> -> vector<128x36xbf16>
    %c0_2 = arith.constant 0 : index
    %c0_3 = arith.constant 0 : index
    %26 = vector.load %arg3[%c0_2, %c0_3] : memref<36x4xbf16, #tpu.memory_space<vmem>>, vector<36x4xbf16>
    %cst = arith.constant dense<0.000000e+00> : vector<128x4xf32>
    %27 = tpu.matmul %25, %26, %cst {dimension_numbers = #tpu.dot_dimension_numbers<[1], [0], [0], [1], [0, 0, 1, 1], [], []>} : vector<128x36xbf16>, vector<36x4xbf16>, vector<128x4xf32> -> vector<128x4xf32>
    %c0_4 = arith.constant 0 : index
    %c0_5 = arith.constant 0 : index
    %28 = vector.load %arg4[%c0_4, %c0_5] : memref<1x4xf32, #tpu.memory_space<vmem>>, vector<1x4xf32>
    %29 = vector.shape_cast %28 : vector<1x4xf32> to vector<4xf32>
    %30 = vector.shape_cast %29 : vector<4xf32> to vector<1x4xf32>
    %31 = vector.broadcast %30 : vector<1x4xf32> to vector<128x4xf32>
    %32 = arith.mulf %27, %31 : vector<128x4xf32>
    %c0_6 = arith.constant 0 : index
    %c0_7 = arith.constant 0 : index
    %33 = vector.load %arg5[%c0_6, %c0_7] : memref<1x4xf32, #tpu.memory_space<vmem>>, vector<1x4xf32>
    %34 = vector.shape_cast %33 : vector<1x4xf32> to vector<4xf32>
    %35 = vector.shape_cast %34 : vector<4xf32> to vector<1x4xf32>
    %36 = vector.broadcast %35 : vector<1x4xf32> to vector<128x4xf32>
    %37 = arith.addf %32, %36 : vector<128x4xf32>
    %cst_8 = arith.constant 0.000000e+00 : f32
    %38 = vector.broadcast %cst_8 : f32 to vector<128x4xf32>
    %39 = arith.maximumf %37, %38 : vector<128x4xf32>
    %c0_9 = arith.constant 0 : index
    %c0_10 = arith.constant 0 : index
    %c0_11 = arith.constant 0 : index
    %40 = vector.load %arg6[%c0_9, %c0_10, %c0_11] : memref<1x128x4xf32, #tpu.memory_space<vmem>>, vector<1x128x4xf32>
    %41 = vector.shape_cast %40 : vector<1x128x4xf32> to vector<128x4xf32>
    %42 = vector.shape_cast %39 : vector<128x4xf32> to vector<1x128x4xf32>
    tpu.vector_store %arg6[%c0_9, %c0_10, %c0_11], %42 {strides = array<i32>} : memref<1x128x4xf32, #tpu.memory_space<vmem>>, vector<1x128x4xf32>,
    return
  }
  func.func @transform_0(%arg0: i32, %arg1: i32) -> (i32, i32, i32, i32) {
    %c0_i32 = arith.constant 0 : i32
    %c0_i32_0 = arith.constant 0 : i32
    %c0_i32_1 = arith.constant 0 : i32
    %c0_i32_2 = arith.constant 0 : i32
    return %arg0, %c0_i32, %c0_i32_0, %c0_i32_1 : i32, i32, i32, i32
  }
  func.func @transform_1(%arg0: i32, %arg1: i32) -> (i32, i32) {
    %c0_i32 = arith.constant 0 : i32
    %c0_i32_0 = arith.constant 0 : i32
    %c0_i32_1 = arith.constant 0 : i32
    return %c0_i32, %c0_i32_0 : i32, i32
  }
  func.func @transform_2(%arg0: i32, %arg1: i32) -> (i32, i32) {
    %c0_i32 = arith.constant 0 : i32
    %c0_i32_0 = arith.constant 0 : i32
    %c0_i32_1 = arith.constant 0 : i32
    return %c0_i32, %c0_i32_0 : i32, i32
  }
  func.func @transform_3(%arg0: i32, %arg1: i32) -> (i32, i32) {
    %c0_i32 = arith.constant 0 : i32
    %c0_i32_0 = arith.constant 0 : i32
    %c0_i32_1 = arith.constant 0 : i32
    return %c0_i32, %c0_i32_0 : i32, i32
  }
  func.func @transform_4(%arg0: i32, %arg1: i32) -> (i32, i32, i32) {
    %c0_i32 = arith.constant 0 : i32
    %c0_i32_0 = arith.constant 0 : i32
    return %arg0, %arg1, %c0_i32 : i32, i32, i32
  }
}

</mosaic_0001>

<bundles_post_ra>
// kernel: detect_module_forward.4
= control target key start
LH: loop header
LB: loop body
LE: loop exit
PB: predicated region body
PF: predicated region fallthrough
CT: control target
= control target key end

     0   :  { %s2402_s18 = smov 0   ;;  %s2404_s19 = smov 0   ;;  %s3269_s0 = inlined_call_operand.vmem [shape: bf16[2,16,16,4], index: 0, kind: input, shape index: {}]   ;;  %s3270_s1 = inlined_call_operand.vmem [shape: bf16[36,8], index: 1, kind: input, shape index: {}]   ;;  %s3271_s2 = inlined_call_operand.vmem [shape: f32[1,8], index: 2, kind: input, shape index: {}]   ;;  %s3272_s3 = inlined_call_operand.vmem [shape: f32[1,8], index: 3, kind: input, shape index: {}]   ;;  %s3273_s4 = inlined_call_operand.vmem [shape: f32[2,256,4], index: 4, kind: output, shape index: {0}]   ;;  %s3274_s5 = inlined_call_operand.vmem [shape: bf16[2,256,4], index: 5, kind: output, shape index: {1}]  }
   0x1   :  { %s2406_s20 = smov 0   ;;  %s2408_s21 = smov 0  }
   0x2   :  { %s2410_s22 = smov 0  }
   0x3 LB: > { %s25_s23 = sadd.s32 1, %s2352_s20  ;;  %s28_s24 = sadd.s32 1, %s2356_s21  ;;  %s2360_s22 = sphi %s2410_s22, %s16_s22   ;;  %s2356_s21 = sphi %s2408_s21, %s3284_s21   ;;  %s2352_s20 = sphi %s2406_s20, %s3283_s20   ;;  %s2348_s19 = sphi %s2404_s19, %s3282_s19   ;;  %s2344_s18 = sphi %s2402_s18, %s3281_s18  }
   0x4   : > { %p26_p0 = scmp.ge.s32.totalorder %s25_s23, 2  ;;  %p2033_p1 = scmp.ge.s32.totalorder %s2360_s22, 1 }
   0x5   : > { %p206_p2 = scmp.lt.s32.totalorder %s2360_s22, 5 }
   0x6   : > { %s3286_s23 = smov (%p26_p0, %s25_s23), 0  ;;  %s3288_s24 = smov (!%p26_p0, %s28_s24), %s2356_s21 }
   0x7   : > { %p207_p3 = pnand %p2033_p1, %p206_p2  ;;  %p30_p4 = scmp.ge.s32.totalorder %s3288_s24, 2 }
   0x8   : > { %p247_p5 = scmp.lt.s32.totalorder (!%p207_p3), %s2348_s19, 1  ;;  %s2036_s25 = sshll.u32 (!%p207_p3), %s2344_s18, 4 }
   0x9   : > { %s3290_s24 = smov (%p30_p4, %s3288_s24), 0  ;;  %210 = sbr.rel (%p207_p3) target bundleno = 670 (0x29e), region = 36 }
   0xa   : > { %p255_p6 = scmp.lt.s32.totalorder (!%p207_p3), %s2036_s25, 31  ;;  %p2042_p7 = scmp.ne.s32.totalorder (!%p207_p3), %s2344_s18, 0 }
   0xe   : > { %s3292_s19 = smov (!%p247_p5, %s2348_s19), 1  ;;  %s3294_s25 = smov (!%p255_p6, %s2036_s25), 31 }
   0xf   : > { %s2184_s26 = sshll.u32 %s3292_s19, 7  ;;  %s2037_s27 = sshll.u32 %s3292_s19, 5 }
  0x10   : > { %s2438_s30 = scalar_lea.vmem %s3269_s0, %s2184_s26  ;;  %s258_s6 = sadd.s32 %s2037_s27, %s3294_s25 }
  0x11   : > { %s2038_s7 = sshll.u32 %s258_s6, 3  ;;  %s2041_s8 = sshll.u32 %s258_s6, 2 }
  0x12   : > { %s2443_s11 = scalar_lea.vmem %s3273_s4, %s2038_s7  ;;  %s2448_s14 = scalar_lea.vmem %s3274_s5, %s2041_s8 }
  0x13   : > { %276 = sbr.rel (%p2042_p7) target bundleno = 71 (0x47), region = 40 }
  0x18   : > { %vm542_vm0 = vcmask 1040384   ;;  %vm543_vm1 = vsmask.f32 256  ;;  %vm766_vm2 = vcmask 27648   ;;  %v2293_v0 = vld [vmem:[%s2438_s30] sm:$0xff]   ;;  %v2362_v1 = vmov 0  }
  0x19   : > { %v392_v2 = vrot.slane %v2362_v1, 7  ;;  %vm2452_vm3 = vmand %vm542_vm0, %vm543_vm1  ;;  %vm769_vm4 = vcmask 24576   ;;  %v397_v4 = vshrl.u32 %v2293_v0, 16  ;;  %v400_v5 = vshll.u32 %v2293_v0, 16  ;;  %v2294_v8 = vld [vmem:[%s2438_s30 + $0x8] sm:$0xff]   ;;  %v2295_v9 = vld [vmem:[%s2438_s30 + $0x10] sm:$0xff]  }
  0x1a   : > { %v2296_v14 = vld [vmem:[%s2438_s30 + $0x18] sm:$0xff]   ;;  %v404_v15 = vshrl.u32 %v2294_v8, 16  ;;  %v407_v16 = vshll.u32 %v2294_v8, 16  ;;  %v411_v17 = vshrl.u32 %v2295_v9, 16  ;;  %v414_v18 = vshll.u32 %v2295_v9, 16  ;;  %v2297_v23 = vld [vmem:[%s2438_s30 + $0x20] sm:$0xff]  }
  0x1b   : > { %v545_v6 = vsel %vm2452_vm3, 0, %v392_v2  ;;  %v562_v7 = vsel %vm2452_vm3, %v392_v2, 0  ;;  %v399_v13 = vrot.slane %v397_v4, 7  ;;  %v418_v21 = vshrl.u32 %v2296_v14, 16  ;;  %v2298_v39 = vld [vmem:[%s2438_s30 + $0x28] sm:$0xff]   ;;  %v2299_v44 = vld [vmem:[%s2438_s30 + $0x30] sm:$0xff]  }
  0x1c   : > { %v2059_v10 = vcombine.low %v545_v6, %v545_v6  ;;  %v2060_v11 = vcombine.high %v545_v6, %v545_v6  ;;  %v2061_v12 = vcombine.low %v562_v7, %v562_v7  ;;  %v421_v22 = vshll.u32 %v2296_v14, 16  ;;  %v2300_v49 = vld [vmem:[%s2438_s30 + $0x38] sm:$0xff]   ;;  %v2301_v50 = vld [vmem:[%s2438_s30 + $0x40] sm:$0xff]  }
  0x1d   : > { %v402_v19 = vor.u32 %v400_v5, %v399_v13  ;;  %v563_v20 = vsel %vm2452_vm3, %v399_v13, 0  ;;  %v406_v25 = vrot.slane %v404_v15, 7  ;;  %v413_v26 = vrot.slane %v411_v17, 7 }
  0x1e   : > { %767 = vst.msk [vmem:[#allocation2] sm:$0xf] %vm766_vm2, %v2059_v10  ;;  %819 = vst.msk [vmem:[#allocation2 + $0xcc] sm:$0xf] %vm766_vm2, %v2059_v10  ;;  %v2064_v24 = vcombine.low %v563_v20, %v563_v20  ;;  %v420_v28 = vrot.slane %v418_v21, 7  ;;  %v425_v29 = vshrl.u32 %v2297_v23, 16 }
  0x1f   : > { %768 = vst.msk [vmem:[#allocation2 + $0x4] sm:$0xf] %vm766_vm2, %v2060_v11  ;;  %820 = vst.msk [vmem:[#allocation2 + $0xd0] sm:$0xf] %vm766_vm2, %v2060_v11  ;;  %v546_v27 = vsel %vm2452_vm3, 0, %v402_v19  ;;  %v428_v30 = vshll.u32 %v2297_v23, 16  ;;  %v409_v33 = vor.u32 %v407_v16, %v406_v25  ;;  %v416_v36 = vor.u32 %v414_v18, %v413_v26 }
  0x20   : > { %770 = vst.msk [vmem:[#allocation2 + $0x8] sm:$0x1] %vm769_vm4, %v2061_v12  ;;  %821 = vst.msk [vmem:[#allocation2 + $0xd4] sm:$0x1] %vm769_vm4, %v2061_v12  ;;  %v2062_v31 = vcombine.low %v546_v27, %v546_v27  ;;  %v2063_v32 = vcombine.high %v546_v27, %v546_v27  ;;  %v564_v34 = vsel %vm2452_vm3, %v406_v25, 0  ;;  %v565_v37 = vsel %vm2452_vm3, %v413_v26, 0 }
  0x21   : > { %773 = vst.msk [vmem:[#allocation2 + $0x14] sm:$0x1] %vm769_vm4, %v2064_v24  ;;  %v2067_v35 = vcombine.low %v564_v34, %v564_v34  ;;  %v423_v38 = vor.u32 %v421_v22, %v420_v28  ;;  %v547_v40 = vsel %vm2452_vm3, 0, %v409_v33  ;;  %v2070_v41 = vcombine.low %v565_v37, %v565_v37  ;;  %v2302_v12 = vld [vmem:[%s2438_s30 + $0x48] sm:$0xff]   ;;  %v2303_v21 = vld [vmem:[%s2438_s30 + $0x50] sm:$0xff]  }
  0x22   : > { %771 = vst.msk [vmem:[#allocation2 + $0xc] sm:$0xf] %vm766_vm2, %v2062_v31  ;;  %772 = vst.msk [vmem:[#allocation2 + $0x10] sm:$0xf] %vm766_vm2, %v2063_v32  ;;  %v566_v42 = vsel %vm2452_vm3, %v420_v28, 0  ;;  %v427_v43 = vrot.slane %v425_v29, 7  ;;  %v2065_v45 = vcombine.low %v547_v40, %v547_v40  ;;  %v2066_v46 = vcombine.high %v547_v40, %v547_v40 }
  0x23   : > { %776 = vst.msk [vmem:[#allocation2 + $0x20] sm:$0x1] %vm769_vm4, %v2067_v35  ;;  %v548_v47 = vsel %vm2452_vm3, 0, %v416_v36  ;;  %v549_v48 = vsel %vm2452_vm3, 0, %v423_v38  ;;  %779 = vst.msk [vmem:[#allocation2 + $0x2c] sm:$0x1] %vm769_vm4, %v2070_v41  ;;  %v2073_v55 = vcombine.low %v566_v42, %v566_v42 }
  0x24   : > { %v2068_v51 = vcombine.low %v548_v47, %v548_v47  ;;  %v2069_v52 = vcombine.high %v548_v47, %v548_v47  ;;  %v2071_v53 = vcombine.low %v549_v48, %v549_v48  ;;  %v2072_v54 = vcombine.high %v549_v48, %v549_v48  ;;  %774 = vst.msk [vmem:[#allocation2 + $0x18] sm:$0xf] %vm766_vm2, %v2065_v45  ;;  %v2305_v31 = vld [vmem:[%s2438_s30 + $0x60] sm:$0xff]   ;;  %v2306_v36 = vld [vmem:[%s2438_s30 + $0x68] sm:$0xff]  }
  0x25   : > { %775 = vst.msk [vmem:[#allocation2 + $0x1c] sm:$0xf] %vm766_vm2, %v2066_v46  ;;  %v430_v56 = vor.u32 %v428_v30, %v427_v43  ;;  %v567_v57 = vsel %vm2452_vm3, %v427_v43, 0  ;;  %v432_v58 = vshrl.u32 %v2298_v39, 16  ;;  %v435_v60 = vshll.u32 %v2298_v39, 16  ;;  %v2304_v30 = vld [vmem:[%s2438_s30 + $0x58] sm:$0xff]  }
  0x26   : > { %777 = vst.msk [vmem:[#allocation2 + $0x24] sm:$0xf] %vm766_vm2, %v2068_v51  ;;  %778 = vst.msk [vmem:[#allocation2 + $0x28] sm:$0xf] %vm766_vm2, %v2069_v52  ;;  %v2076_v59 = vcombine.low %v567_v57, %v567_v57  ;;  %v439_v61 = vshrl.u32 %v2299_v44, 16  ;;  %v442_v62 = vshll.u32 %v2299_v44, 16 }
  0x27   : > { %780 = vst.msk [vmem:[#allocation2 + $0x30] sm:$0xf] %vm766_vm2, %v2071_v53  ;;  %781 = vst.msk [vmem:[#allocation2 + $0x34] sm:$0xf] %vm766_vm2, %v2072_v54  ;;  %v550_v63 = vsel %vm2452_vm3, 0, %v430_v56  ;;  %v434_v0 = vrot.slane %v432_v58, 7 }
  0x28   : > { %782 = vst.msk [vmem:[#allocation2 + $0x38] sm:$0x1] %vm769_vm4, %v2073_v55  ;;  %v446_v1 = vshrl.u32 %v2300_v49, 16  ;;  %v449_v2 = vshll.u32 %v2300_v49, 16  ;;  %v2074_v4 = vcombine.low %v550_v63, %v550_v63  ;;  %v2075_v5 = vcombine.high %v550_v63, %v550_v63  ;;  %785 = vst.msk [vmem:[#allocation2 + $0x44] sm:$0x1] %vm769_vm4, %v2076_v59 }
  0x29   : > { %v441_v6 = vrot.slane %v439_v61, 7  ;;  %v453_v7 = vshrl.u32 %v2301_v50, 16  ;;  %v437_v8 = vor.u32 %v435_v60, %v434_v0  ;;  %v568_v9 = vsel %vm2452_vm3, %v434_v0, 0 }
  0x2a   : > { %v448_v10 = vrot.slane %v446_v1, 7  ;;  %v456_v11 = vshll.u32 %v2301_v50, 16  ;;  %783 = vst.msk [vmem:[#allocation2 + $0x3c] sm:$0xf] %vm766_vm2, %v2074_v4  ;;  %784 = vst.msk [vmem:[#allocation2 + $0x40] sm:$0xf] %vm766_vm2, %v2075_v5  ;;  %v2079_v13 = vcombine.low %v568_v9, %v568_v9 }
  0x2b   : > { %v444_v14 = vor.u32 %v442_v62, %v441_v6  ;;  %v569_v15 = vsel %vm2452_vm3, %v441_v6, 0  ;;  %v455_v16 = vrot.slane %v453_v7, 7  ;;  %v551_v17 = vsel %vm2452_vm3, 0, %v437_v8  ;;  %v2307_v6 = vld [vmem:[%s2438_s30 + $0x70] sm:$0xff]   ;;  %v2308_v7 = vld [vmem:[%s2438_s30 + $0x78] sm:$0xff]  }
  0x2c   : > { %v2082_v18 = vcombine.low %v569_v15, %v569_v15  ;;  %v451_v19 = vor.u32 %v449_v2, %v448_v10  ;;  %v570_v20 = vsel %vm2452_vm3, %v448_v10, 0  ;;  %v2077_v22 = vcombine.low %v551_v17, %v551_v17  ;;  %788 = vst.msk [vmem:[#allocation2 + $0x50] sm:$0x1] %vm769_vm4, %v2079_v13 }
  0x2d   : > { %v2078_v23 = vcombine.high %v551_v17, %v551_v17  ;;  %v552_v24 = vsel %vm2452_vm3, 0, %v444_v14  ;;  %v2085_v25 = vcombine.low %v570_v20, %v570_v20  ;;  %v458_v29 = vor.u32 %v456_v11, %v455_v16 }
  0x2e   : > { %v2080_v26 = vcombine.low %v552_v24, %v552_v24  ;;  %v2081_v27 = vcombine.high %v552_v24, %v552_v24  ;;  %791 = vst.msk [vmem:[#allocation2 + $0x5c] sm:$0x1] %vm769_vm4, %v2082_v18  ;;  %v553_v28 = vsel %vm2452_vm3, 0, %v451_v19  ;;  %v571_v34 = vsel %vm2452_vm3, %v455_v16, 0 }
  0x2f   : > { %786 = vst.msk [vmem:[#allocation2 + $0x48] sm:$0xf] %vm766_vm2, %v2077_v22  ;;  %787 = vst.msk [vmem:[#allocation2 + $0x4c] sm:$0xf] %vm766_vm2, %v2078_v23  ;;  %v2083_v32 = vcombine.low %v553_v28, %v553_v28  ;;  %v2084_v33 = vcombine.high %v553_v28, %v553_v28  ;;  %v460_v35 = vshrl.u32 %v2302_v12, 16  ;;  %v554_v37 = vsel %vm2452_vm3, 0, %v458_v29 }
  0x30   : > { %794 = vst.msk [vmem:[#allocation2 + $0x68] sm:$0x1] %vm769_vm4, %v2085_v25  ;;  %v2088_v38 = vcombine.low %v571_v34, %v571_v34  ;;  %v463_v39 = vshll.u32 %v2302_v12, 16  ;;  %v467_v40 = vshrl.u32 %v2303_v21, 16  ;;  %v2086_v41 = vcombine.low %v554_v37, %v554_v37 }
  0x31   : > { %789 = vst.msk [vmem:[#allocation2 + $0x54] sm:$0xf] %vm766_vm2, %v2080_v26  ;;  %790 = vst.msk [vmem:[#allocation2 + $0x58] sm:$0xf] %vm766_vm2, %v2081_v27  ;;  %v2087_v42 = vcombine.high %v554_v37, %v554_v37  ;;  %v462_v43 = vrot.slane %v460_v35, 7  ;;  %v470_v44 = vshll.u32 %v2303_v21, 16 }
  0x32   : > { %792 = vst.msk [vmem:[#allocation2 + $0x60] sm:$0xf] %vm766_vm2, %v2083_v32  ;;  %793 = vst.msk [vmem:[#allocation2 + $0x64] sm:$0xf] %vm766_vm2, %v2084_v33  ;;  %v469_v45 = vrot.slane %v467_v40, 7  ;;  %v474_v46 = vshrl.u32 %v2304_v30, 16 }
  0x33   : > { %797 = vst.msk [vmem:[#allocation2 + $0x74] sm:$0x1] %vm769_vm4, %v2088_v38  ;;  %v477_v47 = vshll.u32 %v2304_v30, 16  ;;  %v481_v48 = vshrl.u32 %v2305_v31, 16  ;;  %v465_v49 = vor.u32 %v463_v39, %v462_v43  ;;  %v572_v50 = vsel %vm2452_vm3, %v462_v43, 0 }
  0x34   : > { %795 = vst.msk [vmem:[#allocation2 + $0x6c] sm:$0xf] %vm766_vm2, %v2086_v41  ;;  %796 = vst.msk [vmem:[#allocation2 + $0x70] sm:$0xf] %vm766_vm2, %v2087_v42  ;;  %v484_v51 = vshll.u32 %v2305_v31, 16  ;;  %v488_v52 = vshrl.u32 %v2306_v36, 16  ;;  %v2091_v53 = vcombine.low %v572_v50, %v572_v50  ;;  %v472_v54 = vor.u32 %v470_v44, %v469_v45 }
  0x35   : > { %v573_v55 = vsel %vm2452_vm3, %v469_v45, 0  ;;  %v476_v56 = vrot.slane %v474_v46, 7  ;;  %v555_v57 = vsel %vm2452_vm3, 0, %v465_v49  ;;  %v483_v59 = vrot.slane %v481_v48, 7 }
  0x36   : > { %v2094_v58 = vcombine.low %v573_v55, %v573_v55  ;;  %v490_v60 = vrot.slane %v488_v52, 7  ;;  %v2089_v61 = vcombine.low %v555_v57, %v555_v57  ;;  %v2090_v62 = vcombine.high %v555_v57, %v555_v57  ;;  %800 = vst.msk [vmem:[#allocation2 + $0x80] sm:$0x1] %vm769_vm4, %v2091_v53 }
  0x37   : > { %v556_v63 = vsel %vm2452_vm3, 0, %v472_v54  ;;  %v479_v0 = vor.u32 %v477_v47, %v476_v56  ;;  %v574_v4 = vsel %vm2452_vm3, %v476_v56, 0  ;;  %v486_v5 = vor.u32 %v484_v51, %v483_v59 }
  0x38   : > { %v2092_v1 = vcombine.low %v556_v63, %v556_v63  ;;  %v2093_v2 = vcombine.high %v556_v63, %v556_v63  ;;  %803 = vst.msk [vmem:[#allocation2 + $0x8c] sm:$0x1] %vm769_vm4, %v2094_v58  ;;  %v2097_v9 = vcombine.low %v574_v4, %v574_v4  ;;  %v575_v10 = vsel %vm2452_vm3, %v483_v59, 0 }
  0x39   : > { %798 = vst.msk [vmem:[#allocation2 + $0x78] sm:$0xf] %vm766_vm2, %v2089_v61  ;;  %799 = vst.msk [vmem:[#allocation2 + $0x7c] sm:$0xf] %vm766_vm2, %v2090_v62  ;;  %v557_v8 = vsel %vm2452_vm3, 0, %v479_v0  ;;  %v491_v11 = vshll.u32 %v2306_v36, 16  ;;  %v2100_v15 = vcombine.low %v575_v10, %v575_v10 }
  0x3a   : > { %801 = vst.msk [vmem:[#allocation2 + $0x84] sm:$0xf] %vm766_vm2, %v2092_v1  ;;  %802 = vst.msk [vmem:[#allocation2 + $0x88] sm:$0xf] %vm766_vm2, %v2093_v2  ;;  %v2095_v12 = vcombine.low %v557_v8, %v557_v8  ;;  %v2096_v13 = vcombine.high %v557_v8, %v557_v8  ;;  %v558_v14 = vsel %vm2452_vm3, 0, %v486_v5  ;;  %v576_v19 = vsel %vm2452_vm3, %v490_v60, 0 }
  0x3b   : > { %806 = vst.msk [vmem:[#allocation2 + $0x98] sm:$0x1] %vm769_vm4, %v2097_v9  ;;  %v2098_v16 = vcombine.low %v558_v14, %v558_v14  ;;  %v2099_v17 = vcombine.high %v558_v14, %v558_v14  ;;  %v493_v18 = vor.u32 %v491_v11, %v490_v60  ;;  %809 = vst.msk [vmem:[#allocation2 + $0xa4] sm:$0x1] %vm769_vm4, %v2100_v15  ;;  %v495_v21 = vshrl.u32 %v2307_v6, 16 }
  0x3c   : > { %804 = vst.msk [vmem:[#allocation2 + $0x90] sm:$0xf] %vm766_vm2, %v2095_v12  ;;  %805 = vst.msk [vmem:[#allocation2 + $0x94] sm:$0xf] %vm766_vm2, %v2096_v13  ;;  %v2103_v20 = vcombine.low %v576_v19, %v576_v19  ;;  %v498_v22 = vshll.u32 %v2307_v6, 16  ;;  %v502_v23 = vshrl.u32 %v2308_v7, 16 }
  0x3d   : > { %807 = vst.msk [vmem:[#allocation2 + $0x9c] sm:$0xf] %vm766_vm2, %v2098_v16  ;;  %808 = vst.msk [vmem:[#allocation2 + $0xa0] sm:$0xf] %vm766_vm2, %v2099_v17  ;;  %v559_v24 = vsel %vm2452_vm3, 0, %v493_v18  ;;  %v505_v25 = vshll.u32 %v2308_v7, 16 }
  0x3e   : > { %v2101_v26 = vcombine.low %v559_v24, %v559_v24  ;;  %v2102_v27 = vcombine.high %v559_v24, %v559_v24  ;;  %812 = vst.msk [vmem:[#allocation2 + $0xb0] sm:$0x1] %vm769_vm4, %v2103_v20  ;;  %v497_v28 = vrot.slane %v495_v21, 7  ;;  %v504_v29 = vrot.slane %v502_v23, 7 }
  0x40   : > { %810 = vst.msk [vmem:[#allocation2 + $0xa8] sm:$0xf] %vm766_vm2, %v2101_v26  ;;  %811 = vst.msk [vmem:[#allocation2 + $0xac] sm:$0xf] %vm766_vm2, %v2102_v27  ;;  %v500_v30 = vor.u32 %v498_v22, %v497_v28  ;;  %v577_v31 = vsel %vm2452_vm3, %v497_v28, 0  ;;  %v507_v32 = vor.u32 %v505_v25, %v504_v29  ;;  %v578_v33 = vsel %vm2452_vm3, %v504_v29, 0 }
  0x41   : > { %v2106_v34 = vcombine.low %v577_v31, %v577_v31  ;;  %v2109_v35 = vcombine.low %v578_v33, %v578_v33 }
  0x42   : > { %v560_v36 = vsel %vm2452_vm3, 0, %v500_v30  ;;  %v561_v37 = vsel %vm2452_vm3, 0, %v507_v32 }
  0x43   : > { %v2104_v38 = vcombine.low %v560_v36, %v560_v36  ;;  %v2105_v39 = vcombine.high %v560_v36, %v560_v36  ;;  %815 = vst.msk [vmem:[#allocation2 + $0xbc] sm:$0x1] %vm769_vm4, %v2106_v34  ;;  %v2107_v40 = vcombine.low %v561_v37, %v561_v37  ;;  %v2108_v41 = vcombine.high %v561_v37, %v561_v37 }
  0x44   : > { %818 = vst.msk [vmem:[#allocation2 + $0xc8] sm:$0x1] %vm769_vm4, %v2109_v35 }
  0x45   : > { %813 = vst.msk [vmem:[#allocation2 + $0xb4] sm:$0xf] %vm766_vm2, %v2104_v38  ;;  %814 = vst.msk [vmem:[#allocation2 + $0xb8] sm:$0xf] %vm766_vm2, %v2105_v39 }
  0x46   : > { %816 = vst.msk [vmem:[#allocation2 + $0xc0] sm:$0xf] %vm766_vm2, %v2107_v40  ;;  %817 = vst.msk [vmem:[#allocation2 + $0xc4] sm:$0xf] %vm766_vm2, %v2108_v41 }
  0x47 PF: > { %s2185_s15 = smul.u32 96, %s2344_s18  ;;  %vm1075_vm5 = vcmask 1042432   ;;  %vm1076_vm6 = vcmask 1046532   ;;  %vm856_vm8 = vsmask.f32 3328  ;;  %s2363_s17 = smov 8  }
  0x48   : > { %vm2594_vm7 = vmor %vm1075_vm5, %vm1076_vm6  ;;  %vm857_vm9 = vsmask.f32 7440  ;;  %s2364_s18 = smov 4   ;;  %s2365_s19 = smov 12   ;;  %vm1601_vm11 = vcmask 1041408   ;;  %vm1420_vm12 = vcmask 31744  }
  0x49   : > { %s2598_s16 = scalar_lea.vmem [#allocation2], %s2185_s15  ;;  %vm2686_vm10 = vmor %vm856_vm8, %vm857_vm9  ;;  %s2366_s25 = smov 16   ;;  %vm1462_vm13 = vcmask 97280   ;;  %vm1445_vm14 = vcmask 64512   ;;  %vm1479_vm15 = vcmask 130048   ;;  %vm1496_vm0 = vcmask 162816  }
  0x4a   : > { %s2367_s26 = smov 20   ;;  %s2368_s27 = smov 24   ;;  %vm1513_vm1 = vcmask 195584   ;;  %vm1530_vm2 = vcmask 228352   ;;  %vm1547_vm3 = vcmask 261120   ;;  %vm1584_vm4 = vcmask 293888  }
  0x4b   : > { %s2369_s30 = smov 28   ;;  %s2370_s10 = smov 32   ;;  %vm1876_vm5 = vcmask 27648  }
  0x4d   : > { %v2601_v42 = vld [vmem:[%s2598_s16 + $0x30] sm:$0xf]  ;;  %v2604_v43 = vld [vmem:[%s2598_s16 + $0x34] sm:$0xf]  ;;  %v2607_v44 = vld [vmem:[%s2598_s16 + $0x38] sm:$0x1] }
  0x4e   : > { %v2117_v45 = vrot.slane %v2601_v42, 9  ;;  %v1108_v46 = vrot.slane %v2604_v43, 5  ;;  %v1111_v47 = vrot.slane %v2607_v44, 5  ;;  %v2613_v48 = vld [vmem:[%s2598_s16] sm:$0xf]  ;;  %v956_v49 = vshrl.u32 %v2601_v42, 16 }
  0x4f   : > { %v2617_v50 = vld [vmem:[%s2598_s16 + $0x4] sm:$0xf]  ;;  %v828_v51 = vld [vmem:[%s2598_s16 + $0x8] sm:$0x1]  ;;  %v2113_v52 = vrot.slane %v2613_v48, 9  ;;  %v860_v53 = vshrl.u32 %v2613_v48, 16  ;;  %v2624_v54 = vcombine.low %v2601_v42, %v2604_v43 }
  0x50   : > { %v1109_v55 = vsel %vm2594_vm7, %v2117_v45, %v1108_v46  ;;  %v1110_v56 = vrot.slane %v1108_v46, 4  ;;  %v879_v57 = vshll.u32 %v828_v51, 16  ;;  %v1080_v58 = vrot.slane %v2617_v50, 5  ;;  %v2630_v59 = vld [vmem:[%s2598_s16 + $0x3c] sm:$0xf] }
  0x51   : > { %v1083_v60 = vrot.slane %v828_v51, 5  ;;  %v2633_v61 = vld [vmem:[%s2598_s16 + $0x40] sm:$0xf]  ;;  %v2636_v62 = vld [vmem:[%s2598_s16 + $0x44] sm:$0x1]  ;;  %v2118_v63 = vrot.slane %v2630_v59, 9 }
  0x52   : > { %v1112_v0 = vsel %vm2594_vm7, %v1110_v56, %v1111_v47  ;;  %v1081_v1 = vsel %vm2594_vm7, %v2113_v52, %v1080_v58  ;;  %v1082_v2 = vrot.slane %v1080_v58, 4  ;;  %v1115_v4 = vrot.slane %v2633_v61, 5  ;;  %v2645_v5 = vld [vmem:[%s2598_s16 + $0xc] sm:$0xf]  ;;  %v2648_v6 = vld [vmem:[%s2598_s16 + $0x10] sm:$0xf] }
  0x53   : > { %v2650_v7 = vcombine.low %v1109_v55, %v1112_v0  ;;  %v1118_v8 = vrot.slane %v2636_v62, 5  ;;  %v831_v9 = vld [vmem:[%s2598_s16 + $0x14] sm:$0x1]  ;;  %v2114_v10 = vrot.slane %v2645_v5, 9  ;;  %v1087_v11 = vrot.slane %v2648_v6, 5 }
  0x54   : > { %v1084_v12 = vsel %vm2594_vm7, %v1082_v2, %v1083_v60  ;;  %v1116_v13 = vsel %vm2594_vm7, %v2118_v63, %v1115_v4  ;;  %v1117_v14 = vrot.slane %v1115_v4, 4  ;;  %v1090_v15 = vrot.slane %v831_v9, 5 }
  0x55   : > { %1298 = vrot.lane.b32.xlu1 %v2650_v7, %s2363_s17  ;;  %v2139_v16 = vcombine.low %v1081_v1, %v1084_v12  ;;  %v1088_v17 = vsel %vm2594_vm7, %v2114_v10, %v1087_v11  ;;  %v1089_v18 = vrot.slane %v1087_v11, 4  ;;  %v884_v19 = vshrl.u32 %v2645_v5, 16 }
  0x56   : > { %v1119_v20 = vsel %vm2594_vm7, %v1117_v14, %v1118_v8  ;;  %v887_v21 = vshll.u32 %v2645_v5, 16  ;;  %v893_v22 = vshll.u32 %v2648_v6, 16  ;;  %v897_v23 = vshrl.u32 %v2648_v6, 16 }
  0x57   : > { %1290 = vrot.lane.b32.xlu0 %v2139_v16, %s2363_s17  ;;  %v2671_v24 = vcombine.low %v1116_v13, %v1119_v20  ;;  %v1091_v25 = vsel %vm2594_vm7, %v1089_v18, %v1090_v15  ;;  %v886_v26 = vrot.slane %v884_v19, 4  ;;  %v903_v27 = vshll.u32 %v831_v9, 16  ;;  %v2713_v20 = vld [vmem:[%s2598_s16 + $0x48] sm:$0xf] }
  0x58   : > { %v2675_v28 = vcombine.low %v1088_v17, %v1091_v25  ;;  %v889_v29 = vrot.slane %v887_v21, 5  ;;  %v895_v30 = vrot.slane %v893_v22, 5  ;;  %v899_v31 = vrot.slane %v897_v23, 4 }
  0x59   : > { %1300 = vrot.lane.b32.xlu1 %v2671_v24, %s2363_s17  ;;  %v905_v32 = vrot.slane %v903_v27, 5  ;;  %v862_v33 = vrot.slane %v860_v53, 4  ;;  %v863_v34 = vshll.u32 %v2613_v48, 16  ;;  %v869_v35 = vshll.u32 %v2617_v50, 16 }
  0x5a   : > { %v890_v36 = vor.u32 %v889_v29, %v886_v26  ;;  %v900_v37 = vor.u32 %v899_v31, %v895_v30  ;;  %v873_v38 = vshrl.u32 %v2617_v50, 16  ;;  %v881_v39 = vrot.slane %v879_v57, 5  ;;  %v2722_v31 = vld [vmem:[%s2598_s16 + $0x18] sm:$0xf] }
  0x5b   : > { %1292 = vrot.lane.b32.xlu0 %v2675_v28, %s2363_s17  ;;  %v865_v41 = vrot.slane %v863_v34, 5  ;;  %v871_v45 = vrot.slane %v869_v35, 5  ;;  %v980_v46 = vshrl.u32 %v2630_v59, 16  ;;  %v983_v47 = vshll.u32 %v2630_v59, 16  ;;  %v2730_v34 = vld [vmem:[%s2598_s16 + $0x1c] sm:$0xf] }
  0x5c   : > { %v891_v51 = vrot.slane %v890_v36, 4  ;;  %v901_v52 = vrot.slane %v900_v37, 4  ;;  %v875_v53 = vrot.slane %v873_v38, 4  ;;  %v989_v55 = vshll.u32 %v2633_v61, 16 }
  0x5d   : > { %v866_v56 = vor.u32 %v865_v41, %v862_v33  ;;  %v982_v57 = vrot.slane %v980_v46, 4  ;;  %v985_v58 = vrot.slane %v983_v47, 5  ;;  %v993_v60 = vshrl.u32 %v2633_v61, 16  ;;  %v2742_v46 = vld [vmem:[%s2598_s16 + $0x50] sm:$0x1] }
  0x5e   : > { %v896_v63 = vsel %vm2686_vm10, %v891_v51, %v895_v30  ;;  %v906_v0 = vsel %vm2686_vm10, %v901_v52, %v905_v32  ;;  %v876_v1 = vor.u32 %v875_v53, %v871_v45  ;;  %v991_v2 = vrot.slane %v989_v55, 5  ;;  %v2719_v30 = vld [vmem:[%s2598_s16 + $0x4c] sm:$0xf] }
  0x5f   : > { %v2698_v4 = vcombine.low %v896_v63, %v906_v0  ;;  %v867_v8 = vrot.slane %v866_v56, 4  ;;  %v986_v9 = vor.u32 %v985_v58, %v982_v57  ;;  %v995_v10 = vrot.slane %v993_v60, 4  ;;  %v2755_v57 = vld [vmem:[%s2598_s16 + $0x20] sm:$0x1] }
  0x60   : > { %v877_v11 = vrot.slane %v876_v1, 4  ;;  %v999_v12 = vshll.u32 %v2636_v62, 16  ;;  %v958_v13 = vrot.slane %v956_v49, 4  ;;  %v959_v14 = vshll.u32 %v2601_v42, 16 }
  0x61   : > { %1252 = vrot.lane.b32.xlu1 %v2698_v4, %s2364_s18  ;;  %v872_v15 = vsel %vm2686_vm10, %v867_v8, %v871_v45  ;;  %v987_v16 = vrot.slane %v986_v9, 4  ;;  %v996_v17 = vor.u32 %v995_v10, %v991_v2  ;;  %v965_v18 = vshll.u32 %v2604_v43, 16 }
  0x62   : > { %v882_v62 = vsel %vm2686_vm10, %v877_v11, %v881_v39  ;;  %v1001_v19 = vrot.slane %v999_v12, 5  ;;  %v961_v49 = vrot.slane %v959_v14, 5  ;;  %v969_v42 = vshrl.u32 %v2604_v43, 16 }
  0x63   : > { %v2131_v21 = vcombine.low %v872_v15, %v882_v62  ;;  %v992_v22 = vsel %vm2686_vm10, %v987_v16, %v991_v2  ;;  %v997_v23 = vrot.slane %v996_v17, 4  ;;  %v967_v25 = vrot.slane %v965_v18, 5  ;;  %v2773_v62 = vld [vmem:[%s2598_s16 + $0x54] sm:$0xf] }
  0x64   : > { %v962_v26 = vor.u32 %v961_v49, %v958_v13  ;;  %v971_v27 = vrot.slane %v969_v42, 4  ;;  %v975_v29 = vshll.u32 %v2607_v44, 16  ;;  %v1004_v32 = vshrl.u32 %v2713_v20, 16 }
  0x65   : > { %1250 = vrot.lane.b32.xlu0 %v2131_v21, %s2364_s18  ;;  %v1002_v43 = vsel %vm2686_vm10, %v997_v23, %v1001_v19  ;;  %v1007_v33 = vshll.u32 %v2713_v20, 16  ;;  %v2736_v38 = vcombine.low %v2630_v59, %v2633_v61  ;;  %v1017_v39 = vshrl.u32 %v2719_v30, 16 }
  0x66   : > { %v2732_v35 = vcombine.low %v992_v22, %v1002_v43  ;;  %v963_v36 = vrot.slane %v962_v26, 4  ;;  %v972_v44 = vor.u32 %v971_v27, %v967_v25  ;;  %v977_v37 = vrot.slane %v975_v29, 5  ;;  %v2790_v26 = vld [vmem:[%s2598_s16 + $0x58] sm:$0xf]  ;;  %v2793_v27 = vld [vmem:[%s2598_s16 + $0x24] sm:$0xf] }
  0x67   : > { %v908_v41 = vshrl.u32 %v2722_v31, 16  ;;  %v911_v45 = vshll.u32 %v2722_v31, 16  ;;  %v2750_v52 = vcombine.low %v2645_v5, %v2648_v6  ;;  %v921_v59 = vshrl.u32 %v2730_v34, 16 }
  0x68   : > { %1260 = vrot.lane.b32.xlu1 %v2732_v35, %s2364_s18  ;;  %v968_v47 = vsel %vm2686_vm10, %v963_v36, %v967_v25  ;;  %v973_v51 = vrot.slane %v972_v44, 4  ;;  %v1006_v61 = vrot.slane %v1004_v32, 4  ;;  %v1009_v53 = vrot.slane %v1007_v33, 5  ;;  %v836_v44 = vld [vmem:[%s2598_s16 + $0x28] sm:$0xf] }
  0x69   : > { %v1013_v55 = vshll.u32 %v2719_v30, 16  ;;  %v1019_v56 = vrot.slane %v1017_v39, 4  ;;  %v1023_v60 = vshll.u32 %v2742_v46, 16  ;;  %v910_v63 = vrot.slane %v908_v41, 4 }
  0x6a   : > { %v978_v58 = vsel %vm2686_vm10, %v973_v51, %v977_v37  ;;  %v913_v0 = vrot.slane %v911_v45, 5  ;;  %v1010_v5 = vor.u32 %v1009_v53, %v1006_v61  ;;  %v917_v2 = vshll.u32 %v2730_v34, 16  ;;  %v2817_v53 = vld [vmem:[%s2598_s16 + $0x5c] sm:$0x1] }
  0x6b   : > { %v2760_v1 = vcombine.low %v968_v47, %v978_v58  ;;  %v1015_v6 = vrot.slane %v1013_v55, 5  ;;  %v2767_v8 = vcombine.low %v2713_v20, %v2719_v30  ;;  %v923_v10 = vrot.slane %v921_v59, 4 }
  0x6c   : > { %1317 = vrot.lane.b32.xlu1 %v2736_v38, %s2365_s19  ;;  %v914_v9 = vor.u32 %v913_v0, %v910_v63  ;;  %v927_v11 = vshll.u32 %v2755_v57, 16  ;;  %v1011_v12 = vrot.slane %v1010_v5, 4  ;;  %v1025_v14 = vrot.slane %v1023_v60, 5  ;;  %v837_v0 = vld [vmem:[%s2598_s16 + $0x2c] sm:$0x1] }
  0x6d   : > { %1258 = vrot.lane.b32.xlu0 %v2760_v1, %s2364_s18  ;;  %v1020_v13 = vor.u32 %v1019_v56, %v1015_v6  ;;  %v919_v15 = vrot.slane %v917_v2, 5  ;;  %v2779_v19 = vcombine.low %v2722_v31, %v2730_v34  ;;  %v1122_v42 = vrot.slane %v2719_v30, 5 }
  0x6e   : > { %v915_v17 = vrot.slane %v914_v9, 4  ;;  %v929_v49 = vrot.slane %v927_v11, 5  ;;  %v1016_v21 = vsel %vm2686_vm10, %v1011_v12, %v1015_v6  ;;  %v1094_v25 = vrot.slane %v2730_v34, 5 }
  0x6f   : > { %v1021_v16 = vrot.slane %v1020_v13, 4  ;;  %v924_v18 = vor.u32 %v923_v10, %v919_v15  ;;  %v2119_v29 = vrot.slane %v2713_v20, 9  ;;  %v1028_v30 = vshrl.u32 %v2773_v62, 16 }
  0x70   : > { %1319 = vrot.lane.b32.xlu1 %v2767_v8, %s2365_s19  ;;  %v920_v43 = vsel %vm2686_vm10, %v915_v17, %v919_v15  ;;  %v1125_v32 = vrot.slane %v2742_v46, 5  ;;  %v2115_v33 = vrot.slane %v2722_v31, 9  ;;  %v1031_v36 = vshll.u32 %v2773_v62, 16 }
  0x71   : > { %1309 = vrot.lane.b32.xlu0 %v2750_v52, %s2365_s19  ;;  %v1026_v22 = vsel %vm2686_vm10, %v1021_v16, %v1025_v14  ;;  %v925_v23 = vrot.slane %v924_v18, 4  ;;  %v1124_v20 = vrot.slane %v1122_v42, 4  ;;  %v1041_v37 = vshrl.u32 %v2790_v26, 16  ;;  %v2842_v16 = vld [vmem:[%s2598_s16 + $0x60] sm:$0xf] }
  0x72   : > { %v2805_v34 = vcombine.low %v1016_v21, %v1026_v22  ;;  %v932_v39 = vshrl.u32 %v2793_v27, 16  ;;  %v1096_v41 = vrot.slane %v1094_v25, 4  ;;  %v1097_v45 = vrot.slane %v2755_v57, 5 }
  0x73   : > { %v930_v31 = vsel %vm2686_vm10, %v925_v23, %v929_v49  ;;  %v935_v46 = vshll.u32 %v2793_v27, 16  ;;  %v945_v47 = vshrl.u32 %v836_v44, 16  ;;  %v1030_v51 = vrot.slane %v1028_v30, 4 }
  0x74   : > { %1336 = vrot.lane.b32.xlu1 %v2732_v35, %s2366_s25  ;;  %v1033_v59 = vrot.slane %v1031_v36, 5  ;;  %v1037_v61 = vshll.u32 %v2790_v26, 16  ;;  %v934_v55 = vrot.slane %v932_v39, 4  ;;  %v941_v58 = vshll.u32 %v836_v44, 16 }
  0x75   : > { %1311 = vrot.lane.b32.xlu0 %v2779_v19, %s2365_s19  ;;  %v937_v56 = vrot.slane %v935_v46, 5  ;;  %v1043_v57 = vrot.slane %v1041_v37, 4  ;;  %v2826_v5 = vcombine.low %v920_v43, %v930_v31  ;;  %v1123_v6 = vsel %vm2594_vm7, %v2119_v29, %v1122_v42 }
  0x76   : > { %v1034_v60 = vor.u32 %v1033_v59, %v1030_v51  ;;  %v2821_v63 = vrot.slane %v1037_v61, 5  ;;  %v1126_v2 = vsel %vm2594_vm7, %v1124_v20, %v1125_v32  ;;  %v1095_v9 = vsel %vm2594_vm7, %v2115_v33, %v1094_v25  ;;  %v2862_v25 = vld [vmem:[%s2598_s16 + $0x64] sm:$0xf]  ;;  %v852_v33 = vld [vmem:[%s2598_s16 + $0x68] sm:$0x1] }
  0x77   : > { %v1098_v10 = vsel %vm2594_vm7, %v1096_v41, %v1097_v45  ;;  %v1047_v11 = vshll.u32 %v2817_v53, 16  ;;  %v947_v12 = vrot.slane %v945_v47, 4  ;;  %v2839_v14 = vrot.slane %v941_v58, 5  ;;  %v2887_v59 = vld [vmem:[%s2598_s16 + $0x6c] sm:$0xf] }
  0x78   : > { %1338 = vrot.lane.b32.xlu1 %v2805_v34, %s2366_s25  ;;  %v2837_v13 = vrot.slane %v1034_v60, 4  ;;  %v951_v15 = vshll.u32 %v837_v0, 16  ;;  %v2846_v17 = vcombine.low %v1123_v6, %v1126_v2  ;;  %v1044_v18 = vor.u32 %v1043_v57, %v2821_v63  ;;  %v2894_v60 = vld [vmem:[%s2598_s16 + $0x70] sm:$0xf] }
  0x79   : > { %1328 = vrot.lane.b32.xlu0 %v2698_v4, %s2366_s25  ;;  %v938_v4 = vor.u32 %v937_v56, %v934_v55  ;;  %v2116_v49 = vrot.slane %v2793_v27, 9  ;;  %v2852_v42 = vcombine.low %v1095_v9, %v1098_v10  ;;  %v2856_v21 = vcombine.low %v2773_v62, %v2790_v26 }
  0x7a   : > { %v2859_v22 = vcombine.low %v2793_v27, %v836_v44  ;;  %v1101_v23 = vrot.slane %v836_v44, 5  ;;  %v2864_v29 = vrot.slane %v1047_v11, 5  ;;  %v1104_v30 = vrot.slane %v837_v0, 5 }
  0x7b   : > { %v1135_v43 = vshrl.u32 %v2842_v16, 16  ;;  %v1138_v32 = vshll.u32 %v2842_v16, 16  ;;  %v1040_v36 = vsel %vm2686_vm10, %v2837_v13, %v2821_v63  ;;  %v2873_v20 = vrot.slane %v938_v4, 4 }
  0x7c   : > { %1355 = vrot.lane.b32.xlu1 %v2671_v24, %s2367_s26  ;;  %v948_v27 = vor.u32 %v947_v12, %v2839_v14  ;;  %v2876_v44 = vrot.slane %v951_v15, 5  ;;  %v1045_v37 = vrot.slane %v1044_v18, 4  ;;  %v1102_v39 = vsel %vm2594_vm7, %v2116_v49, %v1101_v23  ;;  %v855_v49 = vld [vmem:[%s2598_s16 + $0x74] sm:$0x1] }
  0x7d   : > { %1330 = vrot.lane.b32.xlu0 %v2826_v5, %s2366_s25  ;;  %v1103_v31 = vrot.slane %v1101_v23, 4  ;;  %v1148_v41 = vshrl.u32 %v2862_v25, 16  ;;  %v1137_v45 = vrot.slane %v1135_v43, 4  ;;  %v1140_v46 = vrot.slane %v1138_v32, 5 }
  0x7e   : > { %v1144_v47 = vshll.u32 %v2862_v25, 16  ;;  %v1154_v51 = vshll.u32 %v852_v33, 16  ;;  %v2121_v56 = vrot.slane %v2842_v16, 9  ;;  %v1163_v58 = vrot.slane %v2862_v25, 5 }
  0x7f   : > { %v1105_v61 = vsel %vm2594_vm7, %v1103_v31, %v1104_v30  ;;  %v1150_v55 = vrot.slane %v1148_v41, 4  ;;  %v1166_v10 = vrot.slane %v852_v33, 5  ;;  %v1169_v11 = vshrl.u32 %v2887_v59, 16 }
  0x80   : > { %1357 = vrot.lane.b32.xlu1 %v2846_v17, %s2367_s26  ;;  %v2896_v57 = vcombine.low %v1102_v39, %v1105_v61  ;;  %v1146_v0 = vrot.slane %v1144_v47, 5  ;;  %v1156_v6 = vrot.slane %v1154_v51, 5  ;;  %v1164_v2 = vsel %vm2594_vm7, %v2121_v56, %v1163_v58 }
  0x81   : > { %1347 = vrot.lane.b32.xlu0 %v2675_v28, %s2367_s26  ;;  %v1141_v28 = vor.u32 %v1140_v46, %v1137_v45  ;;  %v1165_v9 = vrot.slane %v1163_v58, 4  ;;  %v1172_v15 = vshll.u32 %v2887_v59, 16  ;;  %v1182_v18 = vshrl.u32 %v2894_v60, 16 }
  0x82   : > { %v1151_v4 = vor.u32 %v1150_v55, %v1146_v0  ;;  %v949_v23 = vrot.slane %v948_v27, 4  ;;  %v1171_v43 = vrot.slane %v1169_v11, 4  ;;  %v1178_v32 = vshll.u32 %v2894_v60, 16 }
  0x83   : > { %v1142_v12 = vrot.slane %v1141_v28, 4  ;;  %v1167_v30 = vsel %vm2594_vm7, %v1165_v9, %v1166_v10  ;;  %v1174_v41 = vrot.slane %v1172_v15, 5  ;;  %v1050_v27 = vsel %vm2686_vm10, %v1045_v37, %v2864_v29  ;;  %v2319_v9 = vld [vmem:[%s3270_s1 + $0x10] ss:$0 sps:$4 sm:$0x33]  }
  0x84   : > { %1374 = vrot.lane.b32.xlu1 %v2767_v8, %s2368_s27  ;;  %v1152_v39 = vrot.slane %v1151_v4, 4  ;;  %v2913_v31 = vcombine.low %v1164_v2, %v1167_v30  ;;  %v1180_v45 = vrot.slane %v1178_v32, 5  ;;  %v1184_v46 = vrot.slane %v1182_v18, 4  ;;  %2241 = vmatprep.subr.msk.bf16.mxu0 %vm1601_vm11, %v2319_v9 }
  0x85   : > { %1349 = vrot.lane.b32.xlu0 %v2852_v42, %s2367_s26  ;;  %v1147_v33 = vsel %vm2686_vm10, %v1142_v12, %v1146_v0  ;;  %v1188_v47 = vshll.u32 %v855_v49, 16  ;;  %v1175_v61 = vor.u32 %v1174_v41, %v1171_v43  ;;  %v2123_v55 = vcombine.low %v2613_v48, %v2617_v50  ;;  %2242 = vmatprep.subr.msk.bf16.mxu1 %vm1601_vm11, %v2319_v9  ;;  %v2321_v43 = vld [vmem:[%s3270_s1] sm:$0xff]  }
  0x86   : > { %v1157_v51 = vsel %vm2686_vm10, %v1152_v39, %v1156_v6  ;;  %v2122_v56 = vrot.slane %v2887_v59, 9  ;;  %v1185_v28 = vor.u32 %v1184_v46, %v1180_v45  ;;  %v1197_v29 = vrot.slane %v2894_v60, 5 }
  0x87   : > { %v2927_v58 = vcombine.low %v1147_v33, %v1157_v51  ;;  %v1190_v0 = vrot.slane %v1188_v47, 5  ;;  %v1176_v37 = vrot.slane %v1175_v61, 4  ;;  %v1200_v2 = vrot.slane %v855_v49, 5 }
  0x88   : > { %1376 = vrot.lane.b32.xlu1 %v2856_v21, %s2368_s27  ;;  %v2138_v6 = vcombine.low %v1040_v36, %v1050_v27  ;;  %v1186_v10 = vrot.slane %v1185_v28, 4  ;;  %v2942_v11 = vsel %vm2594_vm7, %v2122_v56, %v1197_v29  ;;  %v1199_v12 = vrot.slane %v1197_v29, 4 }
  0x89   : > { %1366 = vrot.lane.b32.xlu0 %v2779_v19, %s2368_s27  ;;  %v944_v4 = vsel %vm2686_vm10, %v2873_v20, %v2839_v14  ;;  %v1129_v15 = vrot.slane %v2790_v26, 5  ;;  %v1181_v63 = vsel %vm2686_vm10, %v1176_v37, %v1180_v45  ;;  %v954_v13 = vsel %vm2686_vm10, %v949_v23, %v2876_v44  ;;  %v2320_v14 = vld [vmem:[%s3270_s1 + $0x8] sm:$0xff]  }
  0x8a   : > { %v1191_v36 = vsel %vm2686_vm10, %v1186_v10, %v1190_v0  ;;  %v2960_v18 = vsel %vm2594_vm7, %v1199_v12, %v1200_v2  ;;  %v1603_v49 = vsel %vm1601_vm11, %v2319_v9, 0  ;;  %v2134_v40 = vcombine.low %v944_v4, %v954_v13 }
  0x8b   : > { %v2151_v26 = vcombine.low %v1181_v63, %v1191_v36  ;;  %v2152_v20 = vcombine.low %v2942_v11, %v2960_v18  ;;  %2214 = vmatpush3.bf16.msra.mxu0 %v1603_v49  ;;  %v2120_v44 = vrot.slane %v2773_v62, 9  ;;  %v1131_v23 = vrot.slane %v1129_v15, 4  ;;  %2238 = vmatpush3.bf16.msra.mxu1 %v1603_v49 }
  0x8c   : > { %1393 = vrot.lane.b32.xlu1 %v2805_v34, %s2369_s30  ;;  %v1132_v30 = vrot.slane %v2817_v53, 5  ;;  %2215 = vmatprep.subr.bf16.mxu0 %v2320_v14  ;;  %v2147_v3 = vcombine.low %v2842_v16, %v2862_v25 }
  0x8d   : > { %1368 = vrot.lane.b32.xlu0 %v2859_v22, %s2368_s27  ;;  %2236 = vmatprep.subr.bf16.mxu1 %v2320_v14  ;;  %v1130_v62 = vsel %vm2594_vm7, %v2120_v44, %v1129_v15 }
  0x8e   : > { %v1133_v53 = vsel %vm2594_vm7, %v1131_v23, %v1132_v30 }
  0x8f   : > { %2216 = vmatpush3.bf16.msra.mxu0 %v2320_v14  ;;  %2239 = vmatpush3.bf16.msra.mxu1 %v2320_v14  ;;  %v2146_v32 = vcombine.low %v1130_v62, %v1133_v53 }
  0x90   : > { %1395 = vrot.lane.b32.xlu1 %v2138_v6, %s2369_s30  ;;  %2217 = vmatprep.subr.bf16.mxu0 %v2321_v43 }
  0x91   : > { %1385 = vrot.lane.b32.xlu0 %v2826_v5, %s2369_s30  ;;  %2237 = vmatprep.subr.bf16.mxu1 %v2321_v43 }
  0x93   : > { %2218 = vmatpush3.bf16.msra.mxu0 %v2321_v43  ;;  %2240 = vmatpush3.bf16.msra.mxu1 %v2321_v43 }
  0x94   : > { %1412 = vrot.lane.b32.xlu1 %v2846_v17, %s2370_s10 }
  0x95   : > { %1387 = vrot.lane.b32.xlu0 %v2134_v40, %s2369_s30 }
  0x98   : > { %1262 = vrot.lane.b32.xlu1 %v2805_v34, %s2364_s18  ;;  %v2150_v34 = vcombine.low %v2887_v59, %v2894_v60 }
  0x99   : > { %1404 = vrot.lane.b32.xlu0 %v2852_v42, %s2370_s10 }
  0x9c   : > { %1414 = vrot.lane.b32.xlu1 %v2146_v32, %s2370_s10 }
  0x9d   : > { %1254 = vrot.lane.b32.xlu0 %v2826_v5, %s2364_s18 }
  0xa0   : > { %1264 = vrot.lane.b32.xlu1 %v2138_v6, %s2364_s18 }
  0xa1   : > { %1406 = vrot.lane.b32.xlu0 %v2896_v57, %s2370_s10 }
  0xa4   : > { %1302 = vrot.lane.b32.xlu1 %v2846_v17, %s2363_s17 }
  0xa5   : > { %1256 = vrot.lane.b32.xlu0 %v2134_v40, %s2364_s18 }
  0xa8   : > { %1304 = vrot.lane.b32.xlu1 %v2146_v32, %s2363_s17 }
  0xa9   : > { %1294 = vrot.lane.b32.xlu0 %v2852_v42, %s2363_s17 }
  0xac   : > { %1321 = vrot.lane.b32.xlu1 %v2856_v21, %s2365_s19 }
  0xad   : > { %1296 = vrot.lane.b32.xlu0 %v2896_v57, %s2363_s17  ;;  %s2371_s17 = smov 124  }
  0xb0   : > { %1323 = vrot.lane.b32.xlu1 %v2147_v3, %s2365_s19 }
  0xb1   : > { %1313 = vrot.lane.b32.xlu0 %v2859_v22, %s2365_s19 }
  0xb4   : > { %1340 = vrot.lane.b32.xlu1 %v2138_v6, %s2366_s25 }
  0xb5   : > { %1315 = vrot.lane.b32.xlu0 %v2624_v54, %s2365_s19 }
  0xb8   : > { %1342 = vrot.lane.b32.xlu1 %v2927_v58, %s2366_s25 }
  0xb9   : > { %1332 = vrot.lane.b32.xlu0 %v2134_v40, %s2366_s25 }
  0xbc   : > { %1359 = vrot.lane.b32.xlu1 %v2146_v32, %s2367_s26 }
  0xbd   : > { %1334 = vrot.lane.b32.xlu0 %v2760_v1, %s2366_s25 }
  0xc0   : > { %1361 = vrot.lane.b32.xlu1 %v2913_v31, %s2367_s26 }
  0xc1   : > { %1351 = vrot.lane.b32.xlu0 %v2896_v57, %s2367_s26 }
  0xc4   : > { %1378 = vrot.lane.b32.xlu1 %v2147_v3, %s2368_s27 }
  0xc5   : > { %1353 = vrot.lane.b32.xlu0 %v2650_v7, %s2367_s26 }
  0xc7   : > { %v1299_v5 = vpop.permute.xlu1 %1298 }
  0xc8   : > { %1380 = vrot.lane.b32.xlu1 %v2150_v34, %s2368_s27 }
  0xc9   : > { %1370 = vrot.lane.b32.xlu0 %v2624_v54, %s2368_s27  ;;  %v1291_v16 = vpop.permute.xlu0 %1290 }
  0xcb   : > { %v1301_v17 = vpop.permute.xlu1 %1300 }
  0xcc   : > { %1397 = vrot.lane.b32.xlu1 %v2927_v58, %s2369_s30 }
  0xcd   : > { %1372 = vrot.lane.b32.xlu0 %v2736_v38, %s2368_s27  ;;  %v3035_v42 = vpop.permute.xlu0 %1292 }
  0xd0   : > { %1399 = vrot.lane.b32.xlu1 %v2151_v26, %s2369_s30 }
  0xd1   : > { %1389 = vrot.lane.b32.xlu0 %v2760_v1, %s2369_s30 }
  0xd3   : > { %v1253_v25 = vpop.permute.xlu1 %1252 }
  0xd4   : > { %1416 = vrot.lane.b32.xlu1 %v2913_v31, %s2370_s10 }
  0xd5   : > { %1391 = vrot.lane.b32.xlu0 %v2732_v35, %s2369_s30 }
  0xd7   : > { %v1251_v59 = vpop.permute.xlu0 %1250 }
  0xd8   : > { %1418 = vrot.lane.b32.xlu1 %v2152_v20, %s2370_s10  ;;  %v1423_v9 = vsel %vm1420_vm12, %v2123_v55, %v1251_v59  ;;  %v1426_v20 = vsel %vm1420_vm12, %v2750_v52, %v1253_v25 }
  0xd9   : > { %1408 = vrot.lane.b32.xlu0 %v2650_v7, %s2370_s10  ;;  %v1447_v4 = vsel %vm1445_vm14, %v1423_v9, %v1291_v16  ;;  %v1449_v62 = vsel %vm1445_vm14, %v1426_v20, %v3035_v42 }
  0xda   : > { %v1261_v60 = vpop.permute.xlu1 %1260 }
  0xdb   : > { %v1438_v12 = vsel %vm1420_vm12, %v2736_v38, %v1261_v60 }
  0xdc   : > { %v1457_v36 = vsel %vm1445_vm14, %v1438_v12, %v1301_v17 }
  0xdd   : > { %1410 = vrot.lane.b32.xlu0 %v2671_v24, %s2370_s10 }
  0xde   : > { %v1318_v1 = vpop.permute.xlu1 %1317 }
  0xdf   : > { %v1259_v57 = vpop.permute.xlu0 %1258 }
  0xe0   : > { %v1435_v24 = vsel %vm1420_vm12, %v2624_v54, %v1259_v57 }
  0xe1   : > { %v1455_v29 = vsel %vm1445_vm14, %v1435_v24, %v1299_v5 }
  0xe2   : > { %v1320_v33 = vpop.permute.xlu1 %1319  ;;  %v1472_v37 = vsel %vm1462_vm13, %v1455_v29, %v1318_v1 }
  0xe3   : > { %v1310_v39 = vpop.permute.xlu0 %1309  ;;  %v1474_v38 = vsel %vm1462_vm13, %v1457_v36, %v1320_v33 }
  0xe4   : > { %v1464_v50 = vsel %vm1462_vm13, %v1447_v4, %v1310_v39 }
  0xe6   : > { %v1337_v31 = vpop.permute.xlu1 %1336 }
  0xe7   : > { %v1312_v41 = vpop.permute.xlu0 %1311  ;;  %v1489_v6 = vsel %vm1479_vm15, %v1472_v37, %v1337_v31 }
  0xe8   : > { %v1466_v52 = vsel %vm1462_vm13, %v1449_v62, %v1312_v41 }
  0xea   : > { %v1339_v35 = vpop.permute.xlu1 %1338 }
  0xeb   : > { %v1329_v27 = vpop.permute.xlu0 %1328  ;;  %v1491_v49 = vsel %vm1479_vm15, %v1474_v38, %v1339_v35 }
  0xec   : > { %v1481_v13 = vsel %vm1479_vm15, %v1464_v50, %v1329_v27 }
  0xee   : > { %v1356_v45 = vpop.permute.xlu1 %1355 }
  0xef   : > { %v1331_v46 = vpop.permute.xlu0 %1330  ;;  %v1506_v10 = vsel %vm1496_vm0, %v1489_v6, %v1356_v45 }
  0xf0   : > { %v1483_v5 = vsel %vm1479_vm15, %v1466_v52, %v1331_v46 }
  0xf2   : > { %v1358_v47 = vpop.permute.xlu1 %1357 }
  0xf3   : > { %v1348_v51 = vpop.permute.xlu0 %1347  ;;  %v1508_v23 = vsel %vm1496_vm0, %v1491_v49, %v1358_v47 }
  0xf4   : > { %v1498_v18 = vsel %vm1496_vm0, %v1481_v13, %v1348_v51 }
  0xf6   : > { %v1375_v61 = vpop.permute.xlu1 %1374 }
  0xf7   : > { %v1350_v56 = vpop.permute.xlu0 %1349  ;;  %v1523_v11 = vsel %vm1513_vm1, %v1506_v10, %v1375_v61 }
  0xf8   : > { %v1500_v16 = vsel %vm1496_vm0, %v1483_v5, %v1350_v56 }
  0xfa   : > { %v1377_v7 = vpop.permute.xlu1 %1376 }
  0xfb   : > { %v1367_v58 = vpop.permute.xlu0 %1366  ;;  %v1525_v43 = vsel %vm1513_vm1, %v1508_v23, %v1377_v7 }
  0xfc   : > { %v1515_v14 = vsel %vm1513_vm1, %v1498_v18, %v1367_v58 }
  0xfe   : > { %v1394_v28 = vpop.permute.xlu1 %1393 }
  0xff   : > { %v1369_v0 = vpop.permute.xlu0 %1368  ;;  %v1540_v15 = vsel %vm1530_vm2, %v1523_v11, %v1394_v28 }
 0x100   : > { %v1517_v17 = vsel %vm1513_vm1, %v1500_v16, %v1369_v0 }
 0x102   : > { %v1396_v2 = vpop.permute.xlu1 %1395 }
 0x103   : > { %v1386_v54 = vpop.permute.xlu0 %1385  ;;  %v1542_v53 = vsel %vm1530_vm2, %v1525_v43, %v1396_v2 }
 0x104   : > { %v1532_v40 = vsel %vm1530_vm2, %v1515_v14, %v1386_v54 }
 0x106   : > { %v1413_v48 = vpop.permute.xlu1 %1412 }
 0x107   : > { %v1388_v55 = vpop.permute.xlu0 %1387  ;;  %v1557_v63 = vsel %vm1547_vm3, %v1540_v15, %v1413_v48 }
 0x108   : > { %2227 = vmatprep.mubr.msk.bf16.mxu1 %vm1584_vm4, %v1557_v63  ;;  %v1534_v59 = vsel %vm1530_vm2, %v1517_v17, %v1388_v55 }
 0x10a   : > { %v1263_v26 = vpop.permute.xlu1 %1262 }
 0x10b   : > { %v1405_v44 = vpop.permute.xlu0 %1404  ;;  %v1441_v9 = vsel %vm1420_vm12, %v2767_v8, %v1263_v26 }
 0x10c   : > { %v1549_v30 = vsel %vm1547_vm3, %v1532_v40, %v1405_v44 }
 0x10d   : > { %2219 = vmatprep.mubr.msk.bf16.mxu0 %vm1584_vm4, %v1549_v30 }
 0x10e   : > { %v1415_v32 = vpop.permute.xlu1 %1414 }
 0x10f   : > { %v1255_v3 = vpop.permute.xlu0 %1254  ;;  %v1559_v34 = vsel %vm1547_vm3, %v1542_v53, %v1415_v32 }
 0x110   : > { %2228 = vmatmul.mubr.msk.bf16.vlgmr.msra.gmra.mxu1 %vm1584_vm4, %v1559_v34  ;;  %v1429_v48 = vsel %vm1420_vm12, %v2779_v19, %v1255_v3 }
 0x112   : > { %v1265_v25 = vpop.permute.xlu1 %1264 }
 0x113   : > { %v1407_v42 = vpop.permute.xlu0 %1406  ;;  %v1444_v54 = vsel %vm1420_vm12, %v2856_v21, %v1265_v25 }
 0x114   : > { %v1551_v60 = vsel %vm1547_vm3, %v1534_v59, %v1407_v42  ;;  %v3135_v59 = vld [vmem:[%s3271_s2] ss:$0 sm:$0xff] }
 0x115   : > { %2220 = vmatmul.mubr.msk.bf16.vlgmr.msra.gmra.mxu0 %vm1584_vm4, %v1551_v60  ;;  %v3140_v42 = vld [vmem:[%s3272_s3] ss:$0 sm:$0xff] }
 0x116   : > { %v1303_v1 = vpop.permute.xlu1 %1302 }
 0x117   : > { %v1257_v57 = vpop.permute.xlu0 %1256  ;;  %v1459_v6 = vsel %vm1445_vm14, %v1441_v9, %v1303_v1 }
 0x118   : > { %v1432_v20 = vsel %vm1420_vm12, %v2859_v22, %v1257_v57 }
 0x11a   : > { %v1305_v33 = vpop.permute.xlu1 %1304 }
 0x11b   : > { %v1295_v39 = vpop.permute.xlu0 %1294  ;;  %v1461_v50 = vsel %vm1445_vm14, %v1444_v54, %v1305_v33 }
 0x11c   : > { %v1451_v55 = vsel %vm1445_vm14, %v1429_v48, %v1295_v39 }
 0x11e   : > { %v1322_v31 = vpop.permute.xlu1 %1321 }
 0x11f   : > { %v1297_v41 = vpop.permute.xlu0 %1296  ;;  %v1476_v10 = vsel %vm1462_vm13, %v1459_v6, %v1322_v31 }
 0x120   : > { %v1453_v44 = vsel %vm1445_vm14, %v1432_v20, %v1297_v41 }
 0x122   : > { %v1324_v35 = vpop.permute.xlu1 %1323 }
 0x123   : > { %v1314_v27 = vpop.permute.xlu0 %1313  ;;  %v1478_v63 = vsel %vm1462_vm13, %v1461_v50, %v1324_v35 }
 0x124   : > { %v1468_v36 = vsel %vm1462_vm13, %v1451_v55, %v1314_v27 }
 0x126   : > { %v1341_v45 = vpop.permute.xlu1 %1340 }
 0x127   : > { %v1316_v46 = vpop.permute.xlu0 %1315  ;;  %v1493_v12 = vsel %vm1479_vm15, %v1476_v10, %v1341_v45 }
 0x128   : > { %v1470_v62 = vsel %vm1462_vm13, %v1453_v44, %v1316_v46 }
 0x12a   : > { %v1343_v47 = vpop.permute.xlu1 %1342 }
 0x12b   : > { %v1333_v51 = vpop.permute.xlu0 %1332  ;;  %v1495_v18 = vsel %vm1479_vm15, %v1478_v63, %v1343_v47 }
 0x12c   : > { %v1485_v19 = vsel %vm1479_vm15, %v1468_v36, %v1333_v51 }
 0x12e   : > { %v1360_v61 = vpop.permute.xlu1 %1359 }
 0x12f   : > { %v1335_v56 = vpop.permute.xlu0 %1334  ;;  %v1510_v15 = vsel %vm1496_vm0, %v1493_v12, %v1360_v61 }
 0x130   : > { %v1487_v22 = vsel %vm1479_vm15, %v1470_v62, %v1335_v56 }
 0x132   : > { %v1362_v7 = vpop.permute.xlu1 %1361 }
 0x133   : > { %v1352_v58 = vpop.permute.xlu0 %1351  ;;  %v1512_v26 = vsel %vm1496_vm0, %v1495_v18, %v1362_v7 }
 0x134   : > { %v1502_v49 = vsel %vm1496_vm0, %v1485_v19, %v1352_v58 }
 0x136   : > { %v1379_v24 = vpop.permute.xlu1 %1378 }
 0x137   : > { %v1354_v28 = vpop.permute.xlu0 %1353  ;;  %v1527_v8 = vsel %vm1513_vm1, %v1510_v15, %v1379_v24 }
 0x138   : > { %v1504_v34 = vsel %vm1496_vm0, %v1487_v22, %v1354_v28 }
 0x13a   : > { %v1381_v0 = vpop.permute.xlu1 %1380 }
 0x13b   : > { %v1371_v29 = vpop.permute.xlu0 %1370  ;;  %v1529_v40 = vsel %vm1513_vm1, %v1512_v26, %v1381_v0 }
 0x13c   : > { %v1519_v23 = vsel %vm1513_vm1, %v1502_v49, %v1371_v29 }
 0x13e   : > { %v1398_v37 = vpop.permute.xlu1 %1397 }
 0x13f   : > { %v1373_v2 = vpop.permute.xlu0 %1372  ;;  %v1544_v21 = vsel %vm1530_vm2, %v1527_v8, %v1398_v37 }
 0x140   : > { %v1521_v5 = vsel %vm1513_vm1, %v1504_v34, %v1373_v2 }
 0x142   : > { %v1400_v11 = vpop.permute.xlu1 %1399 }
 0x143   : > { %v1390_v4 = vpop.permute.xlu0 %1389  ;;  %v1546_v30 = vsel %vm1530_vm2, %v1529_v40, %v1400_v11 }
 0x144   : > { %v1536_v53 = vsel %vm1530_vm2, %v1519_v23, %v1390_v4 }
 0x146   : > { %v1417_v13 = vpop.permute.xlu1 %1416 }
 0x147   : > { %v1392_v38 = vpop.permute.xlu0 %1391  ;;  %v1561_v14 = vsel %vm1547_vm3, %v1544_v21, %v1417_v13 }
 0x148   : > { %2231 = vmatprep.mubr.msk.bf16.mxu1 %vm1584_vm4, %v1561_v14  ;;  %v1538_v16 = vsel %vm1530_vm2, %v1521_v5, %v1392_v38 }
 0x14a   : > { %v1419_v43 = vpop.permute.xlu1 %1418 }
 0x14b   : > { %v1409_v32 = vpop.permute.xlu0 %1408  ;;  %v1563_v52 = vsel %vm1547_vm3, %v1546_v30, %v1419_v43 }
 0x14c   : > { %v1553_v3 = vsel %vm1547_vm3, %v1536_v53, %v1409_v32  ;;  %2232 = vmatmul.mubr.msk.bf16.gmra.mxu1 %vm1584_vm4, %v1563_v52 }
 0x14d   : > { %2223 = vmatprep.mubr.msk.bf16.mxu0 %vm1584_vm4, %v1553_v3 }
 0x14f   : > { %v1411_v17 = vpop.permute.xlu0 %1410 }
 0x150   : > { %v1555_v25 = vsel %vm1547_vm3, %v1538_v16, %v1411_v17 }
 0x151   : > { %2224 = vmatmul.mubr.msk.bf16.gmra.mxu0 %vm1584_vm4, %v1555_v25 }
 0x1d0   : > { %v2229_v60 = vpop.f32.mrf.mxu1 }
 0x1d1   : > { %v1719_v1 = vmul.f32 %v2229_v60, %v3135_v59 }
 0x1d2   : > { %v1671_v57 = vpop.f32.mrf.mxu1 }
 0x1d3   : > { %v1742_v33 = vadd.f32 %v3140_v42, %v1719_v1  ;;  %v1717_v39 = vmul.f32 %v3135_v59, %v1671_v57 }
 0x1d4   : > { %v2230_v31 = vpop.f32.mrf.mxu1 }
 0x1d5   : > { %v2221_v41 = vpop.f32.mrf.mxu0  ;;  %v1758_v35 = vmax.f32 %v1742_v33, 0.0  ;;  %v1740_v27 = vadd.f32 %v3140_v42, %v1717_v39  ;;  %v1720_v45 = vmul.f32 %v2230_v31, %v3135_v59 }
 0x1d6   : > { %v1711_v46 = vmul.f32 %v2221_v41, %v3135_v59  ;;  %v1674_v47 = vpop.f32.mrf.mxu1 }
 0x1d7   : > { %1774 = vst.msk [vmem:[%s2443_s11 + $0x50] sm:$0xff] %vm1420_vm12, %v1758_v35  ;;  %v1639_v51 = vpop.f32.mrf.mxu0  ;;  %v1756_v61 = vmax.f32 %v1740_v27, 0.0  ;;  %v1743_v56 = vadd.f32 %v3140_v42, %v1720_v45  ;;  %v1718_v7 = vmul.f32 %v3135_v59, %v1674_v47  ;;  %v2196_v8 = vpack.c.bf16 %v1758_v35, %v1758_v35 }
 0x1d8   : > { %v1734_v58 = vadd.f32 %v3140_v42, %v1711_v46  ;;  %v1709_v24 = vmul.f32 %v3135_v59, %v1639_v51 }
 0x1d9   : > { %1772 = vst.msk [vmem:[%s2443_s11 + $0x40] sm:$0xff] %vm1420_vm12, %v1756_v61  ;;  %v2222_v28 = vpop.f32.mrf.mxu0  ;;  %v1759_v0 = vmax.f32 %v1743_v56, 0.0  ;;  %v1741_v29 = vadd.f32 %v3140_v42, %v1718_v7  ;;  %v2194_v13 = vpack.c.bf16 %v1756_v61, %v1756_v61 }
 0x1da   : > { %v1750_v37 = vmax.f32 %v1734_v58, 0.0  ;;  %v1732_v2 = vadd.f32 %v3140_v42, %v1709_v24  ;;  %v1712_v9 = vmul.f32 %v2222_v28, %v3135_v59 }
 0x1db   : > { %1775 = vst.msk [vmem:[%s2443_s11 + $0x58] sm:$0xff] %vm1420_vm12, %v1759_v0  ;;  %v1642_v6 = vpop.f32.mrf.mxu0  ;;  %v1757_v54 = vmax.f32 %v1741_v29, 0.0  ;;  %v2197_v21 = vpack.c.bf16 %v1759_v0, %v1759_v0 }
 0x1dc   : > { %1766 = vst.msk [vmem:[%s2443_s11 + $0x10] sm:$0xff] %vm1420_vm12, %v1750_v37  ;;  %v1748_v10 = vmax.f32 %v1732_v2, 0.0  ;;  %v1735_v11 = vadd.f32 %v3140_v42, %v1712_v9  ;;  %v1710_v12 = vmul.f32 %v3135_v59, %v1642_v6  ;;  %v2188_v4 = vpack.c.bf16 %v1750_v37, %v1750_v37 }
 0x1dd   : > { %1773 = vst.msk [vmem:[%s2443_s11 + $0x48] sm:$0xff] %vm1420_vm12, %v1757_v54  ;;  %v2195_v18 = vpack.c.bf16 %v1757_v54, %v1757_v54 }
 0x1de   : > { %1764 = vst.msk [vmem:[%s2443_s11] sm:$0xff] %vm1420_vm12, %v1748_v10  ;;  %v1751_v15 = vmax.f32 %v1735_v11, 0.0  ;;  %v1733_v48 = vadd.f32 %v3140_v42, %v1710_v12  ;;  %1832 = vrot.lane.b32.xlu0 %v2188_v4, %s2371_s17  ;;  %v2186_v63 = vpack.c.bf16 %v1748_v10, %v1748_v10 }
 0x1e0   : > { %1767 = vst.msk [vmem:[%s2443_s11 + $0x18] sm:$0xff] %vm1420_vm12, %v1751_v15  ;;  %v1749_v50 = vmax.f32 %v1733_v48, 0.0  ;;  %v2189_v55 = vpack.c.bf16 %v1751_v15, %v1751_v15 }
 0x1e2   : > { %1765 = vst.msk [vmem:[%s2443_s11 + $0x8] sm:$0xff] %vm1420_vm12, %v1749_v50  ;;  %1848 = vrot.lane.b32.xlu0 %v2196_v8, %s2371_s17  ;;  %1834 = vrot.lane.b32.xlu1 %v2189_v55, %s2371_s17  ;;  %v2187_v36 = vpack.c.bf16 %v1749_v50, %v1749_v50 }
 0x1e6   : > { %1828 = vrot.lane.b32.xlu0 %v2186_v63, %s2371_s17  ;;  %1850 = vrot.lane.b32.xlu1 %v2197_v21, %s2371_s17 }
 0x1ea   : > { %1844 = vrot.lane.b32.xlu0 %v2194_v13, %s2371_s17  ;;  %1830 = vrot.lane.b32.xlu1 %v2187_v36, %s2371_s17 }
 0x1ee   : > { %1846 = vrot.lane.b32.xlu1 %v2195_v18, %s2371_s17 }
 0x20c   : > { %v2233_v38 = vpop.f32.mrf.mxu1 }
 0x20d   : > { %v1723_v14 = vmul.f32 %v2233_v38, %v3135_v59 }
 0x20e   : > { %v1687_v19 = vpop.f32.mrf.mxu1 }
 0x20f   : > { %v1746_v26 = vadd.f32 %v3140_v42, %v1723_v14  ;;  %v1721_v20 = vmul.f32 %v3135_v59, %v1687_v19 }
 0x210   : > { %v2234_v49 = vpop.f32.mrf.mxu1 }
 0x211   : > { %v2225_v40 = vpop.f32.mrf.mxu0  ;;  %v1762_v44 = vmax.f32 %v1746_v26, 0.0  ;;  %v1744_v23 = vadd.f32 %v3140_v42, %v1721_v20  ;;  %v1724_v30 = vmul.f32 %v2234_v49, %v3135_v59 }
 0x212   : > { %v1715_v43 = vmul.f32 %v2225_v40, %v3135_v59  ;;  %v1690_v62 = vpop.f32.mrf.mxu1 }
 0x213   : > { %1778 = vst.msk [vmem:[%s2443_s11 + $0x70] sm:$0xff] %vm1420_vm12, %v1762_v44  ;;  %v1655_v53 = vpop.f32.mrf.mxu0  ;;  %v1760_v32 = vmax.f32 %v1744_v23, 0.0  ;;  %v1747_v52 = vadd.f32 %v3140_v42, %v1724_v30  ;;  %v1722_v22 = vmul.f32 %v3135_v59, %v1690_v62 }
 0x214   : > { %v1738_v3 = vadd.f32 %v3140_v42, %v1715_v43  ;;  %v1713_v34 = vmul.f32 %v3135_v59, %v1655_v53 }
 0x215   : > { %1776 = vst.msk [vmem:[%s2443_s11 + $0x60] sm:$0xff] %vm1420_vm12, %v1760_v32  ;;  %v2226_v5 = vpop.f32.mrf.mxu0  ;;  %v1763_v16 = vmax.f32 %v1747_v52, 0.0  ;;  %v1745_v17 = vadd.f32 %v3140_v42, %v1722_v22 }
 0x216   : > { %v1754_v25 = vmax.f32 %v1738_v3, 0.0  ;;  %v1736_v60 = vadd.f32 %v3140_v42, %v1713_v34  ;;  %v1716_v1 = vmul.f32 %v2226_v5, %v3135_v59 }
 0x217   : > { %1779 = vst.msk [vmem:[%s2443_s11 + $0x78] sm:$0xff] %vm1420_vm12, %v1763_v16  ;;  %v1658_v57 = vpop.f32.mrf.mxu0  ;;  %v1761_v33 = vmax.f32 %v1745_v17, 0.0  ;;  %v2201_v7 = vpack.c.bf16 %v1763_v16, %v1763_v16 }
 0x218   : > { %1770 = vst.msk [vmem:[%s2443_s11 + $0x30] sm:$0xff] %vm1420_vm12, %v1754_v25  ;;  %v1752_v39 = vmax.f32 %v1736_v60, 0.0  ;;  %v1739_v31 = vadd.f32 %v3140_v42, %v1716_v1  ;;  %v1714_v41 = vmul.f32 %v3135_v59, %v1658_v57  ;;  %v2192_v35 = vpack.c.bf16 %v1754_v25, %v1754_v25 }
 0x219   : > { %1777 = vst.msk [vmem:[%s2443_s11 + $0x68] sm:$0xff] %vm1420_vm12, %v1761_v33  ;;  %v2198_v59 = vpack.c.bf16 %v1760_v32, %v1760_v32  ;;  %v2199_v56 = vpack.c.bf16 %v1761_v33, %v1761_v33 }
 0x21a   : > { %1768 = vst.msk [vmem:[%s2443_s11 + $0x20] sm:$0xff] %vm1420_vm12, %v1752_v39  ;;  %v1755_v27 = vmax.f32 %v1739_v31, 0.0  ;;  %v1737_v45 = vadd.f32 %v3140_v42, %v1714_v41  ;;  %1840 = vrot.lane.b32.xlu0 %v2192_v35, %s2371_s17  ;;  %v2190_v47 = vpack.c.bf16 %v1752_v39, %v1752_v39  ;;  %v2200_v42 = vpack.c.bf16 %v1762_v44, %v1762_v44 }
 0x21c   : > { %1771 = vst.msk [vmem:[%s2443_s11 + $0x38] sm:$0xff] %vm1420_vm12, %v1755_v27  ;;  %v1753_v46 = vmax.f32 %v1737_v45, 0.0  ;;  %v2193_v51 = vpack.c.bf16 %v1755_v27, %v1755_v27 }
 0x21e   : > { %1769 = vst.msk [vmem:[%s2443_s11 + $0x28] sm:$0xff] %vm1420_vm12, %v1753_v46  ;;  %1836 = vrot.lane.b32.xlu0 %v2190_v47, %s2371_s17  ;;  %1842 = vrot.lane.b32.xlu1 %v2193_v51, %s2371_s17  ;;  %v2191_v61 = vpack.c.bf16 %v1753_v46, %v1753_v46 }
 0x222   : > { %1852 = vrot.lane.b32.xlu0 %v2198_v59, %s2371_s17  ;;  %1838 = vrot.lane.b32.xlu1 %v2191_v61, %s2371_s17 }
 0x226   : > { %1856 = vrot.lane.b32.xlu0 %v2200_v42, %s2371_s17  ;;  %1854 = vrot.lane.b32.xlu1 %v2199_v56, %s2371_s17 }
 0x22a   : > { %1858 = vrot.lane.b32.xlu1 %v2201_v7, %s2371_s17 }
 0x250   : > { %v1833_v58 = vpop.permute.xlu0 %1832 }
 0x251   : > { %1879 = vst.msk [vmem:[%s2448_s14 + $0x8] sm:$0xf] %vm1876_vm5, %v1833_v58 }
 0x254   : > { %v1835_v24 = vpop.permute.xlu1 %1834  ;;  %v1849_v28 = vpop.permute.xlu0 %1848 }
 0x255   : > { %1880 = vst.msk [vmem:[%s2448_s14 + $0xc] sm:$0xf] %vm1876_vm5, %v1835_v24  ;;  %1887 = vst.msk [vmem:[%s2448_s14 + $0x28] sm:$0xf] %vm1876_vm5, %v1849_v28 }
 0x258   : > { %v1851_v0 = vpop.permute.xlu1 %1850  ;;  %v1829_v29 = vpop.permute.xlu0 %1828 }
 0x259   : > { %1888 = vst.msk [vmem:[%s2448_s14 + $0x2c] sm:$0xf] %vm1876_vm5, %v1851_v0  ;;  %1877 = vst.msk [vmem:[%s2448_s14] sm:$0xf] %vm1876_vm5, %v1829_v29 }
 0x25c   : > { %v1831_v37 = vpop.permute.xlu1 %1830  ;;  %v1845_v2 = vpop.permute.xlu0 %1844 }
 0x25d   : > { %1878 = vst.msk [vmem:[%s2448_s14 + $0x4] sm:$0xf] %vm1876_vm5, %v1831_v37  ;;  %1885 = vst.msk [vmem:[%s2448_s14 + $0x20] sm:$0xf] %vm1876_vm5, %v1845_v2 }
 0x260   : > { %v1847_v9 = vpop.permute.xlu1 %1846 }
 0x261   : > { %1886 = vst.msk [vmem:[%s2448_s14 + $0x24] sm:$0xf] %vm1876_vm5, %v1847_v9 }
 0x28c   : > { %v1841_v6 = vpop.permute.xlu0 %1840 }
 0x28d   : > { %1883 = vst.msk [vmem:[%s2448_s14 + $0x18] sm:$0xf] %vm1876_vm5, %v1841_v6 }
 0x290   : > { %v1843_v54 = vpop.permute.xlu1 %1842  ;;  %v1837_v10 = vpop.permute.xlu0 %1836 }
 0x291   : > { %1884 = vst.msk [vmem:[%s2448_s14 + $0x1c] sm:$0xf] %vm1876_vm5, %v1843_v54  ;;  %1881 = vst.msk [vmem:[%s2448_s14 + $0x10] sm:$0xf] %vm1876_vm5, %v1837_v10 }
 0x294   : > { %v1839_v11 = vpop.permute.xlu1 %1838  ;;  %v1853_v12 = vpop.permute.xlu0 %1852 }
 0x295   : > { %1882 = vst.msk [vmem:[%s2448_s14 + $0x14] sm:$0xf] %vm1876_vm5, %v1839_v11  ;;  %1889 = vst.msk [vmem:[%s2448_s14 + $0x30] sm:$0xf] %vm1876_vm5, %v1853_v12 }
 0x298   : > { %v1855_v4 = vpop.permute.xlu1 %1854  ;;  %v1857_v15 = vpop.permute.xlu0 %1856 }
 0x299   : > { %1890 = vst.msk [vmem:[%s2448_s14 + $0x34] sm:$0xf] %vm1876_vm5, %v1855_v4  ;;  %1891 = vst.msk [vmem:[%s2448_s14 + $0x38] sm:$0xf] %vm1876_vm5, %v1857_v15 }
 0x29c   : > { %v1859_v48 = vpop.permute.xlu1 %1858 }
 0x29d   : > { %1892 = vst.msk [vmem:[%s2448_s14 + $0x3c] sm:$0xf] %vm1876_vm5, %v1859_v48 }
 0x29e PF: > { %s16_s22 = sadd.s32 1, %s2360_s22   ;;  %s3281_s18 = smov %s2352_s20 }
 0x29f   : > { %p13_p8 = scmp.ge.s32.totalorder %s16_s22, 6   ;;  %s3282_s19 = smov %s2356_s21 }
 0x2a0   : > { %s3283_s20 = smov %s3286_s23  ;;  %s3284_s21 = smov %s3290_s24 }
 0x2a1   :  { %15 = sbr.rel (!%p13_p8) target bundleno = 3 (0x3), region = 83 }

// kernel: detect_module_forward.3
= control target key start
LH: loop header
LB: loop body
LE: loop exit
PB: predicated region body
PF: predicated region fallthrough
CT: control target
= control target key end

     0   :  { %s2326_s18 = smov 0   ;;  %s2328_s19 = smov 0   ;;  %s3248_s0 = inlined_call_operand.vmem [shape: f32[2,16,16,16], index: 0, kind: input, shape index: {}]   ;;  %s3249_s1 = inlined_call_operand.vmem [shape: bf16[144,12], index: 1, kind: input, shape index: {}]   ;;  %s3250_s2 = inlined_call_operand.vmem [shape: f32[1,12], index: 2, kind: input, shape index: {}]   ;;  %s3251_s3 = inlined_call_operand.vmem [shape: f32[1,12], index: 3, kind: input, shape index: {}]   ;;  %s3252_s4 = inlined_call_operand.vmem [shape: f32[2,256,8], index: 4, kind: output, shape index: {0}]   ;;  %s3253_s5 = inlined_call_operand.vmem [shape: bf16[2,256,4], index: 5, kind: output, shape index: {1}]  }
   0x1   :  { %s2330_s20 = smov 0   ;;  %s2332_s21 = smov 0  }
   0x2   :  { %s2334_s22 = smov 0  }
   0x3 LB: > { %s25_s23 = sadd.s32 1, %s2276_s20  ;;  %s28_s24 = sadd.s32 1, %s2280_s21  ;;  %s2284_s22 = sphi %s2334_s22, %s16_s22   ;;  %s2280_s21 = sphi %s2332_s21, %s3263_s21   ;;  %s2276_s20 = sphi %s2330_s20, %s3262_s20   ;;  %s2272_s19 = sphi %s2328_s19, %s3261_s19   ;;  %s2268_s18 = sphi %s2326_s18, %s3260_s18  }
   0x4   : > { %p26_p0 = scmp.ge.s32.totalorder %s25_s23, 2  ;;  %p2000_p1 = scmp.ge.s32.totalorder %s2284_s22, 1 }
   0x5   : > { %p206_p2 = scmp.lt.s32.totalorder %s2284_s22, 5 }
   0x6   : > { %s3265_s23 = smov (%p26_p0, %s25_s23), 0  ;;  %s3267_s24 = smov (!%p26_p0, %s28_s24), %s2280_s21 }
   0x7   : > { %p207_p3 = pnand %p2000_p1, %p206_p2  ;;  %p30_p4 = scmp.ge.s32.totalorder %s3267_s24, 2 }
   0x8   : > { %p247_p5 = scmp.lt.s32.totalorder (!%p207_p3), %s2272_s19, 1  ;;  %s2003_s25 = sshll.u32 (!%p207_p3), %s2268_s18, 4 }
   0x9   : > { %s3269_s24 = smov (%p30_p4, %s3267_s24), 0  ;;  %210 = sbr.rel (%p207_p3) target bundleno = 647 (0x287), region = 36 }
   0xa   : > { %p255_p6 = scmp.lt.s32.totalorder (!%p207_p3), %s2003_s25, 31  ;;  %p2009_p7 = scmp.ne.s32.totalorder (!%p207_p3), %s2268_s18, 0 }
   0xe   : > { %s3271_s19 = smov (!%p247_p5, %s2272_s19), 1  ;;  %s3273_s25 = smov (!%p255_p6, %s2003_s25), 31 }
   0xf   : > { %s2141_s26 = sshll.u32 %s3271_s19, 8  ;;  %s2004_s27 = sshll.u32 %s3271_s19, 5 }
  0x10   : > { %s2362_s30 = scalar_lea.vmem %s3248_s0, %s2141_s26  ;;  %s258_s6 = sadd.s32 %s2004_s27, %s3273_s25 }
  0x11   : > { %s2005_s7 = sshll.u32 %s258_s6, 3  ;;  %s2008_s8 = sshll.u32 %s258_s6, 2 }
  0x12   : > { %s2367_s11 = scalar_lea.vmem %s3252_s4, %s2005_s7  ;;  %s2372_s14 = scalar_lea.vmem %s3253_s5, %s2008_s8 }
  0x13   : > { %276 = sbr.rel (%p2009_p7) target bundleno = 73 (0x49), region = 40 }
  0x18   : > { %vm478_vm0 = vcmask 1040384   ;;  %vm479_vm1 = vsmask.f32 256  ;;  %v277_v0 = vld [vmem:[%s2362_s30] sm:$0xff]  ;;  %v2286_v1 = vmov 0   ;;  %v278_v4 = vld [vmem:[%s2362_s30 + $0x8] sm:$0xff] }
  0x19   : > { %v328_v2 = vrot.slane %v2286_v1, 7  ;;  %vm2376_vm2 = vmand %vm478_vm0, %vm479_vm1  ;;  %v279_v5 = vld [vmem:[%s2362_s30 + $0x10] sm:$0xff]  ;;  %vm702_vm3 = vcmask 125952   ;;  %vm705_vm4 = vcmask 122880   ;;  %v309_v6 = vpack.c.bf16 %v278_v4, %v277_v0  ;;  %v280_v7 = vld [vmem:[%s2362_s30 + $0x18] sm:$0xff] }
  0x1a   : > { %v281_v8 = vld [vmem:[%s2362_s30 + $0x20] sm:$0xff]  ;;  %v282_v9 = vld [vmem:[%s2362_s30 + $0x28] sm:$0xff]  ;;  %v310_v12 = vpack.c.bf16 %v280_v7, %v279_v5  ;;  %v283_v14 = vld [vmem:[%s2362_s30 + $0x30] sm:$0xff] }
  0x1b   : > { %v481_v10 = vsel %vm2376_vm2, 0, %v328_v2  ;;  %v498_v11 = vsel %vm2376_vm2, %v328_v2, 0  ;;  %v311_v13 = vpack.c.bf16 %v282_v9, %v281_v8  ;;  %v284_v15 = vld [vmem:[%s2362_s30 + $0x38] sm:$0xff]  ;;  %v285_v16 = vld [vmem:[%s2362_s30 + $0x40] sm:$0xff]  ;;  %v333_v20 = vshrl.u32 %v309_v6, 16  ;;  %v286_v21 = vld [vmem:[%s2362_s30 + $0x48] sm:$0xff] }
  0x1c   : > { %v2010_v17 = vcombine.low %v481_v10, %v481_v10  ;;  %v2011_v18 = vcombine.high %v481_v10, %v481_v10  ;;  %v2012_v19 = vcombine.low %v498_v11, %v498_v11  ;;  %v287_v22 = vld [vmem:[%s2362_s30 + $0x50] sm:$0xff]  ;;  %v288_v23 = vld [vmem:[%s2362_s30 + $0x58] sm:$0xff]  ;;  %v336_v24 = vshll.u32 %v309_v6, 16  ;;  %v289_v28 = vld [vmem:[%s2362_s30 + $0x60] sm:$0xff] }
  0x1d   : > { %v340_v25 = vshrl.u32 %v310_v12, 16  ;;  %v343_v26 = vshll.u32 %v310_v12, 16  ;;  %v347_v27 = vshrl.u32 %v311_v13, 16  ;;  %v290_v29 = vld [vmem:[%s2362_s30 + $0x68] sm:$0xff]  ;;  %v335_v30 = vrot.slane %v333_v20, 7  ;;  %v291_v62 = vld [vmem:[%s2362_s30 + $0x70] sm:$0xff] }
  0x1e   : > { %703 = vst.msk [vmem:[#allocation2] sm:$0xf] %vm702_vm3, %v2010_v17  ;;  %755 = vst.msk [vmem:[#allocation2 + $0xcc] sm:$0xf] %vm702_vm3, %v2010_v17  ;;  %v350_v31 = vshll.u32 %v311_v13, 16  ;;  %v312_v32 = vpack.c.bf16 %v284_v15, %v283_v14  ;;  %v313_v33 = vpack.c.bf16 %v286_v21, %v285_v16  ;;  %v314_v36 = vpack.c.bf16 %v288_v23, %v287_v22  ;;  %v292_v63 = vld [vmem:[%s2362_s30 + $0x78] sm:$0xff] }
  0x1f   : > { %704 = vst.msk [vmem:[#allocation2 + $0x4] sm:$0xf] %vm702_vm3, %v2011_v18  ;;  %756 = vst.msk [vmem:[#allocation2 + $0xd0] sm:$0xf] %vm702_vm3, %v2011_v18  ;;  %v342_v34 = vrot.slane %v340_v25, 7  ;;  %v349_v35 = vrot.slane %v347_v27, 7  ;;  %v2403_v37 = vpack.c.bf16 %v290_v29, %v289_v28  ;;  %v338_v38 = vor.u32 %v336_v24, %v335_v30 }
  0x20   : > { %706 = vst.msk [vmem:[#allocation2 + $0x8] sm:$0x1] %vm705_vm4, %v2012_v19  ;;  %757 = vst.msk [vmem:[#allocation2 + $0xd4] sm:$0x1] %vm705_vm4, %v2012_v19  ;;  %v499_v39 = vsel %vm2376_vm2, %v335_v30, 0  ;;  %v354_v40 = vshrl.u32 %v312_v32, 16  ;;  %v316_v14 = vpack.c.bf16 %v292_v63, %v291_v62 }
  0x21   : > { %v357_v41 = vshll.u32 %v312_v32, 16  ;;  %v2015_v42 = vcombine.low %v499_v39, %v499_v39  ;;  %v345_v43 = vor.u32 %v343_v26, %v342_v34  ;;  %v500_v44 = vsel %vm2376_vm2, %v342_v34, 0  ;;  %v293_v5 = vld [vmem:[%s2362_s30 + $0x80] sm:$0xff]  ;;  %v294_v6 = vld [vmem:[%s2362_s30 + $0x88] sm:$0xff]  ;;  %v295_v27 = vld [vmem:[%s2362_s30 + $0x90] sm:$0xff] }
  0x22   : > { %v352_v45 = vor.u32 %v350_v31, %v349_v35  ;;  %v482_v46 = vsel %vm2376_vm2, 0, %v338_v38  ;;  %v2018_v47 = vcombine.low %v500_v44, %v500_v44  ;;  %v501_v48 = vsel %vm2376_vm2, %v349_v35, 0  ;;  %v296_v32 = vld [vmem:[%s2362_s30 + $0x98] sm:$0xff]  ;;  %v298_v34 = vld [vmem:[%s2362_s30 + $0xa8] sm:$0xff]  ;;  %v299_v39 = vld [vmem:[%s2362_s30 + $0xb0] sm:$0xff] }
  0x23   : > { %v356_v49 = vrot.slane %v354_v40, 7  ;;  %v2013_v50 = vcombine.low %v482_v46, %v482_v46  ;;  %v2014_v51 = vcombine.high %v482_v46, %v482_v46  ;;  %709 = vst.msk [vmem:[#allocation2 + $0x14] sm:$0x1] %vm705_vm4, %v2015_v42  ;;  %v483_v52 = vsel %vm2376_vm2, 0, %v345_v43  ;;  %v300_v40 = vld [vmem:[%s2362_s30 + $0xb8] sm:$0xff] }
  0x24   : > { %v484_v53 = vsel %vm2376_vm2, 0, %v352_v45  ;;  %v2016_v54 = vcombine.low %v483_v52, %v483_v52  ;;  %v2017_v55 = vcombine.high %v483_v52, %v483_v52  ;;  %712 = vst.msk [vmem:[#allocation2 + $0x20] sm:$0x1] %vm705_vm4, %v2018_v47  ;;  %v2021_v58 = vcombine.low %v501_v48, %v501_v48 }
  0x25   : > { %v2019_v56 = vcombine.low %v484_v53, %v484_v53  ;;  %v2020_v57 = vcombine.high %v484_v53, %v484_v53  ;;  %707 = vst.msk [vmem:[#allocation2 + $0xc] sm:$0xf] %vm702_vm3, %v2013_v50  ;;  %708 = vst.msk [vmem:[#allocation2 + $0x10] sm:$0xf] %vm702_vm3, %v2014_v51  ;;  %v359_v59 = vor.u32 %v357_v41, %v356_v49  ;;  %v502_v60 = vsel %vm2376_vm2, %v356_v49, 0 }
  0x26   : > { %v361_v61 = vshrl.u32 %v313_v33, 16  ;;  %710 = vst.msk [vmem:[#allocation2 + $0x18] sm:$0xf] %vm702_vm3, %v2016_v54  ;;  %711 = vst.msk [vmem:[#allocation2 + $0x1c] sm:$0xf] %vm702_vm3, %v2017_v55  ;;  %v2024_v0 = vcombine.low %v502_v60, %v502_v60  ;;  %v364_v1 = vshll.u32 %v313_v33, 16  ;;  %v317_v18 = vpack.c.bf16 %v294_v6, %v293_v5 }
  0x27   : > { %713 = vst.msk [vmem:[#allocation2 + $0x24] sm:$0xf] %vm702_vm3, %v2019_v56  ;;  %714 = vst.msk [vmem:[#allocation2 + $0x28] sm:$0xf] %vm702_vm3, %v2020_v57  ;;  %v368_v2 = vshrl.u32 %v314_v36, 16  ;;  %v371_v4 = vshll.u32 %v314_v36, 16  ;;  %v318_v47 = vpack.c.bf16 %v296_v32, %v295_v27  ;;  %v320_v52 = vpack.c.bf16 %v300_v40, %v299_v39 }
  0x28   : > { %715 = vst.msk [vmem:[#allocation2 + $0x2c] sm:$0x1] %vm705_vm4, %v2021_v58  ;;  %v485_v7 = vsel %vm2376_vm2, 0, %v359_v59  ;;  %v363_v8 = vrot.slane %v361_v61, 7  ;;  %v375_v9 = vshrl.u32 %v2403_v37, 16  ;;  %v378_v10 = vshll.u32 %v2403_v37, 16 }
  0x29   : > { %v2022_v11 = vcombine.low %v485_v7, %v485_v7  ;;  %v2023_v12 = vcombine.high %v485_v7, %v485_v7  ;;  %718 = vst.msk [vmem:[#allocation2 + $0x38] sm:$0x1] %vm705_vm4, %v2024_v0  ;;  %v370_v13 = vrot.slane %v368_v2, 7  ;;  %v382_v22 = vshrl.u32 %v316_v14, 16  ;;  %v297_v33 = vld [vmem:[%s2362_s30 + $0xa0] sm:$0xff]  ;;  %v302_v7 = vld [vmem:[%s2362_s30 + $0xc8] sm:$0xff] }
  0x2a   : > { %v366_v15 = vor.u32 %v364_v1, %v363_v8  ;;  %v503_v16 = vsel %vm2376_vm2, %v363_v8, 0  ;;  %v377_v17 = vrot.slane %v375_v9, 7  ;;  %v385_v43 = vshll.u32 %v316_v14, 16  ;;  %v301_v6 = vld [vmem:[%s2362_s30 + $0xc0] sm:$0xff]  ;;  %v306_v27 = vld [vmem:[%s2362_s30 + $0xe8] sm:$0xff] }
  0x2b   : > { %716 = vst.msk [vmem:[#allocation2 + $0x30] sm:$0xf] %vm702_vm3, %v2022_v11  ;;  %717 = vst.msk [vmem:[#allocation2 + $0x34] sm:$0xf] %vm702_vm3, %v2023_v12  ;;  %v2027_v19 = vcombine.low %v503_v16, %v503_v16  ;;  %v373_v20 = vor.u32 %v371_v4, %v370_v13  ;;  %v504_v21 = vsel %vm2376_vm2, %v370_v13, 0  ;;  %v384_v38 = vrot.slane %v382_v22, 7 }
  0x2c   : > { %v486_v23 = vsel %vm2376_vm2, 0, %v366_v15  ;;  %v2030_v24 = vcombine.low %v504_v21, %v504_v21  ;;  %v380_v25 = vor.u32 %v378_v10, %v377_v17  ;;  %v505_v26 = vsel %vm2376_vm2, %v377_v17, 0  ;;  %v304_v21 = vld [vmem:[%s2362_s30 + $0xd8] sm:$0xff]  ;;  %v305_v22 = vld [vmem:[%s2362_s30 + $0xe0] sm:$0xff] }
  0x2d   : > { %v2025_v28 = vcombine.low %v486_v23, %v486_v23  ;;  %v2026_v29 = vcombine.high %v486_v23, %v486_v23  ;;  %721 = vst.msk [vmem:[#allocation2 + $0x44] sm:$0x1] %vm705_vm4, %v2027_v19  ;;  %v487_v30 = vsel %vm2376_vm2, 0, %v373_v20  ;;  %v2033_v31 = vcombine.low %v505_v26, %v505_v26  ;;  %v303_v20 = vld [vmem:[%s2362_s30 + $0xd0] sm:$0xff] }
  0x2e   : > { %v2028_v35 = vcombine.low %v487_v30, %v487_v30  ;;  %v2029_v36 = vcombine.high %v487_v30, %v487_v30  ;;  %724 = vst.msk [vmem:[#allocation2 + $0x50] sm:$0x1] %vm705_vm4, %v2030_v24  ;;  %v488_v37 = vsel %vm2376_vm2, 0, %v380_v25  ;;  %v389_v44 = vshrl.u32 %v317_v18, 16 }
  0x2f   : > { %719 = vst.msk [vmem:[#allocation2 + $0x3c] sm:$0xf] %vm702_vm3, %v2025_v28  ;;  %720 = vst.msk [vmem:[#allocation2 + $0x40] sm:$0xf] %vm702_vm3, %v2026_v29  ;;  %v2031_v41 = vcombine.low %v488_v37, %v488_v37  ;;  %v2032_v42 = vcombine.high %v488_v37, %v488_v37  ;;  %v506_v45 = vsel %vm2376_vm2, %v384_v38, 0  ;;  %v392_v46 = vshll.u32 %v317_v18, 16 }
  0x30   : > { %727 = vst.msk [vmem:[#allocation2 + $0x5c] sm:$0x1] %vm705_vm4, %v2033_v31  ;;  %v319_v48 = vpack.c.bf16 %v298_v34, %v297_v33  ;;  %v387_v49 = vor.u32 %v385_v43, %v384_v38  ;;  %v2036_v50 = vcombine.low %v506_v45, %v506_v45  ;;  %v391_v51 = vrot.slane %v389_v44, 7  ;;  %v307_v28 = vld [vmem:[%s2362_s30 + $0xf0] sm:$0xff]  ;;  %v308_v29 = vld [vmem:[%s2362_s30 + $0xf8] sm:$0xff] }
  0x31   : > { %722 = vst.msk [vmem:[#allocation2 + $0x48] sm:$0xf] %vm702_vm3, %v2028_v35  ;;  %723 = vst.msk [vmem:[#allocation2 + $0x4c] sm:$0xf] %vm702_vm3, %v2029_v36  ;;  %v396_v53 = vshrl.u32 %v318_v47, 16  ;;  %v399_v54 = vshll.u32 %v318_v47, 16  ;;  %v321_v19 = vpack.c.bf16 %v302_v7, %v301_v6  ;;  %v322_v37 = vpack.c.bf16 %v304_v21, %v303_v20 }
  0x32   : > { %725 = vst.msk [vmem:[#allocation2 + $0x54] sm:$0xf] %vm702_vm3, %v2031_v41  ;;  %726 = vst.msk [vmem:[#allocation2 + $0x58] sm:$0xf] %vm702_vm3, %v2032_v42  ;;  %v403_v55 = vshrl.u32 %v319_v48, 16  ;;  %v406_v56 = vshll.u32 %v319_v48, 16  ;;  %v394_v58 = vor.u32 %v392_v46, %v391_v51  ;;  %v323_v38 = vpack.c.bf16 %v306_v27, %v305_v22 }
  0x33   : > { %v489_v57 = vsel %vm2376_vm2, 0, %v387_v49  ;;  %730 = vst.msk [vmem:[#allocation2 + $0x68] sm:$0x1] %vm705_vm4, %v2036_v50  ;;  %v507_v59 = vsel %vm2376_vm2, %v391_v51, 0  ;;  %v410_v60 = vshrl.u32 %v320_v52, 16  ;;  %v398_v0 = vrot.slane %v396_v53, 7 }
  0x34   : > { %v2034_v61 = vcombine.low %v489_v57, %v489_v57  ;;  %v2035_v62 = vcombine.high %v489_v57, %v489_v57  ;;  %v2039_v63 = vcombine.low %v507_v59, %v507_v59  ;;  %v490_v1 = vsel %vm2376_vm2, 0, %v394_v58 }
  0x35   : > { %v405_v2 = vrot.slane %v403_v55, 7  ;;  %v412_v4 = vrot.slane %v410_v60, 7  ;;  %v413_v5 = vshll.u32 %v320_v52, 16  ;;  %v2037_v8 = vcombine.low %v490_v1, %v490_v1 }
  0x36   : > { %728 = vst.msk [vmem:[#allocation2 + $0x60] sm:$0xf] %vm702_vm3, %v2034_v61  ;;  %729 = vst.msk [vmem:[#allocation2 + $0x64] sm:$0xf] %vm702_vm3, %v2035_v62  ;;  %v2038_v9 = vcombine.high %v490_v1, %v490_v1  ;;  %v401_v10 = vor.u32 %v399_v54, %v398_v0  ;;  %v508_v11 = vsel %vm2376_vm2, %v398_v0, 0  ;;  %v417_v35 = vshrl.u32 %v321_v19, 16 }
  0x37   : > { %733 = vst.msk [vmem:[#allocation2 + $0x74] sm:$0x1] %vm705_vm4, %v2039_v63  ;;  %v2042_v12 = vcombine.low %v508_v11, %v508_v11  ;;  %v408_v13 = vor.u32 %v406_v56, %v405_v2  ;;  %v509_v14 = vsel %vm2376_vm2, %v405_v2, 0  ;;  %v415_v15 = vor.u32 %v413_v5, %v412_v4 }
  0x38   : > { %731 = vst.msk [vmem:[#allocation2 + $0x6c] sm:$0xf] %vm702_vm3, %v2037_v8  ;;  %732 = vst.msk [vmem:[#allocation2 + $0x70] sm:$0xf] %vm702_vm3, %v2038_v9  ;;  %v491_v16 = vsel %vm2376_vm2, 0, %v401_v10  ;;  %v2045_v17 = vcombine.low %v509_v14, %v509_v14  ;;  %v510_v18 = vsel %vm2376_vm2, %v412_v4, 0  ;;  %v324_v39 = vpack.c.bf16 %v308_v29, %v307_v28 }
  0x39   : > { %v2040_v23 = vcombine.low %v491_v16, %v491_v16  ;;  %v2041_v24 = vcombine.high %v491_v16, %v491_v16  ;;  %736 = vst.msk [vmem:[#allocation2 + $0x80] sm:$0x1] %vm705_vm4, %v2042_v12  ;;  %v492_v25 = vsel %vm2376_vm2, 0, %v408_v13  ;;  %v493_v26 = vsel %vm2376_vm2, 0, %v415_v15 }
  0x3a   : > { %v2043_v30 = vcombine.low %v492_v25, %v492_v25  ;;  %v2044_v31 = vcombine.high %v492_v25, %v492_v25  ;;  %739 = vst.msk [vmem:[#allocation2 + $0x8c] sm:$0x1] %vm705_vm4, %v2045_v17  ;;  %v2046_v32 = vcombine.low %v493_v26, %v493_v26  ;;  %v2047_v33 = vcombine.high %v493_v26, %v493_v26 }
  0x3b   : > { %734 = vst.msk [vmem:[#allocation2 + $0x78] sm:$0xf] %vm702_vm3, %v2040_v23  ;;  %735 = vst.msk [vmem:[#allocation2 + $0x7c] sm:$0xf] %vm702_vm3, %v2041_v24  ;;  %v2048_v34 = vcombine.low %v510_v18, %v510_v18  ;;  %v420_v36 = vshll.u32 %v321_v19, 16  ;;  %v419_v40 = vrot.slane %v417_v35, 7 }
  0x3c   : > { %737 = vst.msk [vmem:[#allocation2 + $0x84] sm:$0xf] %vm702_vm3, %v2043_v30  ;;  %738 = vst.msk [vmem:[#allocation2 + $0x88] sm:$0xf] %vm702_vm3, %v2044_v31  ;;  %v424_v41 = vshrl.u32 %v322_v37, 16  ;;  %v427_v42 = vshll.u32 %v322_v37, 16 }
  0x3d   : > { %740 = vst.msk [vmem:[#allocation2 + $0x90] sm:$0xf] %vm702_vm3, %v2046_v32  ;;  %741 = vst.msk [vmem:[#allocation2 + $0x94] sm:$0xf] %vm702_vm3, %v2047_v33  ;;  %v431_v43 = vshrl.u32 %v323_v38, 16  ;;  %v434_v44 = vshll.u32 %v323_v38, 16  ;;  %v422_v46 = vor.u32 %v420_v36, %v419_v40 }
  0x3e   : > { %742 = vst.msk [vmem:[#allocation2 + $0x98] sm:$0x1] %vm705_vm4, %v2048_v34  ;;  %v438_v45 = vshrl.u32 %v324_v39, 16  ;;  %v511_v47 = vsel %vm2376_vm2, %v419_v40, 0  ;;  %v426_v48 = vrot.slane %v424_v41, 7  ;;  %v441_v49 = vshll.u32 %v324_v39, 16 }
  0x3f   : > { %v2051_v50 = vcombine.low %v511_v47, %v511_v47  ;;  %v433_v51 = vrot.slane %v431_v43, 7  ;;  %v494_v53 = vsel %vm2376_vm2, 0, %v422_v46 }
  0x40   : > { %v440_v52 = vrot.slane %v438_v45, 7  ;;  %v429_v54 = vor.u32 %v427_v42, %v426_v48  ;;  %v512_v55 = vsel %vm2376_vm2, %v426_v48, 0  ;;  %v2049_v56 = vcombine.low %v494_v53, %v494_v53 }
  0x41   : > { %v2050_v57 = vcombine.high %v494_v53, %v494_v53  ;;  %745 = vst.msk [vmem:[#allocation2 + $0xa4] sm:$0x1] %vm705_vm4, %v2051_v50  ;;  %v2054_v58 = vcombine.low %v512_v55, %v512_v55  ;;  %v436_v59 = vor.u32 %v434_v44, %v433_v51  ;;  %v513_v61 = vsel %vm2376_vm2, %v433_v51, 0 }
  0x42   : > { %v495_v60 = vsel %vm2376_vm2, 0, %v429_v54  ;;  %v443_v62 = vor.u32 %v441_v49, %v440_v52  ;;  %v514_v63 = vsel %vm2376_vm2, %v440_v52, 0  ;;  %743 = vst.msk [vmem:[#allocation2 + $0x9c] sm:$0xf] %vm702_vm3, %v2049_v56  ;;  %v2057_v4 = vcombine.low %v513_v61, %v513_v61 }
  0x43   : > { %744 = vst.msk [vmem:[#allocation2 + $0xa0] sm:$0xf] %vm702_vm3, %v2050_v57  ;;  %v2052_v0 = vcombine.low %v495_v60, %v495_v60  ;;  %v2053_v1 = vcombine.high %v495_v60, %v495_v60  ;;  %v496_v2 = vsel %vm2376_vm2, 0, %v436_v59  ;;  %v2060_v8 = vcombine.low %v514_v63, %v514_v63 }
  0x44   : > { %748 = vst.msk [vmem:[#allocation2 + $0xb0] sm:$0x1] %vm705_vm4, %v2054_v58  ;;  %v2055_v5 = vcombine.low %v496_v2, %v496_v2  ;;  %v2056_v6 = vcombine.high %v496_v2, %v496_v2  ;;  %v497_v7 = vsel %vm2376_vm2, 0, %v443_v62  ;;  %751 = vst.msk [vmem:[#allocation2 + $0xbc] sm:$0x1] %vm705_vm4, %v2057_v4 }
  0x45   : > { %746 = vst.msk [vmem:[#allocation2 + $0xa8] sm:$0xf] %vm702_vm3, %v2052_v0  ;;  %747 = vst.msk [vmem:[#allocation2 + $0xac] sm:$0xf] %vm702_vm3, %v2053_v1  ;;  %v2058_v9 = vcombine.low %v497_v7, %v497_v7  ;;  %v2059_v10 = vcombine.high %v497_v7, %v497_v7 }
  0x46   : > { %749 = vst.msk [vmem:[#allocation2 + $0xb4] sm:$0xf] %vm702_vm3, %v2055_v5  ;;  %750 = vst.msk [vmem:[#allocation2 + $0xb8] sm:$0xf] %vm702_vm3, %v2056_v6 }
  0x47   : > { %754 = vst.msk [vmem:[#allocation2 + $0xc8] sm:$0x1] %vm705_vm4, %v2060_v8 }
  0x48   : > { %752 = vst.msk [vmem:[#allocation2 + $0xc0] sm:$0xf] %vm702_vm3, %v2058_v9  ;;  %753 = vst.msk [vmem:[#allocation2 + $0xc4] sm:$0xf] %vm702_vm3, %v2059_v10 }
  0x49 PF: > { %s2142_s15 = smul.u32 96, %s2268_s18  ;;  %vm1011_vm5 = vcmask 1042432   ;;  %v2236_v3 = vld [vmem:[%s3249_s1 + $0x38] sm:$0xff]   ;;  %vm1012_vm6 = vcmask 1046532   ;;  %v2287_v11 = vmov 0   ;;  %s2288_s18 = smov 48  }
  0x4a   : > { %2159 = vmatprep.subr.bf16.mxu1 %v2287_v11  ;;  %1571 = vmatprep.subr.bf16.mxu0 %v2287_v11  ;;  %vm792_vm7 = vsmask.f32 3328  ;;  %vm793_vm8 = vsmask.f32 7440  ;;  %vm2585_vm9 = vmor %vm1011_vm5, %vm1012_vm6  ;;  %v2237_v57 = vld [vmem:[%s3249_s1 + $0x30] sm:$0xff]   ;;  %s2289_s27 = smov 32  }
  0x4b   : > { %s2543_s19 = scalar_lea.vmem [#allocation2], %s2142_s15  ;;  %2168 = vmatpush1.bf16.msra.mxu1 %v2236_v3  ;;  %1572 = vmatpush1.bf16.msra.mxu0 %v2236_v3  ;;  %v2238_v2 = vld [vmem:[%s3249_s1 + $0x28] sm:$0xff]   ;;  %vm2640_vm10 = vmor %vm792_vm7, %vm793_vm8  ;;  %s2290_s7 = smov 16   ;;  %vm1340_vm11 = vcmask 130048   ;;  %vm1365_vm12 = vcmask 261120   ;;  %vm1382_vm13 = vcmask 392192  }
  0x4c   : > { %2160 = vmatprep.subr.bf16.mxu1 %v2287_v11  ;;  %1573 = vmatprep.subr.bf16.mxu0 %v2287_v11  ;;  %s2291_s10 = smov 64   ;;  %s2292_s17 = smov 80   ;;  %vm1399_vm14 = vcmask 523264   ;;  %vm1416_vm15 = vcmask 654336   ;;  %vm1433_vm0 = vcmask 785408   ;;  %vm1450_vm1 = vcmask 916480  }
  0x4d   : > { %s2293_s25 = smov 96   ;;  %s2294_s6 = smov 112   ;;  %vm1730_vm2 = vcmask 64512   ;;  %vm1843_vm3 = vcmask 27648  }
  0x4e   : > { %s2295_s8 = smov 120  }
  0x4f   : > { %v2546_v12 = vld [vmem:[%s2543_s19 + $0x3c] sm:$0xf]  ;;  %v2549_v13 = vld [vmem:[%s2543_s19 + $0x40] sm:$0xf]  ;;  %v2552_v14 = vld [vmem:[%s2543_s19 + $0xc] sm:$0xf]  ;;  %2169 = vmatpush1.bf16.msra.mxu1 %v2237_v57  ;;  %1574 = vmatpush1.bf16.msra.mxu0 %v2237_v57 }
  0x50   : > { %v929_v15 = vshrl.u32 %v2549_v13, 16  ;;  %v2557_v16 = vcombine.low %v2546_v12, %v2549_v13  ;;  %v916_v17 = vshrl.u32 %v2546_v12, 16  ;;  %v919_v18 = vshll.u32 %v2546_v12, 16  ;;  %v2562_v19 = vld [vmem:[%s2543_s19 + $0x10] sm:$0xf]  ;;  %2161 = vmatprep.subr.bf16.mxu1 %v2287_v11  ;;  %1575 = vmatprep.subr.bf16.mxu0 %v2287_v11 }
  0x51   : > { %v829_v20 = vshll.u32 %v2562_v19, 16  ;;  %v833_v21 = vshrl.u32 %v2562_v19, 16  ;;  %v2570_v22 = vcombine.low %v2552_v14, %v2562_v19  ;;  %v820_v23 = vshrl.u32 %v2552_v14, 16  ;;  %v2574_v24 = vld [vmem:[%s2543_s19] sm:$0xf] }
  0x52   : > { %1253 = vrot.lane.b32.xlu1 %v2557_v16, %s2288_s18  ;;  %v823_v25 = vshll.u32 %v2552_v14, 16  ;;  %v2580_v26 = vld [vmem:[%s2543_s19 + $0x4] sm:$0xf]  ;;  %v764_v27 = vld [vmem:[%s2543_s19 + $0x8] sm:$0x1]  ;;  %v2064_v29 = vrot.slane %v2574_v24, 9 }
  0x53   : > { %v2590_v30 = vrot.slane %v833_v21, 4  ;;  %1245 = vrot.lane.b32.xlu0 %v2570_v22, %s2288_s18  ;;  %v2594_v31 = vrot.slane %v820_v23, 4  ;;  %v1016_v32 = vrot.slane %v2580_v26, 5  ;;  %v1019_v33 = vrot.slane %v764_v27, 5  ;;  %v2598_v34 = vld [vmem:[%s2543_s19 + $0x30] sm:$0xf]  ;;  %2170 = vmatpush1.bf16.msra.mxu1 %v2238_v2 }
  0x54   : > { %v2600_v35 = vrot.slane %v823_v25, 5  ;;  %v2603_v36 = vld [vmem:[%s2543_s19 + $0x34] sm:$0xf]  ;;  %v2606_v37 = vld [vmem:[%s2543_s19 + $0x38] sm:$0x1]  ;;  %v2068_v38 = vrot.slane %v2598_v34, 9  ;;  %v2074_v39 = vcombine.low %v2574_v24, %v2580_v26  ;;  %2162 = vmatprep.subr.bf16.mxu1 %v2287_v11  ;;  %1576 = vmatpush1.bf16.msra.mxu0 %v2238_v2 }
  0x55   : > { %v1017_v40 = vsel %vm2585_vm9, %v2064_v29, %v1016_v32  ;;  %v1018_v41 = vrot.slane %v1016_v32, 4  ;;  %v1044_v42 = vrot.slane %v2603_v36, 5  ;;  %v1047_v43 = vrot.slane %v2606_v37, 5  ;;  %v2624_v56 = vld [vmem:[%s2543_s19 + $0x44] sm:$0x1]  ;;  %1577 = vmatprep.subr.bf16.mxu0 %v2287_v11 }
  0x56   : > { %v796_v44 = vshrl.u32 %v2574_v24, 16  ;;  %v799_v45 = vshll.u32 %v2574_v24, 16  ;;  %v805_v46 = vshll.u32 %v2580_v26, 16  ;;  %v809_v47 = vshrl.u32 %v2580_v26, 16 }
  0x57   : > { %v1020_v48 = vsel %vm2585_vm9, %v1018_v41, %v1019_v33  ;;  %v1045_v49 = vsel %vm2585_vm9, %v2068_v38, %v1044_v42  ;;  %v1046_v50 = vrot.slane %v1044_v42, 4  ;;  %v815_v51 = vshll.u32 %v764_v27, 16  ;;  %v2239_v33 = vld [vmem:[%s3249_s1 + $0x20] sm:$0xff]  }
  0x58   : > { %v2090_v52 = vcombine.low %v1017_v40, %v1020_v48  ;;  %v798_v53 = vrot.slane %v796_v44, 4  ;;  %v801_v54 = vrot.slane %v799_v45, 5  ;;  %v807_v55 = vrot.slane %v805_v46, 5  ;;  %2171 = vmatpush1.bf16.msra.mxu1 %v2239_v33  ;;  %1578 = vmatpush1.bf16.msra.mxu0 %v2239_v33 }
  0x59   : > { %v1048_v58 = vsel %vm2585_vm9, %v1046_v50, %v1047_v43  ;;  %v811_v59 = vrot.slane %v809_v47, 4  ;;  %v817_v60 = vrot.slane %v815_v51, 5  ;;  %v918_v61 = vrot.slane %v916_v17, 4  ;;  %2163 = vmatprep.subr.bf16.mxu1 %v2287_v11  ;;  %1579 = vmatprep.subr.bf16.mxu0 %v2287_v11 }
  0x5a   : > { %1226 = vrot.lane.b32.xlu1 %v2090_v52, %s2289_s27  ;;  %v2632_v62 = vcombine.low %v1045_v49, %v1048_v58  ;;  %v802_v63 = vor.u32 %v801_v54, %v798_v53  ;;  %v921_v0 = vrot.slane %v919_v18, 5  ;;  %v925_v1 = vshll.u32 %v2549_v13, 16 }
  0x5b   : > { %v812_v5 = vor.u32 %v811_v59, %v807_v55  ;;  %v931_v6 = vrot.slane %v929_v15, 4  ;;  %v935_v7 = vshll.u32 %v2624_v56, 16  ;;  %v892_v8 = vshrl.u32 %v2598_v34, 16 }
  0x5c   : > { %v803_v9 = vrot.slane %v802_v63, 4  ;;  %v922_v10 = vor.u32 %v921_v0, %v918_v61  ;;  %v927_v3 = vrot.slane %v925_v1, 5  ;;  %v895_v17 = vshll.u32 %v2598_v34, 16 }
  0x5d   : > { %v813_v18 = vrot.slane %v812_v5, 4  ;;  %v937_v21 = vrot.slane %v935_v7, 5  ;;  %v894_v23 = vrot.slane %v892_v8, 4  ;;  %v901_v25 = vshll.u32 %v2603_v36, 16  ;;  %v2705_v5 = vld [vmem:[%s2543_s19 + $0x50] sm:$0x1] }
  0x5e   : > { %1234 = vrot.lane.b32.xlu1 %v2632_v62, %s2289_s27  ;;  %v808_v15 = vsel %vm2640_vm10, %v803_v9, %v807_v55  ;;  %v923_v27 = vrot.slane %v922_v10, 4  ;;  %v932_v29 = vor.u32 %v931_v6, %v927_v3  ;;  %v897_v32 = vrot.slane %v895_v17, 5  ;;  %v2679_v55 = vld [vmem:[%s2543_s19 + $0x48] sm:$0xf]  ;;  %v2713_v9 = vld [vmem:[%s2543_s19 + $0x18] sm:$0xf] }
  0x5f   : > { %v818_v38 = vsel %vm2640_vm10, %v813_v18, %v817_v60  ;;  %v903_v40 = vrot.slane %v901_v25, 5  ;;  %v905_v41 = vshrl.u32 %v2603_v36, 16  ;;  %v911_v42 = vshll.u32 %v2606_v37, 16  ;;  %v2670_v37 = vld [vmem:[%s2543_s19 + $0x14] sm:$0x1] }
  0x60   : > { %v2082_v43 = vcombine.low %v808_v15, %v818_v38  ;;  %v928_v44 = vsel %vm2640_vm10, %v923_v27, %v927_v3  ;;  %v933_v45 = vrot.slane %v932_v29, 4  ;;  %v898_v46 = vor.u32 %v897_v32, %v894_v23  ;;  %v2689_v60 = vld [vmem:[%s2543_s19 + $0x4c] sm:$0xf]  ;;  %v2242_v10 = vld [vmem:[%s3249_s1 + $0x10] sm:$0xff]  }
  0x61   : > { %v907_v47 = vrot.slane %v905_v41, 4  ;;  %v913_v48 = vrot.slane %v911_v42, 5  ;;  %v2069_v49 = vrot.slane %v2546_v12, 9  ;;  %v1051_v50 = vrot.slane %v2549_v13, 5  ;;  %v2240_v12 = vld [vmem:[%s3249_s1 + $0x18] sm:$0xff]   ;;  %v2243_v29 = vld [vmem:[%s3249_s1 + $0x8] sm:$0xff]  }
  0x62   : > { %1186 = vrot.lane.b32.xlu0 %v2082_v43, %s2290_s7  ;;  %v938_v51 = vsel %vm2640_vm10, %v933_v45, %v937_v21  ;;  %v899_v52 = vrot.slane %v898_v46, 4  ;;  %v1054_v53 = vrot.slane %v2624_v56, 5  ;;  %v826_v54 = vor.u32 %v2600_v35, %v2594_v31  ;;  %2172 = vmatpush1.bf16.msra.mxu1 %v2240_v12 }
  0x63   : > { %v2684_v13 = vcombine.low %v928_v44, %v938_v51  ;;  %v908_v57 = vor.u32 %v907_v47, %v903_v40  ;;  %v1052_v58 = vsel %vm2585_vm9, %v2069_v49, %v1051_v50  ;;  %v1053_v59 = vrot.slane %v1051_v50, 4  ;;  %2164 = vmatprep.subr.bf16.mxu1 %v2287_v11  ;;  %1580 = vmatpush1.bf16.msra.mxu0 %v2240_v12  ;;  %v2757_v50 = vld [vmem:[%s2543_s19 + $0x20] sm:$0x1] }
  0x64   : > { %v904_v31 = vsel %vm2640_vm10, %v899_v52, %v903_v40  ;;  %v827_v35 = vrot.slane %v826_v54, 4  ;;  %v831_v56 = vrot.slane %v829_v20, 5  ;;  %v839_v61 = vshll.u32 %v2670_v37, 16  ;;  %1581 = vmatprep.subr.bf16.mxu0 %v2287_v11 }
  0x65   : > { %1272 = vrot.lane.b32.xlu1 %v2684_v13, %s2291_s10  ;;  %v909_v63 = vrot.slane %v908_v57, 4  ;;  %v1055_v0 = vsel %vm2585_vm9, %v1053_v59, %v1054_v53  ;;  %v940_v1 = vshrl.u32 %v2679_v55, 16  ;;  %v943_v2 = vshll.u32 %v2679_v55, 16  ;;  %v2244_v59 = vld [vmem:[%s3249_s1] sm:$0xff]  }
  0x66   : > { %v2707_v20 = vcombine.low %v1052_v58, %v1055_v0  ;;  %v832_v6 = vsel %vm2640_vm10, %v827_v35, %v831_v56  ;;  %v836_v7 = vor.u32 %v2590_v30, %v831_v56  ;;  %v841_v8 = vrot.slane %v839_v61, 5  ;;  %v2727_v30 = vld [vmem:[%s2543_s19 + $0x1c] sm:$0xf]  ;;  %2173 = vmatpush1.bf16.msra.mxu1 %v2242_v10 }
  0x67   : > { %v914_v3 = vsel %vm2640_vm10, %v909_v63, %v913_v48  ;;  %v953_v17 = vshrl.u32 %v2689_v60, 16  ;;  %v2723_v18 = vcombine.low %v2679_v55, %v2689_v60  ;;  %v2065_v21 = vrot.slane %v2552_v14, 9  ;;  %2165 = vmatprep.subr.bf16.mxu1 %v2287_v11  ;;  %1582 = vmatpush1.bf16.msra.mxu0 %v2242_v10  ;;  %v2245_v10 = vld [vmem:[%s3249_s1 + $0x40] sm:$0xff]  }
  0x68   : > { %v2730_v23 = vcombine.low %v904_v31, %v914_v3  ;;  %v837_v25 = vrot.slane %v836_v7, 4  ;;  %v1023_v15 = vrot.slane %v2562_v19, 5  ;;  %v1026_v27 = vrot.slane %v2670_v37, 5  ;;  %1583 = vmatprep.subr.bf16.mxu0 %v2287_v11 }
  0x69   : > { %1291 = vrot.lane.b32.xlu1 %v2707_v20, %s2292_s17  ;;  %v942_v14 = vrot.slane %v940_v1, 4  ;;  %v945_v32 = vrot.slane %v943_v2, 5  ;;  %v949_v33 = vshll.u32 %v2689_v60, 16  ;;  %v955_v38 = vrot.slane %v953_v17, 4 }
  0x6a   : > { %1194 = vrot.lane.b32.xlu0 %v2730_v23, %s2290_s7  ;;  %v842_v19 = vsel %vm2640_vm10, %v837_v25, %v841_v8  ;;  %v1024_v40 = vsel %vm2585_vm9, %v2065_v21, %v1023_v15  ;;  %v1025_v41 = vrot.slane %v1023_v15, 4  ;;  %v959_v42 = vshll.u32 %v2705_v5, 16  ;;  %2174 = vmatpush1.bf16.msra.mxu1 %v2243_v29  ;;  %v2795_v21 = vld [vmem:[%s2543_s19 + $0x54] sm:$0xf]  ;;  %v2798_v25 = vld [vmem:[%s2543_s19 + $0x58] sm:$0xf] }
  0x6b   : > { %v2748_v43 = vcombine.low %v832_v6, %v842_v19  ;;  %v946_v44 = vor.u32 %v945_v32, %v942_v14  ;;  %v951_v45 = vrot.slane %v949_v33, 5  ;;  %v844_v46 = vshrl.u32 %v2713_v9, 16  ;;  %2166 = vmatprep.subr.bf16.mxu1 %v2287_v11  ;;  %1584 = vmatpush1.bf16.msra.mxu0 %v2243_v29  ;;  %v2820_v19 = vld [vmem:[%s2543_s19 + $0x60] sm:$0xf] }
  0x6c   : > { %v1027_v47 = vsel %vm2585_vm9, %v1025_v41, %v1026_v27  ;;  %v847_v48 = vshll.u32 %v2713_v9, 16  ;;  %v857_v49 = vshrl.u32 %v2727_v30, 16  ;;  %v961_v53 = vrot.slane %v959_v42, 5  ;;  %1585 = vmatprep.subr.bf16.mxu0 %v2287_v11  ;;  %v2824_v42 = vld [vmem:[%s2543_s19 + $0x28] sm:$0xf] }
  0x6d   : > { %1310 = vrot.lane.b32.xlu1 %v2723_v18, %s2293_s25  ;;  %v2762_v37 = vcombine.low %v1024_v40, %v1027_v47  ;;  %v947_v51 = vrot.slane %v946_v44, 4  ;;  %v956_v52 = vor.u32 %v955_v38, %v951_v45  ;;  %v846_v54 = vrot.slane %v844_v46, 4 }
  0x6e   : > { %1264 = vrot.lane.b32.xlu0 %v2748_v43, %s2291_s10  ;;  %v849_v12 = vrot.slane %v847_v48, 5  ;;  %v853_v57 = vshll.u32 %v2727_v30, 16  ;;  %v859_v58 = vrot.slane %v857_v49, 4  ;;  %v863_v56 = vshll.u32 %v2757_v50, 16  ;;  %2175 = vmatpush1.bf16.msra.mxu1 %v2244_v59  ;;  %v2832_v48 = vld [vmem:[%s2543_s19 + $0x64] sm:$0xf] }
  0x6f   : > { %v952_v31 = vsel %vm2640_vm10, %v947_v51, %v951_v45  ;;  %v957_v35 = vrot.slane %v956_v52, 4  ;;  %v2779_v1 = vcombine.low %v2713_v9, %v2727_v30  ;;  %2167 = vmatprep.subr.bf16.mxu1 %v2287_v11  ;;  %1586 = vmatpush1.bf16.msra.mxu0 %v2244_v59  ;;  %v1058_v29 = vrot.slane %v2689_v60, 5  ;;  %v2817_v60 = vld [vmem:[%s2543_s19 + $0x24] sm:$0xf] }
  0x70   : > { %v850_v61 = vor.u32 %v849_v12, %v846_v54  ;;  %v855_v63 = vrot.slane %v853_v57, 5  ;;  %v865_v8 = vrot.slane %v863_v56, 5  ;;  %1601 = vmatprep.subr.bf16.mxu0 %v2287_v11  ;;  %v964_v11 = vshrl.u32 %v2795_v21, 16 }
  0x71   : > { %v962_v0 = vsel %vm2640_vm10, %v957_v35, %v961_v53  ;;  %v967_v14 = vshll.u32 %v2795_v21, 16  ;;  %v973_v32 = vshll.u32 %v2798_v25, 16  ;;  %v977_v33 = vshrl.u32 %v2798_v25, 16 }
  0x72   : > { %1283 = vrot.lane.b32.xlu0 %v2762_v37, %s2292_s17  ;;  %v2783_v2 = vcombine.low %v952_v31, %v962_v0  ;;  %v851_v6 = vrot.slane %v850_v61, 4  ;;  %v860_v7 = vor.u32 %v859_v58, %v855_v63  ;;  %2176 = vmatpush2.bf16.msra.mxu1 %v2245_v10  ;;  %v2070_v38 = vrot.slane %v2679_v55, 9  ;;  %v2835_v55 = vld [vmem:[%s2543_s19 + $0x5c] sm:$0x1]  ;;  %v2856_v61 = vld [vmem:[%s2543_s19 + $0x68] sm:$0x1] }
  0x73   : > { %1602 = vmatpush2.bf16.msra.mxu0 %v2245_v10  ;;  %v1060_v40 = vrot.slane %v1058_v29, 4  ;;  %v1061_v41 = vrot.slane %v2705_v5, 5  ;;  %v1030_v44 = vrot.slane %v2727_v30, 5  ;;  %v966_v45 = vrot.slane %v964_v11, 4 }
  0x74   : > { %1329 = vrot.lane.b32.xlu1 %v2783_v2, %s2294_s6  ;;  %v856_v3 = vsel %vm2640_vm10, %v851_v6, %v855_v63  ;;  %v861_v17 = vrot.slane %v860_v7, 4  ;;  %v969_v46 = vrot.slane %v967_v14, 5  ;;  %v2829_v47 = vrot.slane %v973_v32, 5  ;;  %v2873_v14 = vld [vmem:[%s2543_s19 + $0x6c] sm:$0xf] }
  0x75   : > { %v979_v49 = vrot.slane %v977_v33, 4  ;;  %v868_v51 = vshrl.u32 %v2817_v60, 16  ;;  %v871_v5 = vshll.u32 %v2817_v60, 16  ;;  %v1071_v52 = vshrl.u32 %v2820_v19, 16 }
  0x76   : > { %1302 = vrot.lane.b32.xlu0 %v2779_v1, %s2293_s25  ;;  %v866_v15 = vsel %vm2640_vm10, %v861_v17, %v865_v8  ;;  %v1059_v30 = vsel %vm2585_vm9, %v2070_v38, %v1058_v29  ;;  %v881_v53 = vshrl.u32 %v2824_v42, 16  ;;  %v877_v54 = vshll.u32 %v2824_v42, 16  ;;  %v2864_v8 = vld [vmem:[%s2543_s19 + $0x2c] sm:$0x1] }
  0x77   : > { %v2804_v27 = vcombine.low %v856_v3, %v866_v15  ;;  %v1062_v12 = vsel %vm2585_vm9, %v1060_v40, %v1061_v41  ;;  %v2066_v57 = vrot.slane %v2713_v9, 9  ;;  %v1074_v58 = vshll.u32 %v2820_v19, 16  ;;  %v2884_v40 = vld [vmem:[%s2543_s19 + $0x70] sm:$0xf] }
  0x78   : > { %1196 = vrot.lane.b32.xlu1 %v2684_v13, %s2290_s7  ;;  %v1084_v59 = vshrl.u32 %v2832_v48, 16  ;;  %v1033_v31 = vrot.slane %v2757_v50, 5  ;;  %v970_v35 = vor.u32 %v969_v46, %v966_v45  ;;  %v983_v56 = vshll.u32 %v2835_v55, 16 }
  0x79   : > { %v980_v63 = vor.u32 %v979_v49, %v2829_v47  ;;  %v870_v0 = vrot.slane %v868_v51, 4  ;;  %v873_v9 = vrot.slane %v871_v5, 5  ;;  %v1073_v6 = vrot.slane %v1071_v52, 4 }
  0x7a   : > { %1321 = vrot.lane.b32.xlu0 %v2804_v27, %s2294_s6  ;;  %v2861_v7 = vcombine.low %v1059_v30, %v1062_v12  ;;  %v2866_v50 = vrot.slane %v877_v54, 5  ;;  %v883_v10 = vrot.slane %v881_v53, 4  ;;  %v1076_v3 = vrot.slane %v1074_v58, 5  ;;  %v2894_v54 = vld [vmem:[%s2543_s19 + $0x74] sm:$0x1] }
  0x7b   : > { %v1031_v17 = vsel %vm2585_vm9, %v2066_v57, %v1030_v44  ;;  %v1080_v15 = vshll.u32 %v2832_v48, 16  ;;  %v1086_v29 = vrot.slane %v1084_v59, 4  ;;  %v1090_v11 = vshll.u32 %v2856_v61, 16 }
  0x7c   : > { %1236 = vrot.lane.b32.xlu1 %v2707_v20, %s2289_s27  ;;  %v971_v32 = vrot.slane %v970_v35, 4  ;;  %v1077_v33 = vor.u32 %v1076_v3, %v1073_v6  ;;  %v2881_v38 = vcombine.low %v2598_v34, %v2603_v36  ;;  %v981_v41 = vrot.slane %v980_v63, 4  ;;  %2117 = vmatprep.mubr.msk.bf16.mxu1 %vm1340_vm11, %v2861_v7 }
  0x7d   : > { %v874_v45 = vor.u32 %v873_v9, %v870_v0  ;;  %v1082_v46 = vrot.slane %v1080_v15, 5  ;;  %v884_v49 = vor.u32 %v883_v10, %v2866_v50  ;;  %v887_v51 = vshll.u32 %v2864_v8, 16 }
  0x7e   : > { %1188 = vrot.lane.b32.xlu0 %v2748_v43, %s2290_s7  ;;  %v1032_v43 = vrot.slane %v1030_v44, 4  ;;  %v985_v44 = vrot.slane %v983_v56, 5  ;;  %v1078_v5 = vrot.slane %v1077_v33, 4  ;;  %v1105_v52 = vshrl.u32 %v2873_v14, 16 }
  0x7f   : > { %v1087_v30 = vor.u32 %v1086_v29, %v1082_v46  ;;  %v1092_v53 = vrot.slane %v1090_v11, 5  ;;  %v1108_v34 = vshll.u32 %v2873_v14, 16  ;;  %v1118_v36 = vshrl.u32 %v2884_v40, 16 }
  0x80   : > { %1255 = vrot.lane.b32.xlu1 %v2723_v18, %s2288_s18  ;;  %v2900_v12 = vcombine.low %v2795_v21, %v2798_v25  ;;  %v976_v58 = vsel %vm2640_vm10, %v971_v32, %v2829_v47  ;;  %v1083_v59 = vsel %vm2640_vm10, %v1078_v5, %v1082_v46  ;;  %v1107_v35 = vrot.slane %v1105_v52, 4 }
  0x81   : > { %v1110_v56 = vrot.slane %v1108_v34, 5  ;;  %v875_v63 = vrot.slane %v874_v45, 4  ;;  %v1114_v0 = vshll.u32 %v2884_v40, 16  ;;  %v1120_v9 = vrot.slane %v1118_v36, 4 }
  0x82   : > { %1228 = vrot.lane.b32.xlu0 %v2762_v37, %s2289_s27  ;;  %v1034_v37 = vsel %vm2585_vm9, %v1032_v43, %v1033_v31  ;;  %v986_v43 = vsel %vm2640_vm10, %v981_v41, %v985_v44  ;;  %v1088_v31 = vrot.slane %v1087_v30, 4  ;;  %v1124_v6 = vshll.u32 %v2894_v54, 16 }
  0x83   : > { %v2092_v57 = vcombine.low %v1031_v17, %v1034_v37  ;;  %v885_v10 = vrot.slane %v884_v49, 4  ;;  %v889_v47 = vrot.slane %v887_v51, 5  ;;  %v1111_v17 = vor.u32 %v1110_v56, %v1107_v35 }
  0x84   : > { %1274 = vrot.lane.b32.xlu1 %v2783_v2, %s2291_s10  ;;  %v1093_v3 = vsel %vm2640_vm10, %v1088_v31, %v1092_v53  ;;  %v2089_v15 = vcombine.low %v976_v58, %v986_v43  ;;  %v1116_v11 = vrot.slane %v1114_v0, 5  ;;  %v2925_v32 = vcombine.low %v2817_v60, %v2824_v42 }
  0x85   : > { %v2917_v29 = vcombine.low %v1083_v59, %v1093_v3  ;;  %v1112_v37 = vrot.slane %v1111_v17, 4  ;;  %2113 = vmatprep.mubr.msk.bf16.mxu0 %vm1340_vm11, %v2092_v57  ;;  %v1126_v41 = vrot.slane %v1124_v6, 5  ;;  %v880_v44 = vsel %vm2640_vm10, %v875_v63, %v2866_v50 }
  0x86   : > { %1247 = vrot.lane.b32.xlu0 %v2779_v1, %s2288_s18  ;;  %v1121_v33 = vor.u32 %v1120_v9, %v1116_v11  ;;  %v890_v45 = vsel %vm2640_vm10, %v885_v10, %v889_v47  ;;  %v1065_v50 = vrot.slane %v2798_v25, 5  ;;  %v2071_v30 = vrot.slane %v2795_v21, 9 }
  0x87   : > { %v1117_v46 = vsel %vm2640_vm10, %v1112_v37, %v1116_v11  ;;  %v2085_v51 = vcombine.low %v880_v44, %v890_v45  ;;  %v1068_v34 = vrot.slane %v2835_v55, 5  ;;  %v1037_v4 = vrot.slane %v2824_v42, 5 }
  0x88   : > { %1293 = vrot.lane.b32.xlu1 %v2861_v7, %s2292_s17  ;;  %v1122_v49 = vrot.slane %v1121_v33, 4  ;;  %v1067_v53 = vrot.slane %v1065_v50, 4  ;;  %v2067_v21 = vrot.slane %v2817_v60, 9  ;;  %v1040_v55 = vrot.slane %v2864_v8, 5 }
  0x89   : > { %v2098_v60 = vcombine.low %v2820_v19, %v2832_v48  ;;  %v1133_v58 = vrot.slane %v2884_v40, 5  ;;  %v2072_v59 = vrot.slane %v2820_v19, 9  ;;  %v1102_v31 = vrot.slane %v2856_v61, 5 }
  0x8a   : > { %1266 = vrot.lane.b32.xlu0 %v2804_v27, %s2291_s10  ;;  %v1127_v5 = vsel %vm2640_vm10, %v1122_v49, %v1126_v41  ;;  %v1069_v25 = vsel %vm2585_vm9, %v1067_v53, %v1068_v34  ;;  %v1038_v42 = vsel %vm2585_vm9, %v2067_v21, %v1037_v4  ;;  %v2073_v35 = vrot.slane %v2873_v14, 9 }
  0x8b   : > { %v2102_v52 = vcombine.low %v1117_v46, %v1127_v5  ;;  %v1136_v56 = vrot.slane %v2894_v54, 5  ;;  %v2101_v6 = vcombine.low %v2873_v14, %v2884_v40 }
  0x8c   : > { %1312 = vrot.lane.b32.xlu1 %v2900_v12, %s2293_s25  ;;  %v3003_v19 = vsel %vm2585_vm9, %v2073_v35, %v1133_v58 }
  0x8e   : > { %1285 = vrot.lane.b32.xlu0 %v2092_v57, %s2292_s17 }
  0x90   : > { %1331 = vrot.lane.b32.xlu1 %v2089_v15, %s2294_s6 }
  0x92   : > { %1304 = vrot.lane.b32.xlu0 %v2925_v32, %s2293_s25 }
  0x94   : > { %1198 = vrot.lane.b32.xlu1 %v2783_v2, %s2290_s7  ;;  %v1066_v2 = vsel %vm2585_vm9, %v2071_v30, %v1065_v50 }
  0x96   : > { %1323 = vrot.lane.b32.xlu0 %v2085_v51, %s2294_s6 }
  0x98   : > { %1238 = vrot.lane.b32.xlu1 %v2861_v7, %s2289_s27  ;;  %v1039_v7 = vrot.slane %v1037_v4, 4 }
  0x9a   : > { %1190 = vrot.lane.b32.xlu0 %v2804_v27, %s2290_s7  ;;  %v2960_v27 = vcombine.low %v1066_v2, %v1069_v25  ;;  %v1041_v36 = vsel %vm2585_vm9, %v1039_v7, %v1040_v55 }
  0x9b   : > { %v2973_v8 = vcombine.low %v1038_v42, %v1041_v36 }
  0x9c   : > { %1257 = vrot.lane.b32.xlu1 %v2900_v12, %s2288_s18 }
  0x9e   : > { %1230 = vrot.lane.b32.xlu0 %v2092_v57, %s2289_s27  ;;  %v1099_v57 = vrot.slane %v2832_v48, 5  ;;  %v1135_v48 = vrot.slane %v1133_v58, 4 }
  0xa0   : > { %1276 = vrot.lane.b32.xlu1 %v2089_v15, %s2291_s10  ;;  %v1101_v43 = vrot.slane %v1099_v57, 4  ;;  %v1100_v63 = vsel %vm2585_vm9, %v2072_v59, %v1099_v57  ;;  %v3007_v61 = vsel %vm2585_vm9, %v1135_v48, %v1136_v56 }
  0xa1   : > { %v2103_v54 = vcombine.low %v3003_v19, %v3007_v61 }
  0xa2   : > { %1249 = vrot.lane.b32.xlu0 %v2925_v32, %s2288_s18  ;;  %v1103_v0 = vsel %vm2585_vm9, %v1101_v43, %v1102_v31 }
  0xa3   : > { %v3013_v9 = vcombine.low %v1100_v63, %v1103_v0 }
  0xa4   : > { %1295 = vrot.lane.b32.xlu1 %v2960_v27, %s2292_s17 }
  0xa6   : > { %1268 = vrot.lane.b32.xlu0 %v2085_v51, %s2291_s10 }
  0xa8   : > { %1314 = vrot.lane.b32.xlu1 %v2098_v60, %s2293_s25 }
  0xaa   : > { %1287 = vrot.lane.b32.xlu0 %v2973_v8, %s2292_s17 }
  0xac   : > { %1333 = vrot.lane.b32.xlu1 %v2917_v29, %s2294_s6 }
  0xae   : > { %1306 = vrot.lane.b32.xlu0 %v2881_v38, %s2293_s25 }
  0xb0   : > { %1200 = vrot.lane.b32.xlu1 %v2089_v15, %s2290_s7 }
  0xb2   : > { %1325 = vrot.lane.b32.xlu0 %v2730_v23, %s2294_s6 }
  0xb4   : > { %1240 = vrot.lane.b32.xlu1 %v2960_v27, %s2289_s27 }
  0xb6   : > { %1192 = vrot.lane.b32.xlu0 %v2085_v51, %s2290_s7 }
  0xb8   : > { %1259 = vrot.lane.b32.xlu1 %v2098_v60, %s2288_s18 }
  0xba   : > { %1232 = vrot.lane.b32.xlu0 %v2973_v8, %s2289_s27 }
  0xbc   : > { %1278 = vrot.lane.b32.xlu1 %v2917_v29, %s2291_s10 }
  0xbe   : > { %1251 = vrot.lane.b32.xlu0 %v2881_v38, %s2288_s18 }
  0xc0   : > { %1297 = vrot.lane.b32.xlu1 %v3013_v9, %s2292_s17 }
  0xc2   : > { %1270 = vrot.lane.b32.xlu0 %v2730_v23, %s2291_s10 }
  0xc4   : > { %1316 = vrot.lane.b32.xlu1 %v2101_v6, %s2293_s25  ;;  %v1254_v28 = vpop.permute.xlu1 %1253 }
  0xc5   : > { %v1246_v47 = vpop.permute.xlu0 %1245 }
  0xc6   : > { %1289 = vrot.lane.b32.xlu0 %v2632_v62, %s2292_s17 }
  0xc8   : > { %1335 = vrot.lane.b32.xlu1 %v2102_v52, %s2294_s6 }
  0xca   : > { %1308 = vrot.lane.b32.xlu0 %v2557_v16, %s2293_s25 }
  0xcc   : > { %v1227_v10 = vpop.permute.xlu1 %1226 }
  0xce   : > { %1327 = vrot.lane.b32.xlu0 %v2684_v13, %s2294_s6 }
  0xd0   : > { %v1235_v14 = vpop.permute.xlu1 %1234 }
  0xd4   : > { %v1187_v40 = vpop.permute.xlu0 %1186 }
  0xd5   : > { %v1343_v41 = vsel %vm1340_vm11, %v2074_v39, %v1187_v40 }
  0xd6   : > { %v1367_v45 = vsel %vm1365_vm12, %v1343_v41, %v1227_v10 }
  0xd7   : > { %v1273_v3 = vpop.permute.xlu1 %1272  ;;  %v1384_v52 = vsel %vm1382_vm13, %v1367_v45, %v1246_v47 }
  0xdb   : > { %v1292_v23 = vpop.permute.xlu1 %1291 }
  0xdc   : > { %v1195_v17 = vpop.permute.xlu0 %1194 }
  0xdd   : > { %v1355_v15 = vsel %vm1340_vm11, %v2881_v38, %v1195_v17 }
  0xde   : > { %v1375_v29 = vsel %vm1365_vm12, %v1355_v15, %v1235_v14 }
  0xdf   : > { %v1392_v11 = vsel %vm1382_vm13, %v1375_v29, %v1254_v28  ;;  %v1311_v33 = vpop.permute.xlu1 %1310 }
  0xe0   : > { %v1265_v37 = vpop.permute.xlu0 %1264  ;;  %v1409_v13 = vsel %vm1399_vm14, %v1392_v11, %v1273_v3 }
  0xe1   : > { %v1426_v38 = vsel %vm1416_vm15, %v1409_v13, %v1292_v23  ;;  %v1401_v24 = vsel %vm1399_vm14, %v1384_v52, %v1265_v37 }
  0xe2   : > { %v1443_v46 = vsel %vm1433_vm0, %v1426_v38, %v1311_v33 }
  0xe4   : > { %v1284_v44 = vpop.permute.xlu0 %1283 }
  0xe5   : > { %v1418_v39 = vsel %vm1416_vm15, %v1401_v24, %v1284_v44 }
  0xe6   : > { %v1330_v49 = vpop.permute.xlu1 %1329 }
  0xe7   : > { %v1464_v51 = vsel %vm1450_vm1, %v1443_v46, %v1330_v49 }
  0xe8   : > { %v1303_v5 = vpop.permute.xlu0 %1302  ;;  %1636 = vmatmul.mubr.bf16.vlgmr.msra.gmra.mxu1 %v1464_v51 }
  0xe9   : > { %2118 = vmatprep.mubr.msk.bf16.mxu1 %vm1340_vm11, %v2960_v27  ;;  %v1435_v50 = vsel %vm1433_vm0, %v1418_v39, %v1303_v5 }
  0xea   : > { %v1197_v26 = vpop.permute.xlu1 %1196 }
  0xeb   : > { %v1358_v7 = vsel %vm1340_vm11, %v2557_v16, %v1197_v26 }
  0xec   : > { %v1322_v30 = vpop.permute.xlu0 %1321 }
  0xed   : > { %v1452_v53 = vsel %vm1450_vm1, %v1435_v50, %v1322_v30 }
  0xee   : > { %1604 = vmatmul.mubr.bf16.vlgmr.msra.gmra.mxu0 %v1452_v53  ;;  %v1237_v34 = vpop.permute.xlu1 %1236 }
  0xef   : > { %2114 = vmatprep.mubr.msk.bf16.mxu0 %vm1340_vm11, %v2973_v8  ;;  %v1377_v27 = vsel %vm1365_vm12, %v1358_v7, %v1237_v34 }
  0xf0   : > { %v1189_v4 = vpop.permute.xlu0 %1188 }
  0xf1   : > { %v1346_v35 = vsel %vm1340_vm11, %v2570_v22, %v1189_v4 }
  0xf2   : > { %v1256_v2 = vpop.permute.xlu1 %1255 }
  0xf3   : > { %v1394_v60 = vsel %vm1382_vm13, %v1377_v27, %v1256_v2 }
  0xf4   : > { %v1229_v25 = vpop.permute.xlu0 %1228 }
  0xf5   : > { %v1369_v56 = vsel %vm1365_vm12, %v1346_v35, %v1229_v25 }
  0xf6   : > { %v1275_v21 = vpop.permute.xlu1 %1274 }
  0xf7   : > { %v1411_v58 = vsel %vm1399_vm14, %v1394_v60, %v1275_v21 }
  0xf8   : > { %v1248_v55 = vpop.permute.xlu0 %1247 }
  0xf9   : > { %v1386_v63 = vsel %vm1382_vm13, %v1369_v56, %v1248_v55 }
  0xfa   : > { %v1294_v42 = vpop.permute.xlu1 %1293 }
  0xfb   : > { %v1428_v8 = vsel %vm1416_vm15, %v1411_v58, %v1294_v42 }
  0xfc   : > { %v1267_v36 = vpop.permute.xlu0 %1266 }
  0xfd   : > { %v1403_v0 = vsel %vm1399_vm14, %v1386_v63, %v1267_v36  ;;  %v3119_v63 = vld [vmem:[%s3251_s3] ss:$0 sm:$0xff] }
  0xfe   : > { %v1313_v57 = vpop.permute.xlu1 %1312 }
  0xff   : > { %v1445_v43 = vsel %vm1433_vm0, %v1428_v8, %v1313_v57 }
 0x100   : > { %v1286_v59 = vpop.permute.xlu0 %1285 }
 0x101   : > { %v1420_v28 = vsel %vm1416_vm15, %v1403_v0, %v1286_v59 }
 0x102   : > { %v1332_v31 = vpop.permute.xlu1 %1331 }
 0x103   : > { %v1467_v16 = vsel %vm1450_vm1, %v1445_v43, %v1332_v31 }
 0x104   : > { %v1305_v48 = vpop.permute.xlu0 %1304  ;;  %1644 = vmatmul.mubr.bf16.gmra.mxu1 %v1467_v16 }
 0x105   : > { %2119 = vmatprep.mubr.msk.bf16.mxu1 %vm1340_vm11, %v3013_v9  ;;  %v1437_v10 = vsel %vm1433_vm0, %v1420_v28, %v1305_v48 }
 0x106   : > { %v1199_v6 = vpop.permute.xlu1 %1198 }
 0x107   : > { %v1361_v9 = vsel %vm1340_vm11, %v2723_v18, %v1199_v6 }
 0x108   : > { %v1324_v47 = vpop.permute.xlu0 %1323 }
 0x109   : > { %v1455_v22 = vsel %vm1450_vm1, %v1437_v10, %v1324_v47 }
 0x10a   : > { %1612 = vmatmul.mubr.bf16.gmra.mxu0 %v1455_v22  ;;  %v1239_v14 = vpop.permute.xlu1 %1238 }
 0x10b   : > { %2115 = vmatprep.mubr.msk.bf16.mxu0 %vm1340_vm11, %v2632_v62  ;;  %v1379_v29 = vsel %vm1365_vm12, %v1361_v9, %v1239_v14 }
 0x10c   : > { %v1191_v40 = vpop.permute.xlu0 %1190 }
 0x10d   : > { %v1349_v46 = vsel %vm1340_vm11, %v2779_v1, %v1191_v40 }
 0x10e   : > { %v1258_v3 = vpop.permute.xlu1 %1257 }
 0x10f   : > { %v1396_v33 = vsel %vm1382_vm13, %v1379_v29, %v1258_v3 }
 0x110   : > { %v1231_v23 = vpop.permute.xlu0 %1230 }
 0x111   : > { %v1371_v49 = vsel %vm1365_vm12, %v1349_v46, %v1231_v23 }
 0x112   : > { %v1277_v17 = vpop.permute.xlu1 %1276 }
 0x113   : > { %v1413_v41 = vsel %vm1399_vm14, %v1396_v33, %v1277_v17 }
 0x114   : > { %v1250_v15 = vpop.permute.xlu0 %1249 }
 0x115   : > { %v1388_v5 = vsel %vm1382_vm13, %v1371_v49, %v1250_v15 }
 0x116   : > { %v1296_v11 = vpop.permute.xlu1 %1295 }
 0x117   : > { %v1430_v62 = vsel %vm1416_vm15, %v1413_v41, %v1296_v11 }
 0x118   : > { %v1269_v37 = vpop.permute.xlu0 %1268 }
 0x119   : > { %v1405_v52 = vsel %vm1399_vm14, %v1388_v5, %v1269_v37 }
 0x11a   : > { %v1315_v13 = vpop.permute.xlu1 %1314 }
 0x11b   : > { %v1447_v38 = vsel %vm1433_vm0, %v1430_v62, %v1315_v13 }
 0x11c   : > { %v1288_v44 = vpop.permute.xlu0 %1287 }
 0x11d   : > { %v1422_v26 = vsel %vm1416_vm15, %v1405_v52, %v1288_v44 }
 0x11e   : > { %v1334_v45 = vpop.permute.xlu1 %1333 }
 0x11f   : > { %v1470_v18 = vsel %vm1450_vm1, %v1447_v38, %v1334_v45 }
 0x120   : > { %v1307_v51 = vpop.permute.xlu0 %1306  ;;  %1652 = vmatmul.mubr.bf16.gmra.mxu1 %v1470_v18 }
 0x121   : > { %2120 = vmatprep.mubr.msk.bf16.mxu1 %vm1340_vm11, %v2103_v54  ;;  %v1439_v1 = vsel %vm1433_vm0, %v1422_v26, %v1307_v51 }
 0x122   : > { %v1201_v24 = vpop.permute.xlu1 %1200 }
 0x123   : > { %v1364_v54 = vsel %vm1340_vm11, %v2900_v12, %v1201_v24 }
 0x124   : > { %v1326_v39 = vpop.permute.xlu0 %1325 }
 0x125   : > { %v1458_v50 = vsel %vm1450_vm1, %v1439_v1, %v1326_v39 }
 0x126   : > { %1620 = vmatmul.mubr.bf16.gmra.mxu0 %v1458_v50  ;;  %v1241_v30 = vpop.permute.xlu1 %1240 }
 0x127   : > { %2116 = vmatprep.mubr.msk.bf16.mxu0 %vm1340_vm11, %v2707_v20  ;;  %v1381_v2 = vsel %vm1365_vm12, %v1364_v54, %v1241_v30 }
 0x128   : > { %v1193_v53 = vpop.permute.xlu0 %1192 }
 0x129   : > { %v1352_v57 = vsel %vm1340_vm11, %v2925_v32, %v1193_v53  ;;  %v3114_v32 = vld [vmem:[%s3250_s2] ss:$0 sm:$0xff] }
 0x12a   : > { %v1260_v34 = vpop.permute.xlu1 %1259 }
 0x12b   : > { %v1398_v7 = vsel %vm1382_vm13, %v1381_v2, %v1260_v34 }
 0x12c   : > { %v1233_v19 = vpop.permute.xlu0 %1232 }
 0x12d   : > { %v1373_v58 = vsel %vm1365_vm12, %v1352_v57, %v1233_v19 }
 0x12e   : > { %v1279_v61 = vpop.permute.xlu1 %1278 }
 0x12f   : > { %v1415_v27 = vsel %vm1399_vm14, %v1398_v7, %v1279_v61 }
 0x130   : > { %v1252_v4 = vpop.permute.xlu0 %1251 }
 0x131   : > { %v1390_v8 = vsel %vm1382_vm13, %v1373_v58, %v1252_v4 }
 0x132   : > { %v1298_v25 = vpop.permute.xlu1 %1297 }
 0x133   : > { %v1432_v20 = vsel %vm1416_vm15, %v1415_v27, %v1298_v25 }
 0x134   : > { %v1271_v21 = vpop.permute.xlu0 %1270 }
 0x135   : > { %v1407_v43 = vsel %vm1399_vm14, %v1390_v8, %v1271_v21 }
 0x136   : > { %v1317_v55 = vpop.permute.xlu1 %1316 }
 0x137   : > { %v1449_v36 = vsel %vm1433_vm0, %v1432_v20, %v1317_v55 }
 0x138   : > { %v1290_v42 = vpop.permute.xlu0 %1289 }
 0x139   : > { %v1424_v31 = vsel %vm1416_vm15, %v1407_v43, %v1290_v42 }
 0x13a   : > { %v1336_v60 = vpop.permute.xlu1 %1335 }
 0x13b   : > { %v1473_v12 = vsel %vm1450_vm1, %v1449_v36, %v1336_v60 }
 0x13c   : > { %v1309_v59 = vpop.permute.xlu0 %1308  ;;  %1660 = vmatmul.mubr.bf16.gmra.mxu1 %v1473_v12 }
 0x13d   : > { %v1441_v35 = vsel %vm1433_vm0, %v1424_v31, %v1309_v59 }
 0x140   : > { %v1328_v16 = vpop.permute.xlu0 %1327 }
 0x141   : > { %v1461_v56 = vsel %vm1450_vm1, %v1441_v35, %v1328_v16 }
 0x142   : > { %1628 = vmatmul.mubr.bf16.gmra.mxu0 %v1461_v56 }
 0x1a8   : > { %v1637_v48 = vpop.f32.mrf.mxu1 }
 0x1a9   : > { %v1683_v0 = vmul.f32 %v3114_v32, %v1637_v48 }
 0x1aa   : > { %v1639_v6 = vpop.f32.mrf.mxu1 }
 0x1ab   : > { %v1706_v28 = vadd.f32 %v3119_v63, %v1683_v0 }
 0x1ac   : > { %v1640_v10 = vpop.f32.mrf.mxu1 }
 0x1ad   : > { %v1722_v47 = vmax.f32 %v1706_v28, 0.0  ;;  %v1684_v22 = vmul.f32 %v3114_v32, %v1640_v10 }
 0x1ae   : > { %v1605_v14 = vpop.f32.mrf.mxu0  ;;  %v1642_v40 = vpop.f32.mrf.mxu1 }
 0x1af   : > { %1739 = vst.msk [vmem:[%s2367_s11 + $0x40] sm:$0xff] %vm1730_vm2, %v1722_v47  ;;  %v1675_v3 = vmul.f32 %v3114_v32, %v1605_v14  ;;  %v1707_v23 = vadd.f32 %v3119_v63, %v1684_v22  ;;  %v2151_v62 = vpack.c.bf16 %v1722_v47, %v1722_v47 }
 0x1b0   : > { %v1607_v17 = vpop.f32.mrf.mxu0 }
 0x1b1   : > { %v1698_v9 = vadd.f32 %v3119_v63, %v1675_v3  ;;  %v1723_v15 = vmax.f32 %v1707_v23, 0.0 }
 0x1b2   : > { %v1608_v29 = vpop.f32.mrf.mxu0 }
 0x1b3   : > { %v1714_v11 = vmax.f32 %v1698_v9, 0.0  ;;  %1740 = vst.msk [vmem:[%s2367_s11 + $0x48] sm:$0xff] %vm1730_vm2, %v1723_v15  ;;  %v1676_v37 = vmul.f32 %v3114_v32, %v1608_v29  ;;  %v2152_v45 = vpack.c.bf16 %v1723_v15, %v1723_v15 }
 0x1b4   : > { %v1610_v33 = vpop.f32.mrf.mxu0 }
 0x1b5   : > { %1731 = vst.msk [vmem:[%s2367_s11] sm:$0xff] %vm1730_vm2, %v1714_v11  ;;  %v1699_v13 = vadd.f32 %v3119_v63, %v1676_v37  ;;  %v2143_v41 = vpack.c.bf16 %v1714_v11, %v1714_v11 }
 0x1b7   : > { %v1715_v44 = vmax.f32 %v1699_v13, 0.0  ;;  %1795 = vrot.lane.b32.xlu0 %v2143_v41, %s2295_s8 }
 0x1b9   : > { %1732 = vst.msk [vmem:[%s2367_s11 + $0x8] sm:$0xff] %vm1730_vm2, %v1715_v44  ;;  %v2144_v38 = vpack.c.bf16 %v1715_v44, %v1715_v44 }
 0x1bb   : > { %1811 = vrot.lane.b32.xlu0 %v2151_v62, %s2295_s8  ;;  %1797 = vrot.lane.b32.xlu1 %v2144_v38, %s2295_s8 }
 0x1bf   : > { %1813 = vrot.lane.b32.xlu1 %v2152_v45, %s2295_s8 }
 0x1c4   : > { %v1645_v46 = vpop.f32.mrf.mxu1 }
 0x1c5   : > { %v1685_v18 = vmul.f32 %v3114_v32, %v1645_v46 }
 0x1c6   : > { %v1647_v49 = vpop.f32.mrf.mxu1 }
 0x1c7   : > { %v1708_v51 = vadd.f32 %v3119_v63, %v1685_v18 }
 0x1c8   : > { %v1648_v5 = vpop.f32.mrf.mxu1 }
 0x1c9   : > { %v1724_v52 = vmax.f32 %v1708_v51, 0.0  ;;  %v1686_v24 = vmul.f32 %v3114_v32, %v1648_v5 }
 0x1ca   : > { %v1613_v26 = vpop.f32.mrf.mxu0  ;;  %v1650_v1 = vpop.f32.mrf.mxu1 }
 0x1cb   : > { %1741 = vst.msk [vmem:[%s2367_s11 + $0x50] sm:$0xff] %vm1730_vm2, %v1724_v52  ;;  %v1677_v39 = vmul.f32 %v3114_v32, %v1613_v26  ;;  %v1709_v50 = vadd.f32 %v3119_v63, %v1686_v24  ;;  %v2153_v7 = vpack.c.bf16 %v1724_v52, %v1724_v52 }
 0x1cc   : > { %v1615_v30 = vpop.f32.mrf.mxu0 }
 0x1cd   : > { %v1700_v53 = vadd.f32 %v3119_v63, %v1677_v39  ;;  %v1725_v34 = vmax.f32 %v1709_v50, 0.0 }
 0x1ce   : > { %v1616_v19 = vpop.f32.mrf.mxu0 }
 0x1cf   : > { %v1716_v61 = vmax.f32 %v1700_v53, 0.0  ;;  %1742 = vst.msk [vmem:[%s2367_s11 + $0x58] sm:$0xff] %vm1730_vm2, %v1725_v34  ;;  %v1678_v54 = vmul.f32 %v3114_v32, %v1616_v19  ;;  %v2154_v27 = vpack.c.bf16 %v1725_v34, %v1725_v34 }
 0x1d0   : > { %v1618_v4 = vpop.f32.mrf.mxu0 }
 0x1d1   : > { %1733 = vst.msk [vmem:[%s2367_s11 + $0x10] sm:$0xff] %vm1730_vm2, %v1716_v61  ;;  %v1701_v2 = vadd.f32 %v3119_v63, %v1678_v54  ;;  %v2145_v25 = vpack.c.bf16 %v1716_v61, %v1716_v61 }
 0x1d3   : > { %v1717_v21 = vmax.f32 %v1701_v2, 0.0  ;;  %1799 = vrot.lane.b32.xlu0 %v2145_v25, %s2295_s8 }
 0x1d5   : > { %1734 = vst.msk [vmem:[%s2367_s11 + $0x18] sm:$0xff] %vm1730_vm2, %v1717_v21  ;;  %v2146_v55 = vpack.c.bf16 %v1717_v21, %v1717_v21 }
 0x1d7   : > { %1815 = vrot.lane.b32.xlu0 %v2153_v7, %s2295_s8  ;;  %1801 = vrot.lane.b32.xlu1 %v2146_v55, %s2295_s8 }
 0x1db   : > { %1817 = vrot.lane.b32.xlu1 %v2154_v27, %s2295_s8 }
 0x1e0   : > { %v1653_v42 = vpop.f32.mrf.mxu1 }
 0x1e1   : > { %v1687_v20 = vmul.f32 %v3114_v32, %v1653_v42 }
 0x1e2   : > { %v1655_v36 = vpop.f32.mrf.mxu1 }
 0x1e3   : > { %v1710_v60 = vadd.f32 %v3119_v63, %v1687_v20 }
 0x1e4   : > { %v1656_v57 = vpop.f32.mrf.mxu1 }
 0x1e5   : > { %v1726_v12 = vmax.f32 %v1710_v60, 0.0  ;;  %v1688_v58 = vmul.f32 %v3114_v32, %v1656_v57 }
 0x1e6   : > { %v1621_v59 = vpop.f32.mrf.mxu0  ;;  %v1658_v8 = vpop.f32.mrf.mxu1 }
 0x1e7   : > { %1743 = vst.msk [vmem:[%s2367_s11 + $0x60] sm:$0xff] %vm1730_vm2, %v1726_v12  ;;  %v1679_v43 = vmul.f32 %v3114_v32, %v1621_v59  ;;  %v1711_v31 = vadd.f32 %v3119_v63, %v1688_v58  ;;  %v2155_v14 = vpack.c.bf16 %v1726_v12, %v1726_v12 }
 0x1e8   : > { %v1623_v35 = vpop.f32.mrf.mxu0 }
 0x1e9   : > { %v1702_v16 = vadd.f32 %v3119_v63, %v1679_v43  ;;  %v1727_v56 = vmax.f32 %v1711_v31, 0.0 }
 0x1ea   : > { %v1624_v48 = vpop.f32.mrf.mxu0 }
 0x1eb   : > { %v1718_v0 = vmax.f32 %v1702_v16, 0.0  ;;  %1744 = vst.msk [vmem:[%s2367_s11 + $0x68] sm:$0xff] %vm1730_vm2, %v1727_v56  ;;  %v1680_v6 = vmul.f32 %v3114_v32, %v1624_v48  ;;  %v2156_v3 = vpack.c.bf16 %v1727_v56, %v1727_v56 }
 0x1ec   : > { %v1626_v28 = vpop.f32.mrf.mxu0 }
 0x1ed   : > { %1735 = vst.msk [vmem:[%s2367_s11 + $0x20] sm:$0xff] %vm1730_vm2, %v1718_v0  ;;  %v1703_v10 = vadd.f32 %v3119_v63, %v1680_v6  ;;  %v2147_v47 = vpack.c.bf16 %v1718_v0, %v1718_v0 }
 0x1ef   : > { %v1719_v22 = vmax.f32 %v1703_v10, 0.0  ;;  %1803 = vrot.lane.b32.xlu0 %v2147_v47, %s2295_s8 }
 0x1f1   : > { %1736 = vst.msk [vmem:[%s2367_s11 + $0x28] sm:$0xff] %vm1730_vm2, %v1719_v22  ;;  %v2148_v40 = vpack.c.bf16 %v1719_v22, %v1719_v22 }
 0x1f3   : > { %1819 = vrot.lane.b32.xlu0 %v2155_v14, %s2295_s8  ;;  %1805 = vrot.lane.b32.xlu1 %v2148_v40, %s2295_s8 }
 0x1f7   : > { %1821 = vrot.lane.b32.xlu1 %v2156_v3, %s2295_s8 }
 0x1fc   : > { %v1661_v23 = vpop.f32.mrf.mxu1 }
 0x1fd   : > { %v1689_v17 = vmul.f32 %v3114_v32, %v1661_v23 }
 0x1fe   : > { %v1663_v9 = vpop.f32.mrf.mxu1 }
 0x1ff   : > { %v1712_v15 = vadd.f32 %v3119_v63, %v1689_v17 }
 0x200   : > { %v1664_v29 = vpop.f32.mrf.mxu1 }
 0x201   : > { %v1728_v11 = vmax.f32 %v1712_v15, 0.0  ;;  %v1690_v37 = vmul.f32 %v3114_v32, %v1664_v29 }
 0x202   : > { %v1629_v33 = vpop.f32.mrf.mxu0  ;;  %v1666_v13 = vpop.f32.mrf.mxu1 }
 0x203   : > { %1745 = vst.msk [vmem:[%s2367_s11 + $0x70] sm:$0xff] %vm1730_vm2, %v1728_v11  ;;  %v1681_v41 = vmul.f32 %v3114_v32, %v1629_v33  ;;  %v1713_v44 = vadd.f32 %v3119_v63, %v1690_v37  ;;  %v2157_v26 = vpack.c.bf16 %v1728_v11, %v1728_v11 }
 0x204   : > { %v1631_v62 = vpop.f32.mrf.mxu0 }
 0x205   : > { %v1704_v38 = vadd.f32 %v3119_v63, %v1681_v41  ;;  %v1729_v45 = vmax.f32 %v1713_v44, 0.0 }
 0x206   : > { %v1632_v46 = vpop.f32.mrf.mxu0 }
 0x207   : > { %v1720_v18 = vmax.f32 %v1704_v38, 0.0  ;;  %1746 = vst.msk [vmem:[%s2367_s11 + $0x78] sm:$0xff] %vm1730_vm2, %v1729_v45  ;;  %v1682_v49 = vmul.f32 %v3114_v32, %v1632_v46  ;;  %v2158_v32 = vpack.c.bf16 %v1729_v45, %v1729_v45 }
 0x208   : > { %v1634_v51 = vpop.f32.mrf.mxu0 }
 0x209   : > { %1737 = vst.msk [vmem:[%s2367_s11 + $0x30] sm:$0xff] %vm1730_vm2, %v1720_v18  ;;  %v1705_v5 = vadd.f32 %v3119_v63, %v1682_v49  ;;  %v2149_v52 = vpack.c.bf16 %v1720_v18, %v1720_v18 }
 0x20b   : > { %v1721_v24 = vmax.f32 %v1705_v5, 0.0  ;;  %1807 = vrot.lane.b32.xlu0 %v2149_v52, %s2295_s8 }
 0x20d   : > { %1738 = vst.msk [vmem:[%s2367_s11 + $0x38] sm:$0xff] %vm1730_vm2, %v1721_v24  ;;  %v2150_v1 = vpack.c.bf16 %v1721_v24, %v1721_v24 }
 0x20f   : > { %1823 = vrot.lane.b32.xlu0 %v2157_v26, %s2295_s8  ;;  %1809 = vrot.lane.b32.xlu1 %v2150_v1, %s2295_s8 }
 0x213   : > { %1825 = vrot.lane.b32.xlu1 %v2158_v32, %s2295_s8 }
 0x229   : > { %v1796_v63 = vpop.permute.xlu0 %1795 }
 0x22a   : > { %1844 = vst.msk [vmem:[%s2372_s14] sm:$0xf] %vm1843_vm3, %v1796_v63 }
 0x22d   : > { %v1798_v39 = vpop.permute.xlu1 %1797  ;;  %v1812_v50 = vpop.permute.xlu0 %1811 }
 0x22e   : > { %1845 = vst.msk [vmem:[%s2372_s14 + $0x4] sm:$0xf] %vm1843_vm3, %v1798_v39  ;;  %1852 = vst.msk [vmem:[%s2372_s14 + $0x20] sm:$0xf] %vm1843_vm3, %v1812_v50 }
 0x231   : > { %v1814_v30 = vpop.permute.xlu1 %1813 }
 0x232   : > { %1853 = vst.msk [vmem:[%s2372_s14 + $0x24] sm:$0xf] %vm1843_vm3, %v1814_v30 }
 0x245   : > { %v1800_v53 = vpop.permute.xlu0 %1799 }
 0x246   : > { %1846 = vst.msk [vmem:[%s2372_s14 + $0x8] sm:$0xf] %vm1843_vm3, %v1800_v53 }
 0x249   : > { %v1802_v34 = vpop.permute.xlu1 %1801  ;;  %v1816_v19 = vpop.permute.xlu0 %1815 }
 0x24a   : > { %1847 = vst.msk [vmem:[%s2372_s14 + $0xc] sm:$0xf] %vm1843_vm3, %v1802_v34  ;;  %1854 = vst.msk [vmem:[%s2372_s14 + $0x28] sm:$0xf] %vm1843_vm3, %v1816_v19 }
 0x24d   : > { %v1818_v61 = vpop.permute.xlu1 %1817 }
 0x24e   : > { %1855 = vst.msk [vmem:[%s2372_s14 + $0x2c] sm:$0xf] %vm1843_vm3, %v1818_v61 }
 0x261   : > { %v1804_v54 = vpop.permute.xlu0 %1803 }
 0x262   : > { %1848 = vst.msk [vmem:[%s2372_s14 + $0x10] sm:$0xf] %vm1843_vm3, %v1804_v54 }
 0x265   : > { %v1806_v4 = vpop.permute.xlu1 %1805  ;;  %v1820_v2 = vpop.permute.xlu0 %1819 }
 0x266   : > { %1849 = vst.msk [vmem:[%s2372_s14 + $0x14] sm:$0xf] %vm1843_vm3, %v1806_v4  ;;  %1856 = vst.msk [vmem:[%s2372_s14 + $0x30] sm:$0xf] %vm1843_vm3, %v1820_v2 }
 0x269   : > { %v1822_v25 = vpop.permute.xlu1 %1821 }
 0x26a   : > { %1857 = vst.msk [vmem:[%s2372_s14 + $0x34] sm:$0xf] %vm1843_vm3, %v1822_v25 }
 0x27d   : > { %v1808_v21 = vpop.permute.xlu0 %1807 }
 0x27e   : > { %1850 = vst.msk [vmem:[%s2372_s14 + $0x18] sm:$0xf] %vm1843_vm3, %v1808_v21 }
 0x281   : > { %v1810_v7 = vpop.permute.xlu1 %1809  ;;  %v1824_v55 = vpop.permute.xlu0 %1823 }
 0x282   : > { %1851 = vst.msk [vmem:[%s2372_s14 + $0x1c] sm:$0xf] %vm1843_vm3, %v1810_v7  ;;  %1858 = vst.msk [vmem:[%s2372_s14 + $0x38] sm:$0xf] %vm1843_vm3, %v1824_v55 }
 0x285   : > { %v1826_v27 = vpop.permute.xlu1 %1825 }
 0x286   : > { %1859 = vst.msk [vmem:[%s2372_s14 + $0x3c] sm:$0xf] %vm1843_vm3, %v1826_v27 }
 0x287 PF: > { %s16_s22 = sadd.s32 1, %s2284_s22   ;;  %s3260_s18 = smov %s2276_s20 }
 0x288   : > { %p13_p8 = scmp.ge.s32.totalorder %s16_s22, 6   ;;  %s3261_s19 = smov %s2280_s21 }
 0x289   : > { %s3262_s20 = smov %s3265_s23  ;;  %s3263_s21 = smov %s3269_s24 }
 0x28a   :  { %15 = sbr.rel (!%p13_p8) target bundleno = 3 (0x3), region = 83 }

// kernel: detect_module_forward.5
= control target key start
LH: loop header
LB: loop body
LE: loop exit
PB: predicated region body
PF: predicated region fallthrough
CT: control target
= control target key end

     0   :  { %s2146_s15 = smov 0   ;;  %s2148_s16 = smov 0   ;;  %s2960_s0 = inlined_call_operand.vmem [shape: bf16[2,16,16,4], index: 0, kind: input, shape index: {}]   ;;  %s2961_s1 = inlined_call_operand.vmem [shape: bf16[36,4], index: 1, kind: input, shape index: {}]   ;;  %s2962_s2 = inlined_call_operand.vmem [shape: f32[1,4], index: 2, kind: input, shape index: {}]   ;;  %s2963_s3 = inlined_call_operand.vmem [shape: f32[1,4], index: 3, kind: input, shape index: {}]   ;;  %s2964_s4 = inlined_call_operand.vmem [shape: f32[2,256,4], index: 4, kind: output, shape index: {}]  }
   0x1   :  { %s2150_s17 = smov 0   ;;  %s2152_s18 = smov 0  }
   0x2   :  { %s2154_s19 = smov 0  }
   0x3 LB: > { %s23_s20 = sadd.s32 1, %s2102_s17  ;;  %s26_s21 = sadd.s32 1, %s2106_s18  ;;  %s2110_s19 = sphi %s2154_s19, %s14_s19   ;;  %s2106_s18 = sphi %s2152_s18, %s2974_s18   ;;  %s2102_s17 = sphi %s2150_s17, %s2973_s17   ;;  %s2098_s16 = sphi %s2148_s16, %s2972_s16   ;;  %s2094_s15 = sphi %s2146_s15, %s2971_s15  }
   0x4   : > { %p24_p0 = scmp.ge.s32.totalorder %s23_s20, 2  ;;  %p1819_p1 = scmp.ge.s32.totalorder %s2110_s19, 1 }
   0x5   : > { %p176_p2 = scmp.lt.s32.totalorder %s2110_s19, 5 }
   0x6   : > { %s2976_s20 = smov (%p24_p0, %s23_s20), 0  ;;  %s2978_s21 = smov (!%p24_p0, %s26_s21), %s2106_s18 }
   0x7   : > { %p177_p3 = pnand %p1819_p1, %p176_p2  ;;  %p28_p4 = scmp.ge.s32.totalorder %s2978_s21, 2 }
   0x8   : > { %p206_p5 = scmp.lt.s32.totalorder (!%p177_p3), %s2098_s16, 1  ;;  %s1822_s22 = sshll.u32 (!%p177_p3), %s2094_s15, 4 }
   0x9   : > { %s2980_s21 = smov (%p28_p4, %s2978_s21), 0  ;;  %180 = sbr.rel (%p177_p3) target bundleno = 541 (0x21d), region = 36 }
   0xa   : > { %p214_p6 = scmp.lt.s32.totalorder (!%p177_p3), %s1822_s22, 31  ;;  %p1825_p7 = scmp.ne.s32.totalorder (!%p177_p3), %s2094_s15, 0 }
   0xe   : > { %s2982_s16 = smov (!%p206_p5, %s2098_s16), 1  ;;  %s2984_s22 = smov (!%p214_p6, %s1822_s22), 31 }
   0xf   : > { %s1951_s23 = sshll.u32 %s2982_s16, 7  ;;  %s1823_s24 = sshll.u32 %s2982_s16, 5 }
  0x10   : > { %s2182_s27 = scalar_lea.vmem %s2960_s0, %s1951_s23  ;;  %s217_s28 = sadd.s32 %s1823_s24, %s2984_s22 }
  0x11   : > { %s1824_s29 = sshll.u32 %s217_s28, 3  ;;  %225 = sbr.rel (%p1825_p7) target bundleno = 69 (0x45), region = 40 }
  0x12   : > { %s2187_s6 = scalar_lea.vmem %s2964_s4, %s1824_s29 }
  0x16   : > { %vm491_vm0 = vcmask 1040384   ;;  %vm492_vm1 = vsmask.f32 256  ;;  %vm715_vm2 = vcmask 27648   ;;  %v2043_v0 = vld [vmem:[%s2182_s27] sm:$0xff]   ;;  %v2112_v1 = vmov 0  }
  0x17   : > { %v341_v2 = vrot.slane %v2112_v1, 7  ;;  %vm2191_vm3 = vmand %vm491_vm0, %vm492_vm1  ;;  %vm718_vm4 = vcmask 24576   ;;  %v346_v4 = vshrl.u32 %v2043_v0, 16  ;;  %v349_v5 = vshll.u32 %v2043_v0, 16  ;;  %v2044_v8 = vld [vmem:[%s2182_s27 + $0x8] sm:$0xff]   ;;  %v2045_v9 = vld [vmem:[%s2182_s27 + $0x10] sm:$0xff]  }
  0x18   : > { %v2046_v14 = vld [vmem:[%s2182_s27 + $0x18] sm:$0xff]   ;;  %v353_v15 = vshrl.u32 %v2044_v8, 16  ;;  %v356_v16 = vshll.u32 %v2044_v8, 16  ;;  %v360_v17 = vshrl.u32 %v2045_v9, 16  ;;  %v363_v18 = vshll.u32 %v2045_v9, 16  ;;  %v2047_v23 = vld [vmem:[%s2182_s27 + $0x20] sm:$0xff]  }
  0x19   : > { %v494_v6 = vsel %vm2191_vm3, 0, %v341_v2  ;;  %v511_v7 = vsel %vm2191_vm3, %v341_v2, 0  ;;  %v348_v13 = vrot.slane %v346_v4, 7  ;;  %v367_v21 = vshrl.u32 %v2046_v14, 16  ;;  %v2048_v39 = vld [vmem:[%s2182_s27 + $0x28] sm:$0xff]   ;;  %v2049_v44 = vld [vmem:[%s2182_s27 + $0x30] sm:$0xff]  }
  0x1a   : > { %v1842_v10 = vcombine.low %v494_v6, %v494_v6  ;;  %v1843_v11 = vcombine.high %v494_v6, %v494_v6  ;;  %v1844_v12 = vcombine.low %v511_v7, %v511_v7  ;;  %v370_v22 = vshll.u32 %v2046_v14, 16  ;;  %v2050_v49 = vld [vmem:[%s2182_s27 + $0x38] sm:$0xff]   ;;  %v2051_v50 = vld [vmem:[%s2182_s27 + $0x40] sm:$0xff]  }
  0x1b   : > { %v351_v19 = vor.u32 %v349_v5, %v348_v13  ;;  %v512_v20 = vsel %vm2191_vm3, %v348_v13, 0  ;;  %v355_v25 = vrot.slane %v353_v15, 7  ;;  %v362_v26 = vrot.slane %v360_v17, 7 }
  0x1c   : > { %716 = vst.msk [vmem:[#allocation2] sm:$0xf] %vm715_vm2, %v1842_v10  ;;  %768 = vst.msk [vmem:[#allocation2 + $0xcc] sm:$0xf] %vm715_vm2, %v1842_v10  ;;  %v1847_v24 = vcombine.low %v512_v20, %v512_v20  ;;  %v369_v28 = vrot.slane %v367_v21, 7  ;;  %v374_v29 = vshrl.u32 %v2047_v23, 16 }
  0x1d   : > { %717 = vst.msk [vmem:[#allocation2 + $0x4] sm:$0xf] %vm715_vm2, %v1843_v11  ;;  %769 = vst.msk [vmem:[#allocation2 + $0xd0] sm:$0xf] %vm715_vm2, %v1843_v11  ;;  %v495_v27 = vsel %vm2191_vm3, 0, %v351_v19  ;;  %v377_v30 = vshll.u32 %v2047_v23, 16  ;;  %v358_v33 = vor.u32 %v356_v16, %v355_v25  ;;  %v365_v36 = vor.u32 %v363_v18, %v362_v26 }
  0x1e   : > { %719 = vst.msk [vmem:[#allocation2 + $0x8] sm:$0x1] %vm718_vm4, %v1844_v12  ;;  %770 = vst.msk [vmem:[#allocation2 + $0xd4] sm:$0x1] %vm718_vm4, %v1844_v12  ;;  %v1845_v31 = vcombine.low %v495_v27, %v495_v27  ;;  %v1846_v32 = vcombine.high %v495_v27, %v495_v27  ;;  %v513_v34 = vsel %vm2191_vm3, %v355_v25, 0  ;;  %v514_v37 = vsel %vm2191_vm3, %v362_v26, 0 }
  0x1f   : > { %722 = vst.msk [vmem:[#allocation2 + $0x14] sm:$0x1] %vm718_vm4, %v1847_v24  ;;  %v1850_v35 = vcombine.low %v513_v34, %v513_v34  ;;  %v372_v38 = vor.u32 %v370_v22, %v369_v28  ;;  %v496_v40 = vsel %vm2191_vm3, 0, %v358_v33  ;;  %v1853_v41 = vcombine.low %v514_v37, %v514_v37  ;;  %v2052_v12 = vld [vmem:[%s2182_s27 + $0x48] sm:$0xff]   ;;  %v2053_v21 = vld [vmem:[%s2182_s27 + $0x50] sm:$0xff]  }
  0x20   : > { %720 = vst.msk [vmem:[#allocation2 + $0xc] sm:$0xf] %vm715_vm2, %v1845_v31  ;;  %721 = vst.msk [vmem:[#allocation2 + $0x10] sm:$0xf] %vm715_vm2, %v1846_v32  ;;  %v515_v42 = vsel %vm2191_vm3, %v369_v28, 0  ;;  %v376_v43 = vrot.slane %v374_v29, 7  ;;  %v1848_v45 = vcombine.low %v496_v40, %v496_v40  ;;  %v1849_v46 = vcombine.high %v496_v40, %v496_v40 }
  0x21   : > { %725 = vst.msk [vmem:[#allocation2 + $0x20] sm:$0x1] %vm718_vm4, %v1850_v35  ;;  %v497_v47 = vsel %vm2191_vm3, 0, %v365_v36  ;;  %v498_v48 = vsel %vm2191_vm3, 0, %v372_v38  ;;  %728 = vst.msk [vmem:[#allocation2 + $0x2c] sm:$0x1] %vm718_vm4, %v1853_v41  ;;  %v1856_v55 = vcombine.low %v515_v42, %v515_v42 }
  0x22   : > { %v1851_v51 = vcombine.low %v497_v47, %v497_v47  ;;  %v1852_v52 = vcombine.high %v497_v47, %v497_v47  ;;  %v1854_v53 = vcombine.low %v498_v48, %v498_v48  ;;  %v1855_v54 = vcombine.high %v498_v48, %v498_v48  ;;  %723 = vst.msk [vmem:[#allocation2 + $0x18] sm:$0xf] %vm715_vm2, %v1848_v45  ;;  %v2055_v31 = vld [vmem:[%s2182_s27 + $0x60] sm:$0xff]   ;;  %v2056_v36 = vld [vmem:[%s2182_s27 + $0x68] sm:$0xff]  }
  0x23   : > { %724 = vst.msk [vmem:[#allocation2 + $0x1c] sm:$0xf] %vm715_vm2, %v1849_v46  ;;  %v379_v56 = vor.u32 %v377_v30, %v376_v43  ;;  %v516_v57 = vsel %vm2191_vm3, %v376_v43, 0  ;;  %v381_v58 = vshrl.u32 %v2048_v39, 16  ;;  %v384_v60 = vshll.u32 %v2048_v39, 16  ;;  %v2054_v30 = vld [vmem:[%s2182_s27 + $0x58] sm:$0xff]  }
  0x24   : > { %726 = vst.msk [vmem:[#allocation2 + $0x24] sm:$0xf] %vm715_vm2, %v1851_v51  ;;  %727 = vst.msk [vmem:[#allocation2 + $0x28] sm:$0xf] %vm715_vm2, %v1852_v52  ;;  %v1859_v59 = vcombine.low %v516_v57, %v516_v57  ;;  %v388_v61 = vshrl.u32 %v2049_v44, 16  ;;  %v391_v62 = vshll.u32 %v2049_v44, 16 }
  0x25   : > { %729 = vst.msk [vmem:[#allocation2 + $0x30] sm:$0xf] %vm715_vm2, %v1854_v53  ;;  %730 = vst.msk [vmem:[#allocation2 + $0x34] sm:$0xf] %vm715_vm2, %v1855_v54  ;;  %v499_v63 = vsel %vm2191_vm3, 0, %v379_v56  ;;  %v383_v0 = vrot.slane %v381_v58, 7 }
  0x26   : > { %731 = vst.msk [vmem:[#allocation2 + $0x38] sm:$0x1] %vm718_vm4, %v1856_v55  ;;  %v395_v1 = vshrl.u32 %v2050_v49, 16  ;;  %v398_v2 = vshll.u32 %v2050_v49, 16  ;;  %v1857_v4 = vcombine.low %v499_v63, %v499_v63  ;;  %v1858_v5 = vcombine.high %v499_v63, %v499_v63  ;;  %734 = vst.msk [vmem:[#allocation2 + $0x44] sm:$0x1] %vm718_vm4, %v1859_v59 }
  0x27   : > { %v390_v6 = vrot.slane %v388_v61, 7  ;;  %v402_v7 = vshrl.u32 %v2051_v50, 16  ;;  %v386_v8 = vor.u32 %v384_v60, %v383_v0  ;;  %v517_v9 = vsel %vm2191_vm3, %v383_v0, 0 }
  0x28   : > { %v397_v10 = vrot.slane %v395_v1, 7  ;;  %v405_v11 = vshll.u32 %v2051_v50, 16  ;;  %732 = vst.msk [vmem:[#allocation2 + $0x3c] sm:$0xf] %vm715_vm2, %v1857_v4  ;;  %733 = vst.msk [vmem:[#allocation2 + $0x40] sm:$0xf] %vm715_vm2, %v1858_v5  ;;  %v1862_v13 = vcombine.low %v517_v9, %v517_v9 }
  0x29   : > { %v393_v14 = vor.u32 %v391_v62, %v390_v6  ;;  %v518_v15 = vsel %vm2191_vm3, %v390_v6, 0  ;;  %v404_v16 = vrot.slane %v402_v7, 7  ;;  %v500_v17 = vsel %vm2191_vm3, 0, %v386_v8  ;;  %v2057_v6 = vld [vmem:[%s2182_s27 + $0x70] sm:$0xff]   ;;  %v2058_v7 = vld [vmem:[%s2182_s27 + $0x78] sm:$0xff]  }
  0x2a   : > { %v1865_v18 = vcombine.low %v518_v15, %v518_v15  ;;  %v400_v19 = vor.u32 %v398_v2, %v397_v10  ;;  %v519_v20 = vsel %vm2191_vm3, %v397_v10, 0  ;;  %v1860_v22 = vcombine.low %v500_v17, %v500_v17  ;;  %737 = vst.msk [vmem:[#allocation2 + $0x50] sm:$0x1] %vm718_vm4, %v1862_v13 }
  0x2b   : > { %v1861_v23 = vcombine.high %v500_v17, %v500_v17  ;;  %v501_v24 = vsel %vm2191_vm3, 0, %v393_v14  ;;  %v1868_v25 = vcombine.low %v519_v20, %v519_v20  ;;  %v407_v29 = vor.u32 %v405_v11, %v404_v16 }
  0x2c   : > { %v1863_v26 = vcombine.low %v501_v24, %v501_v24  ;;  %v1864_v27 = vcombine.high %v501_v24, %v501_v24  ;;  %740 = vst.msk [vmem:[#allocation2 + $0x5c] sm:$0x1] %vm718_vm4, %v1865_v18  ;;  %v502_v28 = vsel %vm2191_vm3, 0, %v400_v19  ;;  %v520_v34 = vsel %vm2191_vm3, %v404_v16, 0 }
  0x2d   : > { %735 = vst.msk [vmem:[#allocation2 + $0x48] sm:$0xf] %vm715_vm2, %v1860_v22  ;;  %736 = vst.msk [vmem:[#allocation2 + $0x4c] sm:$0xf] %vm715_vm2, %v1861_v23  ;;  %v1866_v32 = vcombine.low %v502_v28, %v502_v28  ;;  %v1867_v33 = vcombine.high %v502_v28, %v502_v28  ;;  %v409_v35 = vshrl.u32 %v2052_v12, 16  ;;  %v503_v37 = vsel %vm2191_vm3, 0, %v407_v29 }
  0x2e   : > { %743 = vst.msk [vmem:[#allocation2 + $0x68] sm:$0x1] %vm718_vm4, %v1868_v25  ;;  %v1871_v38 = vcombine.low %v520_v34, %v520_v34  ;;  %v412_v39 = vshll.u32 %v2052_v12, 16  ;;  %v416_v40 = vshrl.u32 %v2053_v21, 16  ;;  %v1869_v41 = vcombine.low %v503_v37, %v503_v37 }
  0x2f   : > { %738 = vst.msk [vmem:[#allocation2 + $0x54] sm:$0xf] %vm715_vm2, %v1863_v26  ;;  %739 = vst.msk [vmem:[#allocation2 + $0x58] sm:$0xf] %vm715_vm2, %v1864_v27  ;;  %v1870_v42 = vcombine.high %v503_v37, %v503_v37  ;;  %v411_v43 = vrot.slane %v409_v35, 7  ;;  %v419_v44 = vshll.u32 %v2053_v21, 16 }
  0x30   : > { %741 = vst.msk [vmem:[#allocation2 + $0x60] sm:$0xf] %vm715_vm2, %v1866_v32  ;;  %742 = vst.msk [vmem:[#allocation2 + $0x64] sm:$0xf] %vm715_vm2, %v1867_v33  ;;  %v418_v45 = vrot.slane %v416_v40, 7  ;;  %v423_v46 = vshrl.u32 %v2054_v30, 16 }
  0x31   : > { %746 = vst.msk [vmem:[#allocation2 + $0x74] sm:$0x1] %vm718_vm4, %v1871_v38  ;;  %v426_v47 = vshll.u32 %v2054_v30, 16  ;;  %v430_v48 = vshrl.u32 %v2055_v31, 16  ;;  %v414_v49 = vor.u32 %v412_v39, %v411_v43  ;;  %v521_v50 = vsel %vm2191_vm3, %v411_v43, 0 }
  0x32   : > { %744 = vst.msk [vmem:[#allocation2 + $0x6c] sm:$0xf] %vm715_vm2, %v1869_v41  ;;  %745 = vst.msk [vmem:[#allocation2 + $0x70] sm:$0xf] %vm715_vm2, %v1870_v42  ;;  %v433_v51 = vshll.u32 %v2055_v31, 16  ;;  %v437_v52 = vshrl.u32 %v2056_v36, 16  ;;  %v1874_v53 = vcombine.low %v521_v50, %v521_v50  ;;  %v421_v54 = vor.u32 %v419_v44, %v418_v45 }
  0x33   : > { %v522_v55 = vsel %vm2191_vm3, %v418_v45, 0  ;;  %v425_v56 = vrot.slane %v423_v46, 7  ;;  %v504_v57 = vsel %vm2191_vm3, 0, %v414_v49  ;;  %v432_v59 = vrot.slane %v430_v48, 7 }
  0x34   : > { %v1877_v58 = vcombine.low %v522_v55, %v522_v55  ;;  %v439_v60 = vrot.slane %v437_v52, 7  ;;  %v1872_v61 = vcombine.low %v504_v57, %v504_v57  ;;  %v1873_v62 = vcombine.high %v504_v57, %v504_v57  ;;  %749 = vst.msk [vmem:[#allocation2 + $0x80] sm:$0x1] %vm718_vm4, %v1874_v53 }
  0x35   : > { %v505_v63 = vsel %vm2191_vm3, 0, %v421_v54  ;;  %v428_v0 = vor.u32 %v426_v47, %v425_v56  ;;  %v523_v4 = vsel %vm2191_vm3, %v425_v56, 0  ;;  %v435_v5 = vor.u32 %v433_v51, %v432_v59 }
  0x36   : > { %v1875_v1 = vcombine.low %v505_v63, %v505_v63  ;;  %v1876_v2 = vcombine.high %v505_v63, %v505_v63  ;;  %752 = vst.msk [vmem:[#allocation2 + $0x8c] sm:$0x1] %vm718_vm4, %v1877_v58  ;;  %v1880_v9 = vcombine.low %v523_v4, %v523_v4  ;;  %v524_v10 = vsel %vm2191_vm3, %v432_v59, 0 }
  0x37   : > { %747 = vst.msk [vmem:[#allocation2 + $0x78] sm:$0xf] %vm715_vm2, %v1872_v61  ;;  %748 = vst.msk [vmem:[#allocation2 + $0x7c] sm:$0xf] %vm715_vm2, %v1873_v62  ;;  %v506_v8 = vsel %vm2191_vm3, 0, %v428_v0  ;;  %v440_v11 = vshll.u32 %v2056_v36, 16  ;;  %v1883_v15 = vcombine.low %v524_v10, %v524_v10 }
  0x38   : > { %750 = vst.msk [vmem:[#allocation2 + $0x84] sm:$0xf] %vm715_vm2, %v1875_v1  ;;  %751 = vst.msk [vmem:[#allocation2 + $0x88] sm:$0xf] %vm715_vm2, %v1876_v2  ;;  %v1878_v12 = vcombine.low %v506_v8, %v506_v8  ;;  %v1879_v13 = vcombine.high %v506_v8, %v506_v8  ;;  %v507_v14 = vsel %vm2191_vm3, 0, %v435_v5  ;;  %v525_v19 = vsel %vm2191_vm3, %v439_v60, 0 }
  0x39   : > { %755 = vst.msk [vmem:[#allocation2 + $0x98] sm:$0x1] %vm718_vm4, %v1880_v9  ;;  %v1881_v16 = vcombine.low %v507_v14, %v507_v14  ;;  %v1882_v17 = vcombine.high %v507_v14, %v507_v14  ;;  %v442_v18 = vor.u32 %v440_v11, %v439_v60  ;;  %758 = vst.msk [vmem:[#allocation2 + $0xa4] sm:$0x1] %vm718_vm4, %v1883_v15  ;;  %v444_v21 = vshrl.u32 %v2057_v6, 16 }
  0x3a   : > { %753 = vst.msk [vmem:[#allocation2 + $0x90] sm:$0xf] %vm715_vm2, %v1878_v12  ;;  %754 = vst.msk [vmem:[#allocation2 + $0x94] sm:$0xf] %vm715_vm2, %v1879_v13  ;;  %v1886_v20 = vcombine.low %v525_v19, %v525_v19  ;;  %v447_v22 = vshll.u32 %v2057_v6, 16  ;;  %v451_v23 = vshrl.u32 %v2058_v7, 16 }
  0x3b   : > { %756 = vst.msk [vmem:[#allocation2 + $0x9c] sm:$0xf] %vm715_vm2, %v1881_v16  ;;  %757 = vst.msk [vmem:[#allocation2 + $0xa0] sm:$0xf] %vm715_vm2, %v1882_v17  ;;  %v508_v24 = vsel %vm2191_vm3, 0, %v442_v18  ;;  %v454_v25 = vshll.u32 %v2058_v7, 16 }
  0x3c   : > { %v1884_v26 = vcombine.low %v508_v24, %v508_v24  ;;  %v1885_v27 = vcombine.high %v508_v24, %v508_v24  ;;  %761 = vst.msk [vmem:[#allocation2 + $0xb0] sm:$0x1] %vm718_vm4, %v1886_v20  ;;  %v446_v28 = vrot.slane %v444_v21, 7  ;;  %v453_v29 = vrot.slane %v451_v23, 7 }
  0x3e   : > { %759 = vst.msk [vmem:[#allocation2 + $0xa8] sm:$0xf] %vm715_vm2, %v1884_v26  ;;  %760 = vst.msk [vmem:[#allocation2 + $0xac] sm:$0xf] %vm715_vm2, %v1885_v27  ;;  %v449_v30 = vor.u32 %v447_v22, %v446_v28  ;;  %v526_v31 = vsel %vm2191_vm3, %v446_v28, 0  ;;  %v456_v32 = vor.u32 %v454_v25, %v453_v29  ;;  %v527_v33 = vsel %vm2191_vm3, %v453_v29, 0 }
  0x3f   : > { %v1889_v34 = vcombine.low %v526_v31, %v526_v31  ;;  %v1892_v35 = vcombine.low %v527_v33, %v527_v33 }
  0x40   : > { %v509_v36 = vsel %vm2191_vm3, 0, %v449_v30  ;;  %v510_v37 = vsel %vm2191_vm3, 0, %v456_v32 }
  0x41   : > { %v1887_v38 = vcombine.low %v509_v36, %v509_v36  ;;  %v1888_v39 = vcombine.high %v509_v36, %v509_v36  ;;  %764 = vst.msk [vmem:[#allocation2 + $0xbc] sm:$0x1] %vm718_vm4, %v1889_v34  ;;  %v1890_v40 = vcombine.low %v510_v37, %v510_v37  ;;  %v1891_v41 = vcombine.high %v510_v37, %v510_v37 }
  0x42   : > { %767 = vst.msk [vmem:[#allocation2 + $0xc8] sm:$0x1] %vm718_vm4, %v1892_v35 }
  0x43   : > { %762 = vst.msk [vmem:[#allocation2 + $0xb4] sm:$0xf] %vm715_vm2, %v1887_v38  ;;  %763 = vst.msk [vmem:[#allocation2 + $0xb8] sm:$0xf] %vm715_vm2, %v1888_v39 }
  0x44   : > { %765 = vst.msk [vmem:[#allocation2 + $0xc0] sm:$0xf] %vm715_vm2, %v1890_v40  ;;  %766 = vst.msk [vmem:[#allocation2 + $0xc4] sm:$0xf] %vm715_vm2, %v1891_v41 }
  0x45 PF: > { %s1952_s7 = smul.u32 96, %s2094_s15  ;;  %vm1024_vm5 = vcmask 1042432   ;;  %vm1025_vm6 = vcmask 1046532   ;;  %vm805_vm8 = vsmask.f32 3328  ;;  %s2113_s9 = smov 8  }
  0x46   : > { %vm2333_vm7 = vmor %vm1024_vm5, %vm1025_vm6  ;;  %vm806_vm9 = vsmask.f32 7440  ;;  %s2114_s10 = smov 4   ;;  %s2115_s11 = smov 12   ;;  %vm1550_vm11 = vcmask 1041408   ;;  %vm1369_vm12 = vcmask 31744  }
  0x47   : > { %s2337_s8 = scalar_lea.vmem [#allocation2], %s1952_s7  ;;  %vm2425_vm10 = vmor %vm805_vm8, %vm806_vm9  ;;  %s2116_s12 = smov 16   ;;  %vm1411_vm13 = vcmask 97280   ;;  %vm1394_vm14 = vcmask 64512   ;;  %vm1428_vm15 = vcmask 130048   ;;  %vm1445_vm0 = vcmask 162816  }
  0x48   : > { %s2117_s13 = smov 20   ;;  %s2118_s14 = smov 24   ;;  %vm1462_vm1 = vcmask 195584   ;;  %vm1479_vm2 = vcmask 228352   ;;  %vm1496_vm3 = vcmask 261120   ;;  %vm1533_vm4 = vcmask 293888  }
  0x49   : > { %s2119_s22 = smov 28   ;;  %s2120_s27 = smov 32  }
  0x4b   : > { %v2340_v42 = vld [vmem:[%s2337_s8 + $0x30] sm:$0xf]  ;;  %v2343_v43 = vld [vmem:[%s2337_s8 + $0x34] sm:$0xf]  ;;  %v2346_v44 = vld [vmem:[%s2337_s8 + $0x38] sm:$0x1] }
  0x4c   : > { %v1900_v45 = vrot.slane %v2340_v42, 9  ;;  %v1057_v46 = vrot.slane %v2343_v43, 5  ;;  %v1060_v47 = vrot.slane %v2346_v44, 5  ;;  %v2352_v48 = vld [vmem:[%s2337_s8] sm:$0xf]  ;;  %v905_v49 = vshrl.u32 %v2340_v42, 16 }
  0x4d   : > { %v2356_v50 = vld [vmem:[%s2337_s8 + $0x4] sm:$0xf]  ;;  %v777_v51 = vld [vmem:[%s2337_s8 + $0x8] sm:$0x1]  ;;  %v1896_v52 = vrot.slane %v2352_v48, 9  ;;  %v809_v53 = vshrl.u32 %v2352_v48, 16  ;;  %v2363_v54 = vcombine.low %v2340_v42, %v2343_v43 }
  0x4e   : > { %v1058_v55 = vsel %vm2333_vm7, %v1900_v45, %v1057_v46  ;;  %v1059_v56 = vrot.slane %v1057_v46, 4  ;;  %v828_v57 = vshll.u32 %v777_v51, 16  ;;  %v1029_v58 = vrot.slane %v2356_v50, 5  ;;  %v2369_v59 = vld [vmem:[%s2337_s8 + $0x3c] sm:$0xf] }
  0x4f   : > { %v1032_v60 = vrot.slane %v777_v51, 5  ;;  %v2372_v61 = vld [vmem:[%s2337_s8 + $0x40] sm:$0xf]  ;;  %v2375_v62 = vld [vmem:[%s2337_s8 + $0x44] sm:$0x1]  ;;  %v1901_v63 = vrot.slane %v2369_v59, 9 }
  0x50   : > { %v1061_v0 = vsel %vm2333_vm7, %v1059_v56, %v1060_v47  ;;  %v1030_v1 = vsel %vm2333_vm7, %v1896_v52, %v1029_v58  ;;  %v1031_v2 = vrot.slane %v1029_v58, 4  ;;  %v1064_v4 = vrot.slane %v2372_v61, 5  ;;  %v2384_v5 = vld [vmem:[%s2337_s8 + $0xc] sm:$0xf]  ;;  %v2387_v6 = vld [vmem:[%s2337_s8 + $0x10] sm:$0xf] }
  0x51   : > { %v2389_v7 = vcombine.low %v1058_v55, %v1061_v0  ;;  %v1067_v8 = vrot.slane %v2375_v62, 5  ;;  %v780_v9 = vld [vmem:[%s2337_s8 + $0x14] sm:$0x1]  ;;  %v1897_v10 = vrot.slane %v2384_v5, 9  ;;  %v1036_v11 = vrot.slane %v2387_v6, 5 }
  0x52   : > { %v1033_v12 = vsel %vm2333_vm7, %v1031_v2, %v1032_v60  ;;  %v1065_v13 = vsel %vm2333_vm7, %v1901_v63, %v1064_v4  ;;  %v1066_v14 = vrot.slane %v1064_v4, 4  ;;  %v1039_v15 = vrot.slane %v780_v9, 5 }
  0x53   : > { %1247 = vrot.lane.b32.xlu1 %v2389_v7, %s2113_s9  ;;  %v1922_v16 = vcombine.low %v1030_v1, %v1033_v12  ;;  %v1037_v17 = vsel %vm2333_vm7, %v1897_v10, %v1036_v11  ;;  %v1038_v18 = vrot.slane %v1036_v11, 4  ;;  %v833_v19 = vshrl.u32 %v2384_v5, 16 }
  0x54   : > { %v1068_v20 = vsel %vm2333_vm7, %v1066_v14, %v1067_v8  ;;  %v836_v21 = vshll.u32 %v2384_v5, 16  ;;  %v842_v22 = vshll.u32 %v2387_v6, 16  ;;  %v846_v23 = vshrl.u32 %v2387_v6, 16 }
  0x55   : > { %1239 = vrot.lane.b32.xlu0 %v1922_v16, %s2113_s9  ;;  %v2410_v24 = vcombine.low %v1065_v13, %v1068_v20  ;;  %v1040_v25 = vsel %vm2333_vm7, %v1038_v18, %v1039_v15  ;;  %v835_v26 = vrot.slane %v833_v19, 4  ;;  %v852_v27 = vshll.u32 %v780_v9, 16  ;;  %v2452_v20 = vld [vmem:[%s2337_s8 + $0x48] sm:$0xf] }
  0x56   : > { %v2414_v28 = vcombine.low %v1037_v17, %v1040_v25  ;;  %v838_v29 = vrot.slane %v836_v21, 5  ;;  %v844_v30 = vrot.slane %v842_v22, 5  ;;  %v848_v31 = vrot.slane %v846_v23, 4 }
  0x57   : > { %1249 = vrot.lane.b32.xlu1 %v2410_v24, %s2113_s9  ;;  %v854_v32 = vrot.slane %v852_v27, 5  ;;  %v811_v33 = vrot.slane %v809_v53, 4  ;;  %v812_v34 = vshll.u32 %v2352_v48, 16  ;;  %v818_v35 = vshll.u32 %v2356_v50, 16 }
  0x58   : > { %v839_v36 = vor.u32 %v838_v29, %v835_v26  ;;  %v849_v37 = vor.u32 %v848_v31, %v844_v30  ;;  %v822_v38 = vshrl.u32 %v2356_v50, 16  ;;  %v830_v39 = vrot.slane %v828_v57, 5  ;;  %v2461_v31 = vld [vmem:[%s2337_s8 + $0x18] sm:$0xf] }
  0x59   : > { %1241 = vrot.lane.b32.xlu0 %v2414_v28, %s2113_s9  ;;  %v814_v41 = vrot.slane %v812_v34, 5  ;;  %v820_v45 = vrot.slane %v818_v35, 5  ;;  %v929_v46 = vshrl.u32 %v2369_v59, 16  ;;  %v932_v47 = vshll.u32 %v2369_v59, 16  ;;  %v2469_v34 = vld [vmem:[%s2337_s8 + $0x1c] sm:$0xf] }
  0x5a   : > { %v840_v51 = vrot.slane %v839_v36, 4  ;;  %v850_v52 = vrot.slane %v849_v37, 4  ;;  %v824_v53 = vrot.slane %v822_v38, 4  ;;  %v938_v55 = vshll.u32 %v2372_v61, 16 }
  0x5b   : > { %v815_v56 = vor.u32 %v814_v41, %v811_v33  ;;  %v931_v57 = vrot.slane %v929_v46, 4  ;;  %v934_v58 = vrot.slane %v932_v47, 5  ;;  %v942_v60 = vshrl.u32 %v2372_v61, 16  ;;  %v2481_v46 = vld [vmem:[%s2337_s8 + $0x50] sm:$0x1] }
  0x5c   : > { %v845_v63 = vsel %vm2425_vm10, %v840_v51, %v844_v30  ;;  %v855_v0 = vsel %vm2425_vm10, %v850_v52, %v854_v32  ;;  %v825_v1 = vor.u32 %v824_v53, %v820_v45  ;;  %v940_v2 = vrot.slane %v938_v55, 5  ;;  %v2458_v30 = vld [vmem:[%s2337_s8 + $0x4c] sm:$0xf] }
  0x5d   : > { %v2437_v4 = vcombine.low %v845_v63, %v855_v0  ;;  %v816_v8 = vrot.slane %v815_v56, 4  ;;  %v935_v9 = vor.u32 %v934_v58, %v931_v57  ;;  %v944_v10 = vrot.slane %v942_v60, 4  ;;  %v2494_v57 = vld [vmem:[%s2337_s8 + $0x20] sm:$0x1] }
  0x5e   : > { %v826_v11 = vrot.slane %v825_v1, 4  ;;  %v948_v12 = vshll.u32 %v2375_v62, 16  ;;  %v907_v13 = vrot.slane %v905_v49, 4  ;;  %v908_v14 = vshll.u32 %v2340_v42, 16 }
  0x5f   : > { %1201 = vrot.lane.b32.xlu1 %v2437_v4, %s2114_s10  ;;  %v821_v15 = vsel %vm2425_vm10, %v816_v8, %v820_v45  ;;  %v936_v16 = vrot.slane %v935_v9, 4  ;;  %v945_v17 = vor.u32 %v944_v10, %v940_v2  ;;  %v914_v18 = vshll.u32 %v2343_v43, 16 }
  0x60   : > { %v831_v62 = vsel %vm2425_vm10, %v826_v11, %v830_v39  ;;  %v950_v19 = vrot.slane %v948_v12, 5  ;;  %v910_v49 = vrot.slane %v908_v14, 5  ;;  %v918_v42 = vshrl.u32 %v2343_v43, 16 }
  0x61   : > { %v1914_v21 = vcombine.low %v821_v15, %v831_v62  ;;  %v941_v22 = vsel %vm2425_vm10, %v936_v16, %v940_v2  ;;  %v946_v23 = vrot.slane %v945_v17, 4  ;;  %v916_v25 = vrot.slane %v914_v18, 5  ;;  %v2512_v62 = vld [vmem:[%s2337_s8 + $0x54] sm:$0xf] }
  0x62   : > { %v911_v26 = vor.u32 %v910_v49, %v907_v13  ;;  %v920_v27 = vrot.slane %v918_v42, 4  ;;  %v924_v29 = vshll.u32 %v2346_v44, 16  ;;  %v953_v32 = vshrl.u32 %v2452_v20, 16 }
  0x63   : > { %1199 = vrot.lane.b32.xlu0 %v1914_v21, %s2114_s10  ;;  %v951_v43 = vsel %vm2425_vm10, %v946_v23, %v950_v19  ;;  %v956_v33 = vshll.u32 %v2452_v20, 16  ;;  %v2475_v38 = vcombine.low %v2369_v59, %v2372_v61  ;;  %v966_v39 = vshrl.u32 %v2458_v30, 16 }
  0x64   : > { %v2471_v35 = vcombine.low %v941_v22, %v951_v43  ;;  %v912_v36 = vrot.slane %v911_v26, 4  ;;  %v921_v44 = vor.u32 %v920_v27, %v916_v25  ;;  %v926_v37 = vrot.slane %v924_v29, 5  ;;  %v2529_v26 = vld [vmem:[%s2337_s8 + $0x58] sm:$0xf]  ;;  %v2532_v27 = vld [vmem:[%s2337_s8 + $0x24] sm:$0xf] }
  0x65   : > { %v857_v41 = vshrl.u32 %v2461_v31, 16  ;;  %v860_v45 = vshll.u32 %v2461_v31, 16  ;;  %v2489_v52 = vcombine.low %v2384_v5, %v2387_v6  ;;  %v870_v59 = vshrl.u32 %v2469_v34, 16 }
  0x66   : > { %1209 = vrot.lane.b32.xlu1 %v2471_v35, %s2114_s10  ;;  %v917_v47 = vsel %vm2425_vm10, %v912_v36, %v916_v25  ;;  %v922_v51 = vrot.slane %v921_v44, 4  ;;  %v955_v61 = vrot.slane %v953_v32, 4  ;;  %v958_v53 = vrot.slane %v956_v33, 5  ;;  %v785_v44 = vld [vmem:[%s2337_s8 + $0x28] sm:$0xf] }
  0x67   : > { %v962_v55 = vshll.u32 %v2458_v30, 16  ;;  %v968_v56 = vrot.slane %v966_v39, 4  ;;  %v972_v60 = vshll.u32 %v2481_v46, 16  ;;  %v859_v63 = vrot.slane %v857_v41, 4 }
  0x68   : > { %v927_v58 = vsel %vm2425_vm10, %v922_v51, %v926_v37  ;;  %v862_v0 = vrot.slane %v860_v45, 5  ;;  %v959_v5 = vor.u32 %v958_v53, %v955_v61  ;;  %v866_v2 = vshll.u32 %v2469_v34, 16  ;;  %v2556_v53 = vld [vmem:[%s2337_s8 + $0x5c] sm:$0x1] }
  0x69   : > { %v2499_v1 = vcombine.low %v917_v47, %v927_v58  ;;  %v964_v6 = vrot.slane %v962_v55, 5  ;;  %v2506_v8 = vcombine.low %v2452_v20, %v2458_v30  ;;  %v872_v10 = vrot.slane %v870_v59, 4 }
  0x6a   : > { %1266 = vrot.lane.b32.xlu1 %v2475_v38, %s2115_s11  ;;  %v863_v9 = vor.u32 %v862_v0, %v859_v63  ;;  %v876_v11 = vshll.u32 %v2494_v57, 16  ;;  %v960_v12 = vrot.slane %v959_v5, 4  ;;  %v974_v14 = vrot.slane %v972_v60, 5  ;;  %v786_v0 = vld [vmem:[%s2337_s8 + $0x2c] sm:$0x1] }
  0x6b   : > { %1207 = vrot.lane.b32.xlu0 %v2499_v1, %s2114_s10  ;;  %v969_v13 = vor.u32 %v968_v56, %v964_v6  ;;  %v868_v15 = vrot.slane %v866_v2, 5  ;;  %v2518_v19 = vcombine.low %v2461_v31, %v2469_v34  ;;  %v1071_v42 = vrot.slane %v2458_v30, 5 }
  0x6c   : > { %v864_v17 = vrot.slane %v863_v9, 4  ;;  %v878_v49 = vrot.slane %v876_v11, 5  ;;  %v965_v21 = vsel %vm2425_vm10, %v960_v12, %v964_v6  ;;  %v1043_v25 = vrot.slane %v2469_v34, 5 }
  0x6d   : > { %v970_v16 = vrot.slane %v969_v13, 4  ;;  %v873_v18 = vor.u32 %v872_v10, %v868_v15  ;;  %v1902_v29 = vrot.slane %v2452_v20, 9  ;;  %v977_v30 = vshrl.u32 %v2512_v62, 16 }
  0x6e   : > { %1268 = vrot.lane.b32.xlu1 %v2506_v8, %s2115_s11  ;;  %v869_v43 = vsel %vm2425_vm10, %v864_v17, %v868_v15  ;;  %v1074_v32 = vrot.slane %v2481_v46, 5  ;;  %v1898_v33 = vrot.slane %v2461_v31, 9  ;;  %v980_v36 = vshll.u32 %v2512_v62, 16 }
  0x6f   : > { %1258 = vrot.lane.b32.xlu0 %v2489_v52, %s2115_s11  ;;  %v975_v22 = vsel %vm2425_vm10, %v970_v16, %v974_v14  ;;  %v874_v23 = vrot.slane %v873_v18, 4  ;;  %v1073_v20 = vrot.slane %v1071_v42, 4  ;;  %v990_v37 = vshrl.u32 %v2529_v26, 16  ;;  %v2581_v16 = vld [vmem:[%s2337_s8 + $0x60] sm:$0xf] }
  0x70   : > { %v2544_v34 = vcombine.low %v965_v21, %v975_v22  ;;  %v881_v39 = vshrl.u32 %v2532_v27, 16  ;;  %v1045_v41 = vrot.slane %v1043_v25, 4  ;;  %v1046_v45 = vrot.slane %v2494_v57, 5 }
  0x71   : > { %v879_v31 = vsel %vm2425_vm10, %v874_v23, %v878_v49  ;;  %v884_v46 = vshll.u32 %v2532_v27, 16  ;;  %v894_v47 = vshrl.u32 %v785_v44, 16  ;;  %v979_v51 = vrot.slane %v977_v30, 4 }
  0x72   : > { %1285 = vrot.lane.b32.xlu1 %v2471_v35, %s2116_s12  ;;  %v982_v59 = vrot.slane %v980_v36, 5  ;;  %v986_v61 = vshll.u32 %v2529_v26, 16  ;;  %v883_v55 = vrot.slane %v881_v39, 4  ;;  %v890_v58 = vshll.u32 %v785_v44, 16 }
  0x73   : > { %1260 = vrot.lane.b32.xlu0 %v2518_v19, %s2115_s11  ;;  %v886_v56 = vrot.slane %v884_v46, 5  ;;  %v992_v57 = vrot.slane %v990_v37, 4  ;;  %v2565_v5 = vcombine.low %v869_v43, %v879_v31  ;;  %v1072_v6 = vsel %vm2333_vm7, %v1902_v29, %v1071_v42 }
  0x74   : > { %v983_v60 = vor.u32 %v982_v59, %v979_v51  ;;  %v2560_v63 = vrot.slane %v986_v61, 5  ;;  %v1075_v2 = vsel %vm2333_vm7, %v1073_v20, %v1074_v32  ;;  %v1044_v9 = vsel %vm2333_vm7, %v1898_v33, %v1043_v25  ;;  %v2601_v25 = vld [vmem:[%s2337_s8 + $0x64] sm:$0xf]  ;;  %v801_v33 = vld [vmem:[%s2337_s8 + $0x68] sm:$0x1] }
  0x75   : > { %v1047_v10 = vsel %vm2333_vm7, %v1045_v41, %v1046_v45  ;;  %v996_v11 = vshll.u32 %v2556_v53, 16  ;;  %v896_v12 = vrot.slane %v894_v47, 4  ;;  %v2578_v14 = vrot.slane %v890_v58, 5  ;;  %v2626_v59 = vld [vmem:[%s2337_s8 + $0x6c] sm:$0xf] }
  0x76   : > { %1287 = vrot.lane.b32.xlu1 %v2544_v34, %s2116_s12  ;;  %v2576_v13 = vrot.slane %v983_v60, 4  ;;  %v900_v15 = vshll.u32 %v786_v0, 16  ;;  %v2585_v17 = vcombine.low %v1072_v6, %v1075_v2  ;;  %v993_v18 = vor.u32 %v992_v57, %v2560_v63  ;;  %v2633_v60 = vld [vmem:[%s2337_s8 + $0x70] sm:$0xf] }
  0x77   : > { %1277 = vrot.lane.b32.xlu0 %v2437_v4, %s2116_s12  ;;  %v887_v4 = vor.u32 %v886_v56, %v883_v55  ;;  %v1899_v49 = vrot.slane %v2532_v27, 9  ;;  %v2591_v42 = vcombine.low %v1044_v9, %v1047_v10  ;;  %v2595_v21 = vcombine.low %v2512_v62, %v2529_v26 }
  0x78   : > { %v2598_v22 = vcombine.low %v2532_v27, %v785_v44  ;;  %v1050_v23 = vrot.slane %v785_v44, 5  ;;  %v2603_v29 = vrot.slane %v996_v11, 5  ;;  %v1053_v30 = vrot.slane %v786_v0, 5 }
  0x79   : > { %v1084_v43 = vshrl.u32 %v2581_v16, 16  ;;  %v1087_v32 = vshll.u32 %v2581_v16, 16  ;;  %v989_v36 = vsel %vm2425_vm10, %v2576_v13, %v2560_v63  ;;  %v2612_v20 = vrot.slane %v887_v4, 4 }
  0x7a   : > { %1304 = vrot.lane.b32.xlu1 %v2410_v24, %s2117_s13  ;;  %v897_v27 = vor.u32 %v896_v12, %v2578_v14  ;;  %v2615_v44 = vrot.slane %v900_v15, 5  ;;  %v994_v37 = vrot.slane %v993_v18, 4  ;;  %v1051_v39 = vsel %vm2333_vm7, %v1899_v49, %v1050_v23  ;;  %v804_v49 = vld [vmem:[%s2337_s8 + $0x74] sm:$0x1] }
  0x7b   : > { %1279 = vrot.lane.b32.xlu0 %v2565_v5, %s2116_s12  ;;  %v1052_v31 = vrot.slane %v1050_v23, 4  ;;  %v1097_v41 = vshrl.u32 %v2601_v25, 16  ;;  %v1086_v45 = vrot.slane %v1084_v43, 4  ;;  %v1089_v46 = vrot.slane %v1087_v32, 5 }
  0x7c   : > { %v1093_v47 = vshll.u32 %v2601_v25, 16  ;;  %v1103_v51 = vshll.u32 %v801_v33, 16  ;;  %v1904_v56 = vrot.slane %v2581_v16, 9  ;;  %v1112_v58 = vrot.slane %v2601_v25, 5 }
  0x7d   : > { %v1054_v61 = vsel %vm2333_vm7, %v1052_v31, %v1053_v30  ;;  %v1099_v55 = vrot.slane %v1097_v41, 4  ;;  %v1115_v10 = vrot.slane %v801_v33, 5  ;;  %v1118_v11 = vshrl.u32 %v2626_v59, 16 }
  0x7e   : > { %1306 = vrot.lane.b32.xlu1 %v2585_v17, %s2117_s13  ;;  %v2635_v57 = vcombine.low %v1051_v39, %v1054_v61  ;;  %v1095_v0 = vrot.slane %v1093_v47, 5  ;;  %v1105_v6 = vrot.slane %v1103_v51, 5  ;;  %v1113_v2 = vsel %vm2333_vm7, %v1904_v56, %v1112_v58 }
  0x7f   : > { %1296 = vrot.lane.b32.xlu0 %v2414_v28, %s2117_s13  ;;  %v1090_v28 = vor.u32 %v1089_v46, %v1086_v45  ;;  %v1114_v9 = vrot.slane %v1112_v58, 4  ;;  %v1121_v15 = vshll.u32 %v2626_v59, 16  ;;  %v1131_v18 = vshrl.u32 %v2633_v60, 16 }
  0x80   : > { %v1100_v4 = vor.u32 %v1099_v55, %v1095_v0  ;;  %v898_v23 = vrot.slane %v897_v27, 4  ;;  %v1120_v43 = vrot.slane %v1118_v11, 4  ;;  %v1127_v32 = vshll.u32 %v2633_v60, 16 }
  0x81   : > { %v1091_v12 = vrot.slane %v1090_v28, 4  ;;  %v1116_v30 = vsel %vm2333_vm7, %v1114_v9, %v1115_v10  ;;  %v1123_v41 = vrot.slane %v1121_v15, 5  ;;  %v999_v27 = vsel %vm2425_vm10, %v994_v37, %v2603_v29  ;;  %v2069_v9 = vld [vmem:[%s2961_s1 + $0x10] ss:$0 sps:$4 sm:$0x33]  }
  0x82   : > { %1323 = vrot.lane.b32.xlu1 %v2506_v8, %s2118_s14  ;;  %v1101_v39 = vrot.slane %v1100_v4, 4  ;;  %v2652_v31 = vcombine.low %v1113_v2, %v1116_v30  ;;  %v1129_v45 = vrot.slane %v1127_v32, 5  ;;  %v1133_v46 = vrot.slane %v1131_v18, 4  ;;  %1992 = vmatprep.subr.msk.bf16.mxu0 %vm1550_vm11, %v2069_v9 }
  0x83   : > { %1298 = vrot.lane.b32.xlu0 %v2591_v42, %s2117_s13  ;;  %v1096_v33 = vsel %vm2425_vm10, %v1091_v12, %v1095_v0  ;;  %v1137_v47 = vshll.u32 %v804_v49, 16  ;;  %v1124_v61 = vor.u32 %v1123_v41, %v1120_v43  ;;  %v1906_v55 = vcombine.low %v2352_v48, %v2356_v50  ;;  %1993 = vmatprep.subr.msk.bf16.mxu1 %vm1550_vm11, %v2069_v9  ;;  %v2071_v43 = vld [vmem:[%s2961_s1] sm:$0xff]  }
  0x84   : > { %v1106_v51 = vsel %vm2425_vm10, %v1101_v39, %v1105_v6  ;;  %v1905_v56 = vrot.slane %v2626_v59, 9  ;;  %v1134_v28 = vor.u32 %v1133_v46, %v1129_v45  ;;  %v1146_v29 = vrot.slane %v2633_v60, 5 }
  0x85   : > { %v2666_v58 = vcombine.low %v1096_v33, %v1106_v51  ;;  %v1139_v0 = vrot.slane %v1137_v47, 5  ;;  %v1125_v37 = vrot.slane %v1124_v61, 4  ;;  %v1149_v2 = vrot.slane %v804_v49, 5 }
  0x86   : > { %1325 = vrot.lane.b32.xlu1 %v2595_v21, %s2118_s14  ;;  %v1921_v6 = vcombine.low %v989_v36, %v999_v27  ;;  %v1135_v10 = vrot.slane %v1134_v28, 4  ;;  %v2681_v11 = vsel %vm2333_vm7, %v1905_v56, %v1146_v29  ;;  %v1148_v12 = vrot.slane %v1146_v29, 4 }
  0x87   : > { %1315 = vrot.lane.b32.xlu0 %v2518_v19, %s2118_s14  ;;  %v893_v4 = vsel %vm2425_vm10, %v2612_v20, %v2578_v14  ;;  %v1078_v15 = vrot.slane %v2529_v26, 5  ;;  %v1130_v63 = vsel %vm2425_vm10, %v1125_v37, %v1129_v45  ;;  %v903_v13 = vsel %vm2425_vm10, %v898_v23, %v2615_v44  ;;  %v2070_v14 = vld [vmem:[%s2961_s1 + $0x8] sm:$0xff]  }
  0x88   : > { %v1140_v36 = vsel %vm2425_vm10, %v1135_v10, %v1139_v0  ;;  %v2699_v18 = vsel %vm2333_vm7, %v1148_v12, %v1149_v2  ;;  %v1552_v49 = vsel %vm1550_vm11, %v2069_v9, 0  ;;  %v1917_v40 = vcombine.low %v893_v4, %v903_v13 }
  0x89   : > { %v1934_v26 = vcombine.low %v1130_v63, %v1140_v36  ;;  %v1935_v20 = vcombine.low %v2681_v11, %v2699_v18  ;;  %1965 = vmatpush3.bf16.msra.mxu0 %v1552_v49  ;;  %v1903_v44 = vrot.slane %v2512_v62, 9  ;;  %v1080_v23 = vrot.slane %v1078_v15, 4  ;;  %1989 = vmatpush3.bf16.msra.mxu1 %v1552_v49 }
  0x8a   : > { %1342 = vrot.lane.b32.xlu1 %v2544_v34, %s2119_s22  ;;  %v1081_v30 = vrot.slane %v2556_v53, 5  ;;  %1966 = vmatprep.subr.bf16.mxu0 %v2070_v14  ;;  %v1930_v3 = vcombine.low %v2581_v16, %v2601_v25 }
  0x8b   : > { %1317 = vrot.lane.b32.xlu0 %v2598_v22, %s2118_s14  ;;  %1987 = vmatprep.subr.bf16.mxu1 %v2070_v14  ;;  %v1079_v62 = vsel %vm2333_vm7, %v1903_v44, %v1078_v15 }
  0x8c   : > { %v1082_v53 = vsel %vm2333_vm7, %v1080_v23, %v1081_v30 }
  0x8d   : > { %1967 = vmatpush3.bf16.msra.mxu0 %v2070_v14  ;;  %1990 = vmatpush3.bf16.msra.mxu1 %v2070_v14  ;;  %v1929_v32 = vcombine.low %v1079_v62, %v1082_v53 }
  0x8e   : > { %1344 = vrot.lane.b32.xlu1 %v1921_v6, %s2119_s22  ;;  %1968 = vmatprep.subr.bf16.mxu0 %v2071_v43 }
  0x8f   : > { %1334 = vrot.lane.b32.xlu0 %v2565_v5, %s2119_s22  ;;  %1988 = vmatprep.subr.bf16.mxu1 %v2071_v43 }
  0x91   : > { %1969 = vmatpush3.bf16.msra.mxu0 %v2071_v43  ;;  %1991 = vmatpush3.bf16.msra.mxu1 %v2071_v43 }
  0x92   : > { %1361 = vrot.lane.b32.xlu1 %v2585_v17, %s2120_s27 }
  0x93   : > { %1336 = vrot.lane.b32.xlu0 %v1917_v40, %s2119_s22 }
  0x96   : > { %1211 = vrot.lane.b32.xlu1 %v2544_v34, %s2114_s10  ;;  %v1933_v34 = vcombine.low %v2626_v59, %v2633_v60 }
  0x97   : > { %1353 = vrot.lane.b32.xlu0 %v2591_v42, %s2120_s27 }
  0x9a   : > { %1363 = vrot.lane.b32.xlu1 %v1929_v32, %s2120_s27 }
  0x9b   : > { %1203 = vrot.lane.b32.xlu0 %v2565_v5, %s2114_s10 }
  0x9e   : > { %1213 = vrot.lane.b32.xlu1 %v1921_v6, %s2114_s10 }
  0x9f   : > { %1355 = vrot.lane.b32.xlu0 %v2635_v57, %s2120_s27 }
  0xa2   : > { %1251 = vrot.lane.b32.xlu1 %v2585_v17, %s2113_s9 }
  0xa3   : > { %1205 = vrot.lane.b32.xlu0 %v1917_v40, %s2114_s10 }
  0xa6   : > { %1253 = vrot.lane.b32.xlu1 %v1929_v32, %s2113_s9 }
  0xa7   : > { %1243 = vrot.lane.b32.xlu0 %v2591_v42, %s2113_s9 }
  0xaa   : > { %1270 = vrot.lane.b32.xlu1 %v2595_v21, %s2115_s11 }
  0xab   : > { %1245 = vrot.lane.b32.xlu0 %v2635_v57, %s2113_s9 }
  0xae   : > { %1272 = vrot.lane.b32.xlu1 %v1930_v3, %s2115_s11 }
  0xaf   : > { %1262 = vrot.lane.b32.xlu0 %v2598_v22, %s2115_s11 }
  0xb2   : > { %1289 = vrot.lane.b32.xlu1 %v1921_v6, %s2116_s12 }
  0xb3   : > { %1264 = vrot.lane.b32.xlu0 %v2363_v54, %s2115_s11 }
  0xb6   : > { %1291 = vrot.lane.b32.xlu1 %v2666_v58, %s2116_s12 }
  0xb7   : > { %1281 = vrot.lane.b32.xlu0 %v1917_v40, %s2116_s12 }
  0xba   : > { %1308 = vrot.lane.b32.xlu1 %v1929_v32, %s2117_s13 }
  0xbb   : > { %1283 = vrot.lane.b32.xlu0 %v2499_v1, %s2116_s12 }
  0xbe   : > { %1310 = vrot.lane.b32.xlu1 %v2652_v31, %s2117_s13 }
  0xbf   : > { %1300 = vrot.lane.b32.xlu0 %v2635_v57, %s2117_s13 }
  0xc2   : > { %1327 = vrot.lane.b32.xlu1 %v1930_v3, %s2118_s14 }
  0xc3   : > { %1302 = vrot.lane.b32.xlu0 %v2389_v7, %s2117_s13 }
  0xc5   : > { %v1248_v5 = vpop.permute.xlu1 %1247 }
  0xc6   : > { %1329 = vrot.lane.b32.xlu1 %v1933_v34, %s2118_s14 }
  0xc7   : > { %1319 = vrot.lane.b32.xlu0 %v2363_v54, %s2118_s14  ;;  %v1240_v16 = vpop.permute.xlu0 %1239 }
  0xc9   : > { %v1250_v17 = vpop.permute.xlu1 %1249 }
  0xca   : > { %1346 = vrot.lane.b32.xlu1 %v2666_v58, %s2119_s22 }
  0xcb   : > { %1321 = vrot.lane.b32.xlu0 %v2475_v38, %s2118_s14  ;;  %v2774_v42 = vpop.permute.xlu0 %1241 }
  0xce   : > { %1348 = vrot.lane.b32.xlu1 %v1934_v26, %s2119_s22 }
  0xcf   : > { %1338 = vrot.lane.b32.xlu0 %v2499_v1, %s2119_s22 }
  0xd1   : > { %v1202_v25 = vpop.permute.xlu1 %1201 }
  0xd2   : > { %1365 = vrot.lane.b32.xlu1 %v2652_v31, %s2120_s27 }
  0xd3   : > { %1340 = vrot.lane.b32.xlu0 %v2471_v35, %s2119_s22 }
  0xd5   : > { %v1200_v59 = vpop.permute.xlu0 %1199 }
  0xd6   : > { %1367 = vrot.lane.b32.xlu1 %v1935_v20, %s2120_s27  ;;  %v1372_v9 = vsel %vm1369_vm12, %v1906_v55, %v1200_v59  ;;  %v1375_v20 = vsel %vm1369_vm12, %v2489_v52, %v1202_v25 }
  0xd7   : > { %1357 = vrot.lane.b32.xlu0 %v2389_v7, %s2120_s27  ;;  %v1396_v4 = vsel %vm1394_vm14, %v1372_v9, %v1240_v16  ;;  %v1398_v62 = vsel %vm1394_vm14, %v1375_v20, %v2774_v42 }
  0xd8   : > { %v1210_v60 = vpop.permute.xlu1 %1209 }
  0xd9   : > { %v1387_v12 = vsel %vm1369_vm12, %v2475_v38, %v1210_v60 }
  0xda   : > { %v1406_v36 = vsel %vm1394_vm14, %v1387_v12, %v1250_v17 }
  0xdb   : > { %1359 = vrot.lane.b32.xlu0 %v2410_v24, %s2120_s27 }
  0xdc   : > { %v1267_v1 = vpop.permute.xlu1 %1266 }
  0xdd   : > { %v1208_v57 = vpop.permute.xlu0 %1207 }
  0xde   : > { %v1384_v24 = vsel %vm1369_vm12, %v2363_v54, %v1208_v57 }
  0xdf   : > { %v1404_v29 = vsel %vm1394_vm14, %v1384_v24, %v1248_v5 }
  0xe0   : > { %v1269_v33 = vpop.permute.xlu1 %1268  ;;  %v1421_v37 = vsel %vm1411_vm13, %v1404_v29, %v1267_v1 }
  0xe1   : > { %v1259_v39 = vpop.permute.xlu0 %1258  ;;  %v1423_v38 = vsel %vm1411_vm13, %v1406_v36, %v1269_v33 }
  0xe2   : > { %v1413_v50 = vsel %vm1411_vm13, %v1396_v4, %v1259_v39 }
  0xe4   : > { %v1286_v31 = vpop.permute.xlu1 %1285 }
  0xe5   : > { %v1261_v41 = vpop.permute.xlu0 %1260  ;;  %v1438_v6 = vsel %vm1428_vm15, %v1421_v37, %v1286_v31 }
  0xe6   : > { %v1415_v52 = vsel %vm1411_vm13, %v1398_v62, %v1261_v41 }
  0xe8   : > { %v1288_v35 = vpop.permute.xlu1 %1287 }
  0xe9   : > { %v1278_v27 = vpop.permute.xlu0 %1277  ;;  %v1440_v49 = vsel %vm1428_vm15, %v1423_v38, %v1288_v35 }
  0xea   : > { %v1430_v13 = vsel %vm1428_vm15, %v1413_v50, %v1278_v27 }
  0xec   : > { %v1305_v45 = vpop.permute.xlu1 %1304 }
  0xed   : > { %v1280_v46 = vpop.permute.xlu0 %1279  ;;  %v1455_v10 = vsel %vm1445_vm0, %v1438_v6, %v1305_v45 }
  0xee   : > { %v1432_v5 = vsel %vm1428_vm15, %v1415_v52, %v1280_v46 }
  0xf0   : > { %v1307_v47 = vpop.permute.xlu1 %1306 }
  0xf1   : > { %v1297_v51 = vpop.permute.xlu0 %1296  ;;  %v1457_v23 = vsel %vm1445_vm0, %v1440_v49, %v1307_v47 }
  0xf2   : > { %v1447_v18 = vsel %vm1445_vm0, %v1430_v13, %v1297_v51 }
  0xf4   : > { %v1324_v61 = vpop.permute.xlu1 %1323 }
  0xf5   : > { %v1299_v56 = vpop.permute.xlu0 %1298  ;;  %v1472_v11 = vsel %vm1462_vm1, %v1455_v10, %v1324_v61 }
  0xf6   : > { %v1449_v16 = vsel %vm1445_vm0, %v1432_v5, %v1299_v56 }
  0xf8   : > { %v1326_v7 = vpop.permute.xlu1 %1325 }
  0xf9   : > { %v1316_v58 = vpop.permute.xlu0 %1315  ;;  %v1474_v43 = vsel %vm1462_vm1, %v1457_v23, %v1326_v7 }
  0xfa   : > { %v1464_v14 = vsel %vm1462_vm1, %v1447_v18, %v1316_v58 }
  0xfc   : > { %v1343_v28 = vpop.permute.xlu1 %1342 }
  0xfd   : > { %v1318_v0 = vpop.permute.xlu0 %1317  ;;  %v1489_v15 = vsel %vm1479_vm2, %v1472_v11, %v1343_v28 }
  0xfe   : > { %v1466_v17 = vsel %vm1462_vm1, %v1449_v16, %v1318_v0 }
 0x100   : > { %v1345_v2 = vpop.permute.xlu1 %1344 }
 0x101   : > { %v1335_v54 = vpop.permute.xlu0 %1334  ;;  %v1491_v53 = vsel %vm1479_vm2, %v1474_v43, %v1345_v2 }
 0x102   : > { %v1481_v40 = vsel %vm1479_vm2, %v1464_v14, %v1335_v54 }
 0x104   : > { %v1362_v48 = vpop.permute.xlu1 %1361 }
 0x105   : > { %v1337_v55 = vpop.permute.xlu0 %1336  ;;  %v1506_v63 = vsel %vm1496_vm3, %v1489_v15, %v1362_v48 }
 0x106   : > { %1978 = vmatprep.mubr.msk.bf16.mxu1 %vm1533_vm4, %v1506_v63  ;;  %v1483_v59 = vsel %vm1479_vm2, %v1466_v17, %v1337_v55 }
 0x108   : > { %v1212_v26 = vpop.permute.xlu1 %1211 }
 0x109   : > { %v1354_v44 = vpop.permute.xlu0 %1353  ;;  %v1390_v9 = vsel %vm1369_vm12, %v2506_v8, %v1212_v26 }
 0x10a   : > { %v1498_v30 = vsel %vm1496_vm3, %v1481_v40, %v1354_v44 }
 0x10b   : > { %1970 = vmatprep.mubr.msk.bf16.mxu0 %vm1533_vm4, %v1498_v30 }
 0x10c   : > { %v1364_v32 = vpop.permute.xlu1 %1363 }
 0x10d   : > { %v1204_v3 = vpop.permute.xlu0 %1203  ;;  %v1508_v34 = vsel %vm1496_vm3, %v1491_v53, %v1364_v32 }
 0x10e   : > { %1979 = vmatmul.mubr.msk.bf16.vlgmr.msra.gmra.mxu1 %vm1533_vm4, %v1508_v34  ;;  %v1378_v48 = vsel %vm1369_vm12, %v2518_v19, %v1204_v3 }
 0x110   : > { %v1214_v25 = vpop.permute.xlu1 %1213 }
 0x111   : > { %v1356_v42 = vpop.permute.xlu0 %1355  ;;  %v1393_v4 = vsel %vm1369_vm12, %v2595_v21, %v1214_v25 }
 0x112   : > { %v1500_v60 = vsel %vm1496_vm3, %v1483_v59, %v1356_v42  ;;  %v2874_v59 = vld [vmem:[%s2962_s2] ss:$0 sm:$0xff] }
 0x113   : > { %1971 = vmatmul.mubr.msk.bf16.vlgmr.msra.gmra.mxu0 %vm1533_vm4, %v1500_v60  ;;  %v2879_v42 = vld [vmem:[%s2963_s3] ss:$0 sm:$0xff] }
 0x114   : > { %v1252_v1 = vpop.permute.xlu1 %1251 }
 0x115   : > { %v1206_v57 = vpop.permute.xlu0 %1205  ;;  %v1408_v6 = vsel %vm1394_vm14, %v1390_v9, %v1252_v1 }
 0x116   : > { %v1381_v20 = vsel %vm1369_vm12, %v2598_v22, %v1206_v57 }
 0x118   : > { %v1254_v33 = vpop.permute.xlu1 %1253 }
 0x119   : > { %v1244_v39 = vpop.permute.xlu0 %1243  ;;  %v1410_v50 = vsel %vm1394_vm14, %v1393_v4, %v1254_v33 }
 0x11a   : > { %v1400_v55 = vsel %vm1394_vm14, %v1378_v48, %v1244_v39 }
 0x11c   : > { %v1271_v31 = vpop.permute.xlu1 %1270 }
 0x11d   : > { %v1246_v41 = vpop.permute.xlu0 %1245  ;;  %v1425_v54 = vsel %vm1411_vm13, %v1408_v6, %v1271_v31 }
 0x11e   : > { %v1402_v44 = vsel %vm1394_vm14, %v1381_v20, %v1246_v41 }
 0x120   : > { %v1273_v35 = vpop.permute.xlu1 %1272 }
 0x121   : > { %v1263_v27 = vpop.permute.xlu0 %1262  ;;  %v1427_v63 = vsel %vm1411_vm13, %v1410_v50, %v1273_v35 }
 0x122   : > { %v1417_v18 = vsel %vm1411_vm13, %v1400_v55, %v1263_v27 }
 0x124   : > { %v1290_v45 = vpop.permute.xlu1 %1289 }
 0x125   : > { %v1265_v46 = vpop.permute.xlu0 %1264  ;;  %v1442_v11 = vsel %vm1428_vm15, %v1425_v54, %v1290_v45 }
 0x126   : > { %v1419_v62 = vsel %vm1411_vm13, %v1402_v44, %v1265_v46 }
 0x128   : > { %v1292_v47 = vpop.permute.xlu1 %1291 }
 0x129   : > { %v1282_v51 = vpop.permute.xlu0 %1281  ;;  %v1444_v21 = vsel %vm1428_vm15, %v1427_v63, %v1292_v47 }
 0x12a   : > { %v1434_v19 = vsel %vm1428_vm15, %v1417_v18, %v1282_v51 }
 0x12c   : > { %v1309_v61 = vpop.permute.xlu1 %1308 }
 0x12d   : > { %v1284_v56 = vpop.permute.xlu0 %1283  ;;  %v1459_v15 = vsel %vm1445_vm0, %v1442_v11, %v1309_v61 }
 0x12e   : > { %v1436_v22 = vsel %vm1428_vm15, %v1419_v62, %v1284_v56 }
 0x130   : > { %v1311_v7 = vpop.permute.xlu1 %1310 }
 0x131   : > { %v1301_v58 = vpop.permute.xlu0 %1300  ;;  %v1461_v26 = vsel %vm1445_vm0, %v1444_v21, %v1311_v7 }
 0x132   : > { %v1451_v49 = vsel %vm1445_vm0, %v1434_v19, %v1301_v58 }
 0x134   : > { %v1328_v24 = vpop.permute.xlu1 %1327 }
 0x135   : > { %v1303_v28 = vpop.permute.xlu0 %1302  ;;  %v1476_v8 = vsel %vm1462_vm1, %v1459_v15, %v1328_v24 }
 0x136   : > { %v1453_v34 = vsel %vm1445_vm0, %v1436_v22, %v1303_v28 }
 0x138   : > { %v1330_v0 = vpop.permute.xlu1 %1329 }
 0x139   : > { %v1320_v29 = vpop.permute.xlu0 %1319  ;;  %v1478_v40 = vsel %vm1462_vm1, %v1461_v26, %v1330_v0 }
 0x13a   : > { %v1468_v23 = vsel %vm1462_vm1, %v1451_v49, %v1320_v29 }
 0x13c   : > { %v1347_v37 = vpop.permute.xlu1 %1346 }
 0x13d   : > { %v1322_v2 = vpop.permute.xlu0 %1321  ;;  %v1493_v13 = vsel %vm1479_vm2, %v1476_v8, %v1347_v37 }
 0x13e   : > { %v1470_v5 = vsel %vm1462_vm1, %v1453_v34, %v1322_v2 }
 0x140   : > { %v1349_v10 = vpop.permute.xlu1 %1348 }
 0x141   : > { %v1339_v12 = vpop.permute.xlu0 %1338  ;;  %v1495_v30 = vsel %vm1479_vm2, %v1478_v40, %v1349_v10 }
 0x142   : > { %v1485_v53 = vsel %vm1479_vm2, %v1468_v23, %v1339_v12 }
 0x144   : > { %v1366_v36 = vpop.permute.xlu1 %1365 }
 0x145   : > { %v1341_v38 = vpop.permute.xlu0 %1340  ;;  %v1510_v14 = vsel %vm1496_vm3, %v1493_v13, %v1366_v36 }
 0x146   : > { %1982 = vmatprep.mubr.msk.bf16.mxu1 %vm1533_vm4, %v1510_v14  ;;  %v1487_v16 = vsel %vm1479_vm2, %v1470_v5, %v1341_v38 }
 0x148   : > { %v1368_v43 = vpop.permute.xlu1 %1367 }
 0x149   : > { %v1358_v32 = vpop.permute.xlu0 %1357  ;;  %v1512_v52 = vsel %vm1496_vm3, %v1495_v30, %v1368_v43 }
 0x14a   : > { %v1502_v3 = vsel %vm1496_vm3, %v1485_v53, %v1358_v32  ;;  %1983 = vmatmul.mubr.msk.bf16.gmra.mxu1 %vm1533_vm4, %v1512_v52 }
 0x14b   : > { %1974 = vmatprep.mubr.msk.bf16.mxu0 %vm1533_vm4, %v1502_v3 }
 0x14d   : > { %v1360_v17 = vpop.permute.xlu0 %1359 }
 0x14e   : > { %v1504_v25 = vsel %vm1496_vm3, %v1487_v16, %v1360_v17 }
 0x14f   : > { %1975 = vmatmul.mubr.msk.bf16.gmra.mxu0 %vm1533_vm4, %v1504_v25 }
 0x1ce   : > { %v1980_v60 = vpop.f32.mrf.mxu1 }
 0x1cf   : > { %v1668_v1 = vmul.f32 %v1980_v60, %v2874_v59 }
 0x1d0   : > { %v1620_v57 = vpop.f32.mrf.mxu1 }
 0x1d1   : > { %v1691_v33 = vadd.f32 %v2879_v42, %v1668_v1  ;;  %v1666_v39 = vmul.f32 %v2874_v59, %v1620_v57 }
 0x1d2   : > { %v1981_v31 = vpop.f32.mrf.mxu1 }
 0x1d3   : > { %v1972_v41 = vpop.f32.mrf.mxu0  ;;  %v1707_v35 = vmax.f32 %v1691_v33, 0.0  ;;  %v1689_v27 = vadd.f32 %v2879_v42, %v1666_v39  ;;  %v1669_v45 = vmul.f32 %v1981_v31, %v2874_v59 }
 0x1d4   : > { %v1660_v46 = vmul.f32 %v1972_v41, %v2874_v59  ;;  %v1623_v47 = vpop.f32.mrf.mxu1 }
 0x1d5   : > { %1723 = vst.msk [vmem:[%s2187_s6 + $0x50] sm:$0xff] %vm1369_vm12, %v1707_v35  ;;  %v1588_v51 = vpop.f32.mrf.mxu0  ;;  %v1705_v61 = vmax.f32 %v1689_v27, 0.0  ;;  %v1692_v56 = vadd.f32 %v2879_v42, %v1669_v45  ;;  %v1667_v7 = vmul.f32 %v2874_v59, %v1623_v47 }
 0x1d6   : > { %v1683_v58 = vadd.f32 %v2879_v42, %v1660_v46  ;;  %v1658_v24 = vmul.f32 %v2874_v59, %v1588_v51 }
 0x1d7   : > { %1721 = vst.msk [vmem:[%s2187_s6 + $0x40] sm:$0xff] %vm1369_vm12, %v1705_v61  ;;  %v1973_v28 = vpop.f32.mrf.mxu0  ;;  %v1708_v0 = vmax.f32 %v1692_v56, 0.0  ;;  %v1690_v29 = vadd.f32 %v2879_v42, %v1667_v7 }
 0x1d8   : > { %v1699_v37 = vmax.f32 %v1683_v58, 0.0  ;;  %v1681_v2 = vadd.f32 %v2879_v42, %v1658_v24  ;;  %v1661_v9 = vmul.f32 %v1973_v28, %v2874_v59 }
 0x1d9   : > { %1724 = vst.msk [vmem:[%s2187_s6 + $0x58] sm:$0xff] %vm1369_vm12, %v1708_v0  ;;  %v1591_v6 = vpop.f32.mrf.mxu0  ;;  %v1706_v54 = vmax.f32 %v1690_v29, 0.0 }
 0x1da   : > { %1715 = vst.msk [vmem:[%s2187_s6 + $0x10] sm:$0xff] %vm1369_vm12, %v1699_v37  ;;  %v1697_v10 = vmax.f32 %v1681_v2, 0.0  ;;  %v1684_v11 = vadd.f32 %v2879_v42, %v1661_v9  ;;  %v1659_v12 = vmul.f32 %v2874_v59, %v1591_v6 }
 0x1db   : > { %1722 = vst.msk [vmem:[%s2187_s6 + $0x48] sm:$0xff] %vm1369_vm12, %v1706_v54 }
 0x1dc   : > { %1713 = vst.msk [vmem:[%s2187_s6] sm:$0xff] %vm1369_vm12, %v1697_v10  ;;  %v1700_v4 = vmax.f32 %v1684_v11, 0.0  ;;  %v1682_v15 = vadd.f32 %v2879_v42, %v1659_v12 }
 0x1de   : > { %1716 = vst.msk [vmem:[%s2187_s6 + $0x18] sm:$0xff] %vm1369_vm12, %v1700_v4  ;;  %v1698_v48 = vmax.f32 %v1682_v15, 0.0 }
 0x1e0   : > { %1714 = vst.msk [vmem:[%s2187_s6 + $0x8] sm:$0xff] %vm1369_vm12, %v1698_v48 }
 0x20a   : > { %v1984_v50 = vpop.f32.mrf.mxu1 }
 0x20b   : > { %v1672_v8 = vmul.f32 %v1984_v50, %v2874_v59 }
 0x20c   : > { %v1636_v55 = vpop.f32.mrf.mxu1 }
 0x20d   : > { %v1695_v63 = vadd.f32 %v2879_v42, %v1672_v8  ;;  %v1670_v13 = vmul.f32 %v2874_v59, %v1636_v55 }
 0x20e   : > { %v1985_v36 = vpop.f32.mrf.mxu1 }
 0x20f   : > { %v1976_v18 = vpop.f32.mrf.mxu0  ;;  %v1711_v21 = vmax.f32 %v1695_v63, 0.0  ;;  %v1693_v38 = vadd.f32 %v2879_v42, %v1670_v13  ;;  %v1673_v14 = vmul.f32 %v1985_v36, %v2874_v59 }
 0x210   : > { %v1664_v19 = vmul.f32 %v1976_v18, %v2874_v59  ;;  %v1639_v26 = vpop.f32.mrf.mxu1 }
 0x211   : > { %1727 = vst.msk [vmem:[%s2187_s6 + $0x70] sm:$0xff] %vm1369_vm12, %v1711_v21  ;;  %v1604_v20 = vpop.f32.mrf.mxu0  ;;  %v1709_v49 = vmax.f32 %v1693_v38, 0.0  ;;  %v1696_v40 = vadd.f32 %v2879_v42, %v1673_v14  ;;  %v1671_v44 = vmul.f32 %v2874_v59, %v1639_v26 }
 0x212   : > { %v1687_v23 = vadd.f32 %v2879_v42, %v1664_v19  ;;  %v1662_v30 = vmul.f32 %v2874_v59, %v1604_v20 }
 0x213   : > { %1725 = vst.msk [vmem:[%s2187_s6 + $0x60] sm:$0xff] %vm1369_vm12, %v1709_v49  ;;  %v1977_v43 = vpop.f32.mrf.mxu0  ;;  %v1712_v62 = vmax.f32 %v1696_v40, 0.0  ;;  %v1694_v53 = vadd.f32 %v2879_v42, %v1671_v44 }
 0x214   : > { %v1703_v32 = vmax.f32 %v1687_v23, 0.0  ;;  %v1685_v52 = vadd.f32 %v2879_v42, %v1662_v30  ;;  %v1665_v22 = vmul.f32 %v1977_v43, %v2874_v59 }
 0x215   : > { %1728 = vst.msk [vmem:[%s2187_s6 + $0x78] sm:$0xff] %vm1369_vm12, %v1712_v62  ;;  %v1607_v3 = vpop.f32.mrf.mxu0  ;;  %v1710_v34 = vmax.f32 %v1694_v53, 0.0 }
 0x216   : > { %1719 = vst.msk [vmem:[%s2187_s6 + $0x30] sm:$0xff] %vm1369_vm12, %v1703_v32  ;;  %v1701_v5 = vmax.f32 %v1685_v52, 0.0  ;;  %v1688_v16 = vadd.f32 %v2879_v42, %v1665_v22  ;;  %v1663_v17 = vmul.f32 %v2874_v59, %v1607_v3 }
 0x217   : > { %1726 = vst.msk [vmem:[%s2187_s6 + $0x68] sm:$0xff] %vm1369_vm12, %v1710_v34 }
 0x218   : > { %1717 = vst.msk [vmem:[%s2187_s6 + $0x20] sm:$0xff] %vm1369_vm12, %v1701_v5  ;;  %v1704_v25 = vmax.f32 %v1688_v16, 0.0  ;;  %v1686_v60 = vadd.f32 %v2879_v42, %v1663_v17 }
 0x21a   : > { %1720 = vst.msk [vmem:[%s2187_s6 + $0x38] sm:$0xff] %vm1369_vm12, %v1704_v25  ;;  %v1702_v1 = vmax.f32 %v1686_v60, 0.0 }
 0x21c   : > { %1718 = vst.msk [vmem:[%s2187_s6 + $0x28] sm:$0xff] %vm1369_vm12, %v1702_v1 }
 0x21d PF: > { %s14_s19 = sadd.s32 1, %s2110_s19   ;;  %s2971_s15 = smov %s2102_s17 }
 0x21e   : > { %p11_p8 = scmp.ge.s32.totalorder %s14_s19, 6   ;;  %s2972_s16 = smov %s2106_s18 }
 0x21f   : > { %s2973_s17 = smov %s2976_s20  ;;  %s2974_s18 = smov %s2980_s21 }
 0x220   :  { %13 = sbr.rel (!%p11_p8) target bundleno = 3 (0x3), region = 71 }

</bundles_post_ra>
